<compile_context>
chip_gen: v7x
topology: tpu7x:2x2x1
jax: 0.10.0
libtpu: 0.0.40
codegen_flags: <defaults>
</compile_context>

<pallas_src>
import functools

import numpy as np

import jax
import jax.numpy as jnp
from jax.experimental import pallas as pl
from jax.experimental.pallas import tpu as pltpu

NEG_SLOPE = 0.2   # LeakyReLU negative slope
BN_EPS = 1e-5     # nn.BatchNorm2d default eps


def _leaky_relu(x):
    return jnp.where(x >= 0, x, NEG_SLOPE * x)


# ---------------------------------------------------------------------------
# In-kernel helpers (all loops are static Python loops over tiny extents).
#
# Activation layout: [G, B, T, W*C] where padded H-row r lives in group
# r % G at in-group index r // G.  G halves after every stride-2 conv, which
# makes every read a contiguous sublane slice.
# ---------------------------------------------------------------------------
def _conv_group_outputs(src, bw_ref, *, batch, prod, g_in, t_out, stride):
    """Per-output-group conv results (f32 values).

    src:    ref [g_in, batch, T, W_in*C_in]   f32 activations (H-grouped)
    bw_ref: ref [4, W_in*C_in, wo*C_out]      bf16 per-H-tap row operators
    Returns `prod` values of shape [batch*t_out, wo*C_out]; group g holds
    output rows oh = g + prod*t, t = 0..t_out-1 (batch-major along rows).
    """
    outs = []
    for g in range(prod):
        acc = None
        for i in range(4):                       # the 4 H-taps of the kernel
            r = stride * g + i                   # padded input row for t == 0
            gi, off = r % g_in, r // g_in
            lhs = jnp.concatenate(
                [src[gi, bb, off:off + t_out, :] for bb in range(batch)],
                axis=0).astype(jnp.bfloat16)
            part = jnp.dot(lhs, bw_ref[i],
                           preferred_element_type=jnp.float32)
            acc = part if acc is None else acc + part
        outs.append(acc)
    return outs


def _bn_lrelu_groups(ys, gamma_ref, beta_ref, fold_ref, *, count, wo):
    """Training-mode BatchNorm2d (biased batch var) + LeakyReLU, f32 math.

    ys:    list of [rows, wo*C] f32 conv outputs covering all (b, oh) rows.
    fold:  [wo*C, C] 0/1 matrix summing the `ow` lane-groups per channel.
    """
    fold = fold_ref[...]
    tot = sum(jnp.sum(y, axis=0, keepdims=True) for y in ys)         # [1,wo*C]
    tot_sq = sum(jnp.sum(y * y, axis=0, keepdims=True) for y in ys)  # [1,wo*C]
    mean_c = jnp.dot(tot, fold) / count                              # [1, C]
    ex2_c = jnp.dot(tot_sq, fold) / count
    var_c = ex2_c - mean_c * mean_c               # biased var (train mode)
    inv_c = jax.lax.rsqrt(var_c + BN_EPS)
    # Broadcast the per-channel stats back to the (ow, c) lane layout.
    mean_l = jnp.tile(mean_c, (1, wo))
    inv_l = jnp.tile(inv_c, (1, wo))
    scale = gamma_ref[...] * inv_l
    shift = beta_ref[...] - mean_l * scale
    return [_leaky_relu(y * scale + shift) for y in ys]


def _write_groups(dst, acts, *, batch, prod, t_out):
    """Write activations into the next layer's H-grouped, H-padded scratch."""
    for g in range(prod):
        # output row oh = g + prod*t  ->  next padded row oh + 1
        gw, off = (g + 1) % prod, (g + 1) // prod
        y = acts[g]
        for bb in range(batch):
            dst[gw, bb, off:off + t_out, :] = (
                y[bb * t_out:(bb + 1) * t_out, :].astype(dst.dtype))


# ---------------------------------------------------------------------------
# The fused kernel: conv1 -> block1 -> block2 -> block3 -> pool -> linear
# ---------------------------------------------------------------------------
def _discriminator_kernel(x_ref,
                          bw0_ref, bias1_ref,
                          bw1_ref, g1_ref, be1_ref, f1_ref,
                          bw2_ref, g2_ref, be2_ref, f2_ref,
                          bw3_ref, g3_ref, be3_ref, f3_ref,
                          wc_ref,
                          o_ref,
                          s1, s2, s3,
                          *, batch, hs, ws, out_nc):
    h1, h2, h3, h4 = hs
    w1, w2, w3, w4 = ws

    # Zero the scratches once (provides the H zero-padding rows).
    s1[...] = jnp.zeros_like(s1)
    s2[...] = jnp.zeros_like(s2)
    s3[...] = jnp.zeros_like(s3)

    # --- conv1 (k=4, s=2, p=1, bias=True) + LeakyReLU -----------------------
    ys = _conv_group_outputs(x_ref, bw0_ref, batch=batch, prod=4, g_in=8,
                             t_out=h1 // 4, stride=2)
    bias = bias1_ref[...]
    acts = [_leaky_relu(y + bias) for y in ys]
    _write_groups(s1, acts, batch=batch, prod=4, t_out=h1 // 4)

    # --- DownConvBlock 1 (s=2): conv -> BN -> LeakyReLU ----------------------
    ys = _conv_group_outputs(s1, bw1_ref, batch=batch, prod=2, g_in=4,
                             t_out=h2 // 2, stride=2)
    acts = _bn_lrelu_groups(ys, g1_ref, be1_ref, f1_ref,
                            count=batch * h2 * w2, wo=w2)
    _write_groups(s2, acts, batch=batch, prod=2, t_out=h2 // 2)

    # --- DownConvBlock 2 (s=2) ----------------------------------------------
    ys = _conv_group_outputs(s2, bw2_ref, batch=batch, prod=1, g_in=2,
                             t_out=h3, stride=2)
    acts = _bn_lrelu_groups(ys, g2_ref, be2_ref, f2_ref,
                            count=batch * h3 * w3, wo=w3)
    _write_groups(s3, acts, batch=batch, prod=1, t_out=h3)

    # --- DownConvBlock 3 (s=1) + AdaptiveAvgPool2d(1) + flatten + Linear -----
    ys = _conv_group_outputs(s3, bw3_ref, batch=batch, prod=1, g_in=1,
                             t_out=h4, stride=1)
    acts = _bn_lrelu_groups(ys, g3_ref, be3_ref, f3_ref,
                            count=batch * h4 * w4, wo=w4)
    y = acts[0]                                        # [batch*h4, w4*C4]
    row_mean = jnp.concatenate(
        [jnp.mean(y[bb * h4:(bb + 1) * h4, :], axis=0, keepdims=True)
         for bb in range(batch)], axis=0)              # [batch, w4*C4]
    pooled = jnp.dot(row_mean, f3_ref[...]) / w4       # [batch, C4]
    if out_nc == 1:
        # 1-output classifier: VPU multiply + cross-lane reduce.
        out = jnp.sum(pooled * wc_ref[...], axis=-1, keepdims=True)
    else:
        out = jax.lax.dot_general(pooled, wc_ref[...],
                                  (((1,), (1,)), ((), ())),
                                  preferred_element_type=jnp.float32)
    o_ref[...] = out.astype(o_ref.dtype)


# ---------------------------------------------------------------------------
# One-time parameter folding (outside the per-forward work).
# ---------------------------------------------------------------------------
def prepare_params(params, input_hw):
    """Fold conv weights into per-H-tap row operators, pre-tile the per-channel
    vectors to the (ow, c) lane layout, and build the BN fold matrices.  Call
    this ONCE; the forward pass consumes the prepared arrays directly."""
    h, w = input_hw
    assert h % 8 == 0 and w % 8 == 0 and h >= 16 and w >= 16, (h, w)
    ndf = params["w1"].shape[3]

    def bigw(w_hwio, stride, w_in):
        # BigW[i, iw*Cin + c, ow*Cout + o] = w[i, kj, c, o]
        #   with iw = stride*ow + kj - 1   (padding=1 along W absorbed).
        kh, kw, ci, co = w_hwio.shape
        wo = (w_in + 2 - kw) // stride + 1
        mats = []
        for i in range(kh):
            m = jnp.zeros((w_in * ci, wo * co), jnp.float32)
            for kj in range(kw):
                sel = np.zeros((w_in, wo), np.float32)
                for ow in range(wo):
                    iw = stride * ow + kj - 1
                    if 0 <= iw < w_in:
                        sel[iw, ow] = 1.0
                m = m + jnp.kron(jnp.asarray(sel),
                                 w_hwio[i, kj].astype(jnp.float32))
            mats.append(m)
        return jnp.stack(mats).astype(jnp.bfloat16)     # [4, Win*Cin, wo*Cout]

    def fold(wo, c):                                      # [wo*C, C] 0/1
        return jnp.asarray(np.kron(np.ones((wo, 1), np.float32),
                                   np.eye(c, dtype=np.float32)))

    def lane_tile(v, wo):                                 # [1, wo*C]
        return jnp.tile(v.reshape(1, -1).astype(jnp.float32), (1, wo))

    w_in0, w_in1, w_in2, w_in3 = w, w // 2, w // 4, w // 8
    wo1, wo2, wo3, wo4 = w // 2, w // 4, w // 8, w // 8 - 1
    return {
        "bw0": bigw(params["w1"], 2, w_in0),
        "bias1": lane_tile(params["b1"], wo1),
        "bw1": bigw(params["wb1"], 2, w_in1),
        "gamma1": lane_tile(params["g1"], wo2),
        "beta1": lane_tile(params["be1"], wo2),
        "fold1": fold(wo2, 2 * ndf),
        "bw2": bigw(params["wb2"], 2, w_in2),
        "gamma2": lane_tile(params["g2"], wo3),
        "beta2": lane_tile(params["be2"], wo3),
        "fold2": fold(wo3, 4 * ndf),
        "bw3": bigw(params["wb3"], 1, w_in3),
        "gamma3": lane_tile(params["g3"], wo4),
        "beta3": lane_tile(params["be3"], wo4),
        "fold3": fold(wo4, 8 * ndf),
        "wc": params["wc"].astype(jnp.float32),
    }


def _whole_spec(shape):
    nd = len(shape)
    return pl.BlockSpec(shape, lambda i, _nd=nd: (0,) * _nd)


# ---------------------------------------------------------------------------
# Full forward pass: one pallas_call.
# ---------------------------------------------------------------------------
def base_discriminator_forward(x_nchw, prep):
    b, cin, h, w = x_nchw.shape
    assert h % 8 == 0 and w % 8 == 0 and h >= 16 and w >= 16, (h, w)
    ndf = prep["fold1"].shape[1] // 2
    out_nc = prep["wc"].shape[0]
    h1, h2, h3, h4 = h // 2, h // 4, h // 8, h // 8 - 1
    w1, w2, w3, w4 = w // 2, w // 4, w // 8, w // 8 - 1
    c1, c2, c3 = ndf, 2 * ndf, 4 * ndf

    # Input prep (the only per-forward XLA relayout): NCHW -> H-grouped,
    # H-padded, row-flattened layout [8, B, rows-per-group, W*Cin].
    t0 = h // 8 + 1
    x = jnp.transpose(x_nchw, (0, 2, 3, 1)).reshape(b, h, w * cin)
    x = jnp.pad(x, ((0, 0), (1, 8 * t0 - h - 1), (0, 0)))
    x = x.reshape(b, t0, 8, w * cin)
    x = jnp.transpose(x, (2, 0, 1, 3)).astype(jnp.float32)

    ins = (x,
           prep["bw0"], prep["bias1"],
           prep["bw1"], prep["gamma1"], prep["beta1"], prep["fold1"],
           prep["bw2"], prep["gamma2"], prep["beta2"], prep["fold2"],
           prep["bw3"], prep["gamma3"], prep["beta3"], prep["fold3"],
           prep["wc"])

    kernel = functools.partial(
        _discriminator_kernel, batch=b, hs=(h1, h2, h3, h4),
        ws=(w1, w2, w3, w4), out_nc=out_nc)

    return pl.pallas_call(
        kernel,
        out_shape=jax.ShapeDtypeStruct((b, out_nc), jnp.float32),
        grid_spec=pltpu.PrefetchScalarGridSpec(
            num_scalar_prefetch=0,
            # Single grid step: BatchNorm statistics span the whole batch and
            # every tensor fits VMEM with huge margin on v5e/v6e/v7x.
            grid=(1,),
            in_specs=[_whole_spec(a.shape) for a in ins],
            out_specs=_whole_spec((b, out_nc)),
            scratch_shapes=[
                pltpu.VMEM((4, b, h1 // 4 + 1, w1 * c1), jnp.float32),  # s1
                pltpu.VMEM((2, b, h2 // 2 + 1, w2 * c2), jnp.float32),  # s2
                pltpu.VMEM((1, b, h3 + 2, w3 * c3), jnp.float32),       # s3
            ]),
        compiler_params=pltpu.CompilerParams(
            dimension_semantics=("arbitrary",)),
    )(*ins)


if __name__ == "__main__":
    key = jax.random.PRNGKey(0)
    ks = jax.random.split(key, 8)

    # Small but consistent config: input_nc=3, output_nc=1, ndf=8, n_layers=3
    input_nc, output_nc, ndf = 3, 1, 8
    B, H, W = 2, 32, 32

    def winit(k, shape, fan_in):
        return (jax.random.normal(k, shape, jnp.float32) /
                jnp.sqrt(jnp.float32(fan_in)))

    params = {
        # conv1: Conv2d(input_nc, ndf, k=4, s=2, p=1, bias=True)  (HWIO layout)
        "w1": winit(ks[0], (4, 4, input_nc, ndf), 4 * 4 * input_nc),
        "b1": jax.random.normal(ks[1], (ndf,), jnp.float32) * 0.01,
        # DownConvBlock 1: ndf -> 2*ndf, s=2
        "wb1": winit(ks[2], (4, 4, ndf, ndf * 2), 4 * 4 * ndf),
        "g1": jnp.ones((ndf * 2,), jnp.float32),
        "be1": jnp.zeros((ndf * 2,), jnp.float32),
        # DownConvBlock 2: 2*ndf -> 4*ndf, s=2
        "wb2": winit(ks[3], (4, 4, ndf * 2, ndf * 4), 4 * 4 * ndf * 2),
        "g2": jnp.ones((ndf * 4,), jnp.float32),
        "be2": jnp.zeros((ndf * 4,), jnp.float32),
        # DownConvBlock 3: 4*ndf -> 8*ndf, s=1
        "wb3": winit(ks[4], (4, 4, ndf * 4, ndf * 8), 4 * 4 * ndf * 4),
        "g3": jnp.ones((ndf * 8,), jnp.float32),
        "be3": jnp.zeros((ndf * 8,), jnp.float32),
        # classifier: Linear(8*ndf, output_nc, bias=False), PyTorch layout
        # [out_features, in_features]
        "wc": winit(ks[5], (output_nc, ndf * 8), ndf * 8),
    }

    x = jax.random.normal(ks[6], (B, input_nc, H, W), jnp.float32)

    prep = prepare_params(params, (H, W))          # one-time weight folding
    out = jax.jit(base_discriminator_forward)(x, prep)
    jax.block_until_ready(out)
    assert out.shape == (B, output_nc), out.shape
    assert bool(jnp.all(jnp.isfinite(out)))
    print("KERNEL_OK")
</pallas_src>

<mosaic_0001>
module attributes {stable_mosaic.version = 11 : i64} {
  func.func @_discriminator_kernel(%arg0: i32, %arg1: memref<8x2x5x96xf32, #tpu.memory_space<vmem>>, %arg2: memref<4x96x128xbf16, #tpu.memory_space<vmem>>, %arg3: memref<1x128xf32, #tpu.memory_space<vmem>>, %arg4: memref<4x128x128xbf16, #tpu.memory_space<vmem>>, %arg5: memref<1x128xf32, #tpu.memory_space<vmem>>, %arg6: memref<1x128xf32, #tpu.memory_space<vmem>>, %arg7: memref<128x16xf32, #tpu.memory_space<vmem>>, %arg8: memref<4x128x128xbf16, #tpu.memory_space<vmem>>, %arg9: memref<1x128xf32, #tpu.memory_space<vmem>>, %arg10: memref<1x128xf32, #tpu.memory_space<vmem>>, %arg11: memref<128x32xf32, #tpu.memory_space<vmem>>, %arg12: memref<4x128x192xbf16, #tpu.memory_space<vmem>>, %arg13: memref<1x192xf32, #tpu.memory_space<vmem>>, %arg14: memref<1x192xf32, #tpu.memory_space<vmem>>, %arg15: memref<192x64xf32, #tpu.memory_space<vmem>>, %arg16: memref<1x64xf32, #tpu.memory_space<vmem>>, %arg17: memref<2x1xf32, #tpu.memory_space<vmem>>, %arg18: memref<4x2x5x128xf32, #tpu.memory_space<vmem>>, %arg19: memref<2x2x5x128xf32, #tpu.memory_space<vmem>>, %arg20: memref<1x2x6x128xf32, #tpu.memory_space<vmem>>) attributes {dimension_semantics = [#tpu.dimension_semantics<arbitrary>], iteration_bounds = array<i64: 1>, scalar_prefetch = 0 : i64, scratch_operands = 3 : i64, tpu.core_type = #tpu.core_type<tc>, window_params = [{pipeline_mode = #tpu.pipeline_mode<synchronous>, transform_indices = @transform_0, window_bounds = array<i64: 8, 2, 5, 96>}, {pipeline_mode = #tpu.pipeline_mode<synchronous>, transform_indices = @transform_1, window_bounds = array<i64: 4, 96, 128>}, {pipeline_mode = #tpu.pipeline_mode<synchronous>, transform_indices = @transform_2, window_bounds = array<i64: 1, 128>}, {pipeline_mode = #tpu.pipeline_mode<synchronous>, transform_indices = @transform_3, window_bounds = array<i64: 4, 128, 128>}, {pipeline_mode = #tpu.pipeline_mode<synchronous>, transform_indices = @transform_4, window_bounds = array<i64: 1, 128>}, {pipeline_mode = #tpu.pipeline_mode<synchronous>, transform_indices = @transform_5, window_bounds = array<i64: 1, 128>}, {pipeline_mode = #tpu.pipeline_mode<synchronous>, transform_indices = @transform_6, window_bounds = array<i64: 128, 16>}, {pipeline_mode = #tpu.pipeline_mode<synchronous>, transform_indices = @transform_7, window_bounds = array<i64: 4, 128, 128>}, {pipeline_mode = #tpu.pipeline_mode<synchronous>, transform_indices = @transform_8, window_bounds = array<i64: 1, 128>}, {pipeline_mode = #tpu.pipeline_mode<synchronous>, transform_indices = @transform_9, window_bounds = array<i64: 1, 128>}, {pipeline_mode = #tpu.pipeline_mode<synchronous>, transform_indices = @transform_10, window_bounds = array<i64: 128, 32>}, {pipeline_mode = #tpu.pipeline_mode<synchronous>, transform_indices = @transform_11, window_bounds = array<i64: 4, 128, 192>}, {pipeline_mode = #tpu.pipeline_mode<synchronous>, transform_indices = @transform_12, window_bounds = array<i64: 1, 192>}, {pipeline_mode = #tpu.pipeline_mode<synchronous>, transform_indices = @transform_13, window_bounds = array<i64: 1, 192>}, {pipeline_mode = #tpu.pipeline_mode<synchronous>, transform_indices = @transform_14, window_bounds = array<i64: 192, 64>}, {pipeline_mode = #tpu.pipeline_mode<synchronous>, transform_indices = @transform_15, window_bounds = array<i64: 1, 64>}, {pipeline_mode = #tpu.pipeline_mode<synchronous>, transform_indices = @transform_16, window_bounds = array<i64: 2, 1>}]} {
    %cst = arith.constant 0.000000e+00 : f32
    %0 = vector.broadcast %cst : f32 to vector<4x2x5x128xf32>
    %c0 = arith.constant 0 : index
    %c0_0 = arith.constant 0 : index
    %c0_1 = arith.constant 0 : index
    %c0_2 = arith.constant 0 : index
    %1 = vector.load %arg18[%c0, %c0_0, %c0_1, %c0_2] : memref<4x2x5x128xf32, #tpu.memory_space<vmem>>, vector<4x2x5x128xf32>
    tpu.vector_store %arg18[%c0, %c0_0, %c0_1, %c0_2], %0 {strides = array<i32>} : memref<4x2x5x128xf32, #tpu.memory_space<vmem>>, vector<4x2x5x128xf32>,
    %cst_3 = arith.constant 0.000000e+00 : f32
    %2 = vector.broadcast %cst_3 : f32 to vector<2x2x5x128xf32>
    %c0_4 = arith.constant 0 : index
    %c0_5 = arith.constant 0 : index
    %c0_6 = arith.constant 0 : index
    %c0_7 = arith.constant 0 : index
    %3 = vector.load %arg19[%c0_4, %c0_5, %c0_6, %c0_7] : memref<2x2x5x128xf32, #tpu.memory_space<vmem>>, vector<2x2x5x128xf32>
    tpu.vector_store %arg19[%c0_4, %c0_5, %c0_6, %c0_7], %2 {strides = array<i32>} : memref<2x2x5x128xf32, #tpu.memory_space<vmem>>, vector<2x2x5x128xf32>,
    %cst_8 = arith.constant 0.000000e+00 : f32
    %4 = vector.broadcast %cst_8 : f32 to vector<1x2x6x128xf32>
    %c0_9 = arith.constant 0 : index
    %c0_10 = arith.constant 0 : index
    %c0_11 = arith.constant 0 : index
    %c0_12 = arith.constant 0 : index
    %5 = vector.load %arg20[%c0_9, %c0_10, %c0_11, %c0_12] : memref<1x2x6x128xf32, #tpu.memory_space<vmem>>, vector<1x2x6x128xf32>
    tpu.vector_store %arg20[%c0_9, %c0_10, %c0_11, %c0_12], %4 {strides = array<i32>} : memref<1x2x6x128xf32, #tpu.memory_space<vmem>>, vector<1x2x6x128xf32>,
    %c0_13 = arith.constant 0 : index
    %c0_14 = arith.constant 0 : index
    %c0_15 = arith.constant 0 : index
    %c0_16 = arith.constant 0 : index
    %6 = vector.load %arg1[%c0_13, %c0_14, %c0_15, %c0_16] : memref<8x2x5x96xf32, #tpu.memory_space<vmem>>, vector<1x1x4x96xf32>
    %7 = vector.shape_cast %6 : vector<1x1x4x96xf32> to vector<4x96xf32>
    %c0_17 = arith.constant 0 : index
    %c1 = arith.constant 1 : index
    %c0_18 = arith.constant 0 : index
    %c0_19 = arith.constant 0 : index
    %8 = vector.load %arg1[%c0_17, %c1, %c0_18, %c0_19] : memref<8x2x5x96xf32, #tpu.memory_space<vmem>>, vector<1x1x4x96xf32>
    %9 = vector.shape_cast %8 : vector<1x1x4x96xf32> to vector<4x96xf32>
    %10 = tpu.concatenate %7, %9 in 0 : vector<4x96xf32>, vector<4x96xf32> -> vector<8x96xf32>
    %11 = arith.truncf %10 : vector<8x96xf32> to vector<8x96xbf16>
    %c0_20 = arith.constant 0 : index
    %c0_21 = arith.constant 0 : index
    %c0_22 = arith.constant 0 : index
    %12 = vector.load %arg2[%c0_20, %c0_21, %c0_22] : memref<4x96x128xbf16, #tpu.memory_space<vmem>>, vector<1x96x128xbf16>
    %13 = vector.shape_cast %12 : vector<1x96x128xbf16> to vector<96x128xbf16>
    %cst_23 = arith.constant dense<0.000000e+00> : vector<8x128xf32>
    %14 = tpu.matmul %11, %13, %cst_23 {dimension_numbers = #tpu.dot_dimension_numbers<[1], [0], [0], [1], [0, 0, 1, 1], [], []>} : vector<8x96xbf16>, vector<96x128xbf16>, vector<8x128xf32> -> vector<8x128xf32>
    %c1_24 = arith.constant 1 : index
    %c0_25 = arith.constant 0 : index
    %c0_26 = arith.constant 0 : index
    %c0_27 = arith.constant 0 : index
    %15 = vector.load %arg1[%c1_24, %c0_25, %c0_26, %c0_27] : memref<8x2x5x96xf32, #tpu.memory_space<vmem>>, vector<1x1x4x96xf32>
    %16 = vector.shape_cast %15 : vector<1x1x4x96xf32> to vector<4x96xf32>
    %c1_28 = arith.constant 1 : index
    %c1_29 = arith.constant 1 : index
    %c0_30 = arith.constant 0 : index
    %c0_31 = arith.constant 0 : index
    %17 = vector.load %arg1[%c1_28, %c1_29, %c0_30, %c0_31] : memref<8x2x5x96xf32, #tpu.memory_space<vmem>>, vector<1x1x4x96xf32>
    %18 = vector.shape_cast %17 : vector<1x1x4x96xf32> to vector<4x96xf32>
    %19 = tpu.concatenate %16, %18 in 0 : vector<4x96xf32>, vector<4x96xf32> -> vector<8x96xf32>
    %20 = arith.truncf %19 : vector<8x96xf32> to vector<8x96xbf16>
    %c1_32 = arith.constant 1 : index
    %c0_33 = arith.constant 0 : index
    %c0_34 = arith.constant 0 : index
    %21 = vector.load %arg2[%c1_32, %c0_33, %c0_34] : memref<4x96x128xbf16, #tpu.memory_space<vmem>>, vector<1x96x128xbf16>
    %22 = vector.shape_cast %21 : vector<1x96x128xbf16> to vector<96x128xbf16>
    %cst_35 = arith.constant dense<0.000000e+00> : vector<8x128xf32>
    %23 = tpu.matmul %20, %22, %cst_35 {dimension_numbers = #tpu.dot_dimension_numbers<[1], [0], [0], [1], [0, 0, 1, 1], [], []>} : vector<8x96xbf16>, vector<96x128xbf16>, vector<8x128xf32> -> vector<8x128xf32>
    %24 = arith.addf %14, %23 : vector<8x128xf32>
    %c2 = arith.constant 2 : index
    %c0_36 = arith.constant 0 : index
    %c0_37 = arith.constant 0 : index
    %c0_38 = arith.constant 0 : index
    %25 = vector.load %arg1[%c2, %c0_36, %c0_37, %c0_38] : memref<8x2x5x96xf32, #tpu.memory_space<vmem>>, vector<1x1x4x96xf32>
    %26 = vector.shape_cast %25 : vector<1x1x4x96xf32> to vector<4x96xf32>
    %c2_39 = arith.constant 2 : index
    %c1_40 = arith.constant 1 : index
    %c0_41 = arith.constant 0 : index
    %c0_42 = arith.constant 0 : index
    %27 = vector.load %arg1[%c2_39, %c1_40, %c0_41, %c0_42] : memref<8x2x5x96xf32, #tpu.memory_space<vmem>>, vector<1x1x4x96xf32>
    %28 = vector.shape_cast %27 : vector<1x1x4x96xf32> to vector<4x96xf32>
    %29 = tpu.concatenate %26, %28 in 0 : vector<4x96xf32>, vector<4x96xf32> -> vector<8x96xf32>
    %30 = arith.truncf %29 : vector<8x96xf32> to vector<8x96xbf16>
    %c2_43 = arith.constant 2 : index
    %c0_44 = arith.constant 0 : index
    %c0_45 = arith.constant 0 : index
    %31 = vector.load %arg2[%c2_43, %c0_44, %c0_45] : memref<4x96x128xbf16, #tpu.memory_space<vmem>>, vector<1x96x128xbf16>
    %32 = vector.shape_cast %31 : vector<1x96x128xbf16> to vector<96x128xbf16>
    %cst_46 = arith.constant dense<0.000000e+00> : vector<8x128xf32>
    %33 = tpu.matmul %30, %32, %cst_46 {dimension_numbers = #tpu.dot_dimension_numbers<[1], [0], [0], [1], [0, 0, 1, 1], [], []>} : vector<8x96xbf16>, vector<96x128xbf16>, vector<8x128xf32> -> vector<8x128xf32>
    %34 = arith.addf %24, %33 : vector<8x128xf32>
    %c3 = arith.constant 3 : index
    %c0_47 = arith.constant 0 : index
    %c0_48 = arith.constant 0 : index
    %c0_49 = arith.constant 0 : index
    %35 = vector.load %arg1[%c3, %c0_47, %c0_48, %c0_49] : memref<8x2x5x96xf32, #tpu.memory_space<vmem>>, vector<1x1x4x96xf32>
    %36 = vector.shape_cast %35 : vector<1x1x4x96xf32> to vector<4x96xf32>
    %c3_50 = arith.constant 3 : index
    %c1_51 = arith.constant 1 : index
    %c0_52 = arith.constant 0 : index
    %c0_53 = arith.constant 0 : index
    %37 = vector.load %arg1[%c3_50, %c1_51, %c0_52, %c0_53] : memref<8x2x5x96xf32, #tpu.memory_space<vmem>>, vector<1x1x4x96xf32>
    %38 = vector.shape_cast %37 : vector<1x1x4x96xf32> to vector<4x96xf32>
    %39 = tpu.concatenate %36, %38 in 0 : vector<4x96xf32>, vector<4x96xf32> -> vector<8x96xf32>
    %40 = arith.truncf %39 : vector<8x96xf32> to vector<8x96xbf16>
    %c3_54 = arith.constant 3 : index
    %c0_55 = arith.constant 0 : index
    %c0_56 = arith.constant 0 : index
    %41 = vector.load %arg2[%c3_54, %c0_55, %c0_56] : memref<4x96x128xbf16, #tpu.memory_space<vmem>>, vector<1x96x128xbf16>
    %42 = vector.shape_cast %41 : vector<1x96x128xbf16> to vector<96x128xbf16>
    %cst_57 = arith.constant dense<0.000000e+00> : vector<8x128xf32>
    %43 = tpu.matmul %40, %42, %cst_57 {dimension_numbers = #tpu.dot_dimension_numbers<[1], [0], [0], [1], [0, 0, 1, 1], [], []>} : vector<8x96xbf16>, vector<96x128xbf16>, vector<8x128xf32> -> vector<8x128xf32>
    %44 = arith.addf %34, %43 : vector<8x128xf32>
    %c2_58 = arith.constant 2 : index
    %c0_59 = arith.constant 0 : index
    %c0_60 = arith.constant 0 : index
    %c0_61 = arith.constant 0 : index
    %45 = vector.load %arg1[%c2_58, %c0_59, %c0_60, %c0_61] : memref<8x2x5x96xf32, #tpu.memory_space<vmem>>, vector<1x1x4x96xf32>
    %46 = vector.shape_cast %45 : vector<1x1x4x96xf32> to vector<4x96xf32>
    %c2_62 = arith.constant 2 : index
    %c1_63 = arith.constant 1 : index
    %c0_64 = arith.constant 0 : index
    %c0_65 = arith.constant 0 : index
    %47 = vector.load %arg1[%c2_62, %c1_63, %c0_64, %c0_65] : memref<8x2x5x96xf32, #tpu.memory_space<vmem>>, vector<1x1x4x96xf32>
    %48 = vector.shape_cast %47 : vector<1x1x4x96xf32> to vector<4x96xf32>
    %49 = tpu.concatenate %46, %48 in 0 : vector<4x96xf32>, vector<4x96xf32> -> vector<8x96xf32>
    %50 = arith.truncf %49 : vector<8x96xf32> to vector<8x96xbf16>
    %c0_66 = arith.constant 0 : index
    %c0_67 = arith.constant 0 : index
    %c0_68 = arith.constant 0 : index
    %51 = vector.load %arg2[%c0_66, %c0_67, %c0_68] : memref<4x96x128xbf16, #tpu.memory_space<vmem>>, vector<1x96x128xbf16>
    %52 = vector.shape_cast %51 : vector<1x96x128xbf16> to vector<96x128xbf16>
    %cst_69 = arith.constant dense<0.000000e+00> : vector<8x128xf32>
    %53 = tpu.matmul %50, %52, %cst_69 {dimension_numbers = #tpu.dot_dimension_numbers<[1], [0], [0], [1], [0, 0, 1, 1], [], []>} : vector<8x96xbf16>, vector<96x128xbf16>, vector<8x128xf32> -> vector<8x128xf32>
    %c3_70 = arith.constant 3 : index
    %c0_71 = arith.constant 0 : index
    %c0_72 = arith.constant 0 : index
    %c0_73 = arith.constant 0 : index
    %54 = vector.load %arg1[%c3_70, %c0_71, %c0_72, %c0_73] : memref<8x2x5x96xf32, #tpu.memory_space<vmem>>, vector<1x1x4x96xf32>
    %55 = vector.shape_cast %54 : vector<1x1x4x96xf32> to vector<4x96xf32>
    %c3_74 = arith.constant 3 : index
    %c1_75 = arith.constant 1 : index
    %c0_76 = arith.constant 0 : index
    %c0_77 = arith.constant 0 : index
    %56 = vector.load %arg1[%c3_74, %c1_75, %c0_76, %c0_77] : memref<8x2x5x96xf32, #tpu.memory_space<vmem>>, vector<1x1x4x96xf32>
    %57 = vector.shape_cast %56 : vector<1x1x4x96xf32> to vector<4x96xf32>
    %58 = tpu.concatenate %55, %57 in 0 : vector<4x96xf32>, vector<4x96xf32> -> vector<8x96xf32>
    %59 = arith.truncf %58 : vector<8x96xf32> to vector<8x96xbf16>
    %c1_78 = arith.constant 1 : index
    %c0_79 = arith.constant 0 : index
    %c0_80 = arith.constant 0 : index
    %60 = vector.load %arg2[%c1_78, %c0_79, %c0_80] : memref<4x96x128xbf16, #tpu.memory_space<vmem>>, vector<1x96x128xbf16>
    %61 = vector.shape_cast %60 : vector<1x96x128xbf16> to vector<96x128xbf16>
    %cst_81 = arith.constant dense<0.000000e+00> : vector<8x128xf32>
    %62 = tpu.matmul %59, %61, %cst_81 {dimension_numbers = #tpu.dot_dimension_numbers<[1], [0], [0], [1], [0, 0, 1, 1], [], []>} : vector<8x96xbf16>, vector<96x128xbf16>, vector<8x128xf32> -> vector<8x128xf32>
    %63 = arith.addf %53, %62 : vector<8x128xf32>
    %c4 = arith.constant 4 : index
    %c0_82 = arith.constant 0 : index
    %c0_83 = arith.constant 0 : index
    %c0_84 = arith.constant 0 : index
    %64 = vector.load %arg1[%c4, %c0_82, %c0_83, %c0_84] : memref<8x2x5x96xf32, #tpu.memory_space<vmem>>, vector<1x1x4x96xf32>
    %65 = vector.shape_cast %64 : vector<1x1x4x96xf32> to vector<4x96xf32>
    %c4_85 = arith.constant 4 : index
    %c1_86 = arith.constant 1 : index
    %c0_87 = arith.constant 0 : index
    %c0_88 = arith.constant 0 : index
    %66 = vector.load %arg1[%c4_85, %c1_86, %c0_87, %c0_88] : memref<8x2x5x96xf32, #tpu.memory_space<vmem>>, vector<1x1x4x96xf32>
    %67 = vector.shape_cast %66 : vector<1x1x4x96xf32> to vector<4x96xf32>
    %68 = tpu.concatenate %65, %67 in 0 : vector<4x96xf32>, vector<4x96xf32> -> vector<8x96xf32>
    %69 = arith.truncf %68 : vector<8x96xf32> to vector<8x96xbf16>
    %c2_89 = arith.constant 2 : index
    %c0_90 = arith.constant 0 : index
    %c0_91 = arith.constant 0 : index
    %70 = vector.load %arg2[%c2_89, %c0_90, %c0_91] : memref<4x96x128xbf16, #tpu.memory_space<vmem>>, vector<1x96x128xbf16>
    %71 = vector.shape_cast %70 : vector<1x96x128xbf16> to vector<96x128xbf16>
    %cst_92 = arith.constant dense<0.000000e+00> : vector<8x128xf32>
    %72 = tpu.matmul %69, %71, %cst_92 {dimension_numbers = #tpu.dot_dimension_numbers<[1], [0], [0], [1], [0, 0, 1, 1], [], []>} : vector<8x96xbf16>, vector<96x128xbf16>, vector<8x128xf32> -> vector<8x128xf32>
    %73 = arith.addf %63, %72 : vector<8x128xf32>
    %c5 = arith.constant 5 : index
    %c0_93 = arith.constant 0 : index
    %c0_94 = arith.constant 0 : index
    %c0_95 = arith.constant 0 : index
    %74 = vector.load %arg1[%c5, %c0_93, %c0_94, %c0_95] : memref<8x2x5x96xf32, #tpu.memory_space<vmem>>, vector<1x1x4x96xf32>
    %75 = vector.shape_cast %74 : vector<1x1x4x96xf32> to vector<4x96xf32>
    %c5_96 = arith.constant 5 : index
    %c1_97 = arith.constant 1 : index
    %c0_98 = arith.constant 0 : index
    %c0_99 = arith.constant 0 : index
    %76 = vector.load %arg1[%c5_96, %c1_97, %c0_98, %c0_99] : memref<8x2x5x96xf32, #tpu.memory_space<vmem>>, vector<1x1x4x96xf32>
    %77 = vector.shape_cast %76 : vector<1x1x4x96xf32> to vector<4x96xf32>
    %78 = tpu.concatenate %75, %77 in 0 : vector<4x96xf32>, vector<4x96xf32> -> vector<8x96xf32>
    %79 = arith.truncf %78 : vector<8x96xf32> to vector<8x96xbf16>
    %c3_100 = arith.constant 3 : index
    %c0_101 = arith.constant 0 : index
    %c0_102 = arith.constant 0 : index
    %80 = vector.load %arg2[%c3_100, %c0_101, %c0_102] : memref<4x96x128xbf16, #tpu.memory_space<vmem>>, vector<1x96x128xbf16>
    %81 = vector.shape_cast %80 : vector<1x96x128xbf16> to vector<96x128xbf16>
    %cst_103 = arith.constant dense<0.000000e+00> : vector<8x128xf32>
    %82 = tpu.matmul %79, %81, %cst_103 {dimension_numbers = #tpu.dot_dimension_numbers<[1], [0], [0], [1], [0, 0, 1, 1], [], []>} : vector<8x96xbf16>, vector<96x128xbf16>, vector<8x128xf32> -> vector<8x128xf32>
    %83 = arith.addf %73, %82 : vector<8x128xf32>
    %c4_104 = arith.constant 4 : index
    %c0_105 = arith.constant 0 : index
    %c0_106 = arith.constant 0 : index
    %c0_107 = arith.constant 0 : index
    %84 = vector.load %arg1[%c4_104, %c0_105, %c0_106, %c0_107] : memref<8x2x5x96xf32, #tpu.memory_space<vmem>>, vector<1x1x4x96xf32>
    %85 = vector.shape_cast %84 : vector<1x1x4x96xf32> to vector<4x96xf32>
    %c4_108 = arith.constant 4 : index
    %c1_109 = arith.constant 1 : index
    %c0_110 = arith.constant 0 : index
    %c0_111 = arith.constant 0 : index
    %86 = vector.load %arg1[%c4_108, %c1_109, %c0_110, %c0_111] : memref<8x2x5x96xf32, #tpu.memory_space<vmem>>, vector<1x1x4x96xf32>
    %87 = vector.shape_cast %86 : vector<1x1x4x96xf32> to vector<4x96xf32>
    %88 = tpu.concatenate %85, %87 in 0 : vector<4x96xf32>, vector<4x96xf32> -> vector<8x96xf32>
    %89 = arith.truncf %88 : vector<8x96xf32> to vector<8x96xbf16>
    %c0_112 = arith.constant 0 : index
    %c0_113 = arith.constant 0 : index
    %c0_114 = arith.constant 0 : index
    %90 = vector.load %arg2[%c0_112, %c0_113, %c0_114] : memref<4x96x128xbf16, #tpu.memory_space<vmem>>, vector<1x96x128xbf16>
    %91 = vector.shape_cast %90 : vector<1x96x128xbf16> to vector<96x128xbf16>
    %cst_115 = arith.constant dense<0.000000e+00> : vector<8x128xf32>
    %92 = tpu.matmul %89, %91, %cst_115 {dimension_numbers = #tpu.dot_dimension_numbers<[1], [0], [0], [1], [0, 0, 1, 1], [], []>} : vector<8x96xbf16>, vector<96x128xbf16>, vector<8x128xf32> -> vector<8x128xf32>
    %c5_116 = arith.constant 5 : index
    %c0_117 = arith.constant 0 : index
    %c0_118 = arith.constant 0 : index
    %c0_119 = arith.constant 0 : index
    %93 = vector.load %arg1[%c5_116, %c0_117, %c0_118, %c0_119] : memref<8x2x5x96xf32, #tpu.memory_space<vmem>>, vector<1x1x4x96xf32>
    %94 = vector.shape_cast %93 : vector<1x1x4x96xf32> to vector<4x96xf32>
    %c5_120 = arith.constant 5 : index
    %c1_121 = arith.constant 1 : index
    %c0_122 = arith.constant 0 : index
    %c0_123 = arith.constant 0 : index
    %95 = vector.load %arg1[%c5_120, %c1_121, %c0_122, %c0_123] : memref<8x2x5x96xf32, #tpu.memory_space<vmem>>, vector<1x1x4x96xf32>
    %96 = vector.shape_cast %95 : vector<1x1x4x96xf32> to vector<4x96xf32>
    %97 = tpu.concatenate %94, %96 in 0 : vector<4x96xf32>, vector<4x96xf32> -> vector<8x96xf32>
    %98 = arith.truncf %97 : vector<8x96xf32> to vector<8x96xbf16>
    %c1_124 = arith.constant 1 : index
    %c0_125 = arith.constant 0 : index
    %c0_126 = arith.constant 0 : index
    %99 = vector.load %arg2[%c1_124, %c0_125, %c0_126] : memref<4x96x128xbf16, #tpu.memory_space<vmem>>, vector<1x96x128xbf16>
    %100 = vector.shape_cast %99 : vector<1x96x128xbf16> to vector<96x128xbf16>
    %cst_127 = arith.constant dense<0.000000e+00> : vector<8x128xf32>
    %101 = tpu.matmul %98, %100, %cst_127 {dimension_numbers = #tpu.dot_dimension_numbers<[1], [0], [0], [1], [0, 0, 1, 1], [], []>} : vector<8x96xbf16>, vector<96x128xbf16>, vector<8x128xf32> -> vector<8x128xf32>
    %102 = arith.addf %92, %101 : vector<8x128xf32>
    %c6 = arith.constant 6 : index
    %c0_128 = arith.constant 0 : index
    %c0_129 = arith.constant 0 : index
    %c0_130 = arith.constant 0 : index
    %103 = vector.load %arg1[%c6, %c0_128, %c0_129, %c0_130] : memref<8x2x5x96xf32, #tpu.memory_space<vmem>>, vector<1x1x4x96xf32>
    %104 = vector.shape_cast %103 : vector<1x1x4x96xf32> to vector<4x96xf32>
    %c6_131 = arith.constant 6 : index
    %c1_132 = arith.constant 1 : index
    %c0_133 = arith.constant 0 : index
    %c0_134 = arith.constant 0 : index
    %105 = vector.load %arg1[%c6_131, %c1_132, %c0_133, %c0_134] : memref<8x2x5x96xf32, #tpu.memory_space<vmem>>, vector<1x1x4x96xf32>
    %106 = vector.shape_cast %105 : vector<1x1x4x96xf32> to vector<4x96xf32>
    %107 = tpu.concatenate %104, %106 in 0 : vector<4x96xf32>, vector<4x96xf32> -> vector<8x96xf32>
    %108 = arith.truncf %107 : vector<8x96xf32> to vector<8x96xbf16>
    %c2_135 = arith.constant 2 : index
    %c0_136 = arith.constant 0 : index
    %c0_137 = arith.constant 0 : index
    %109 = vector.load %arg2[%c2_135, %c0_136, %c0_137] : memref<4x96x128xbf16, #tpu.memory_space<vmem>>, vector<1x96x128xbf16>
    %110 = vector.shape_cast %109 : vector<1x96x128xbf16> to vector<96x128xbf16>
    %cst_138 = arith.constant dense<0.000000e+00> : vector<8x128xf32>
    %111 = tpu.matmul %108, %110, %cst_138 {dimension_numbers = #tpu.dot_dimension_numbers<[1], [0], [0], [1], [0, 0, 1, 1], [], []>} : vector<8x96xbf16>, vector<96x128xbf16>, vector<8x128xf32> -> vector<8x128xf32>
    %112 = arith.addf %102, %111 : vector<8x128xf32>
    %c7 = arith.constant 7 : index
    %c0_139 = arith.constant 0 : index
    %c0_140 = arith.constant 0 : index
    %c0_141 = arith.constant 0 : index
    %113 = vector.load %arg1[%c7, %c0_139, %c0_140, %c0_141] : memref<8x2x5x96xf32, #tpu.memory_space<vmem>>, vector<1x1x4x96xf32>
    %114 = vector.shape_cast %113 : vector<1x1x4x96xf32> to vector<4x96xf32>
    %c7_142 = arith.constant 7 : index
    %c1_143 = arith.constant 1 : index
    %c0_144 = arith.constant 0 : index
    %c0_145 = arith.constant 0 : index
    %115 = vector.load %arg1[%c7_142, %c1_143, %c0_144, %c0_145] : memref<8x2x5x96xf32, #tpu.memory_space<vmem>>, vector<1x1x4x96xf32>
    %116 = vector.shape_cast %115 : vector<1x1x4x96xf32> to vector<4x96xf32>
    %117 = tpu.concatenate %114, %116 in 0 : vector<4x96xf32>, vector<4x96xf32> -> vector<8x96xf32>
    %118 = arith.truncf %117 : vector<8x96xf32> to vector<8x96xbf16>
    %c3_146 = arith.constant 3 : index
    %c0_147 = arith.constant 0 : index
    %c0_148 = arith.constant 0 : index
    %119 = vector.load %arg2[%c3_146, %c0_147, %c0_148] : memref<4x96x128xbf16, #tpu.memory_space<vmem>>, vector<1x96x128xbf16>
    %120 = vector.shape_cast %119 : vector<1x96x128xbf16> to vector<96x128xbf16>
    %cst_149 = arith.constant dense<0.000000e+00> : vector<8x128xf32>
    %121 = tpu.matmul %118, %120, %cst_149 {dimension_numbers = #tpu.dot_dimension_numbers<[1], [0], [0], [1], [0, 0, 1, 1], [], []>} : vector<8x96xbf16>, vector<96x128xbf16>, vector<8x128xf32> -> vector<8x128xf32>
    %122 = arith.addf %112, %121 : vector<8x128xf32>
    %c6_150 = arith.constant 6 : index
    %c0_151 = arith.constant 0 : index
    %c0_152 = arith.constant 0 : index
    %c0_153 = arith.constant 0 : index
    %123 = vector.load %arg1[%c6_150, %c0_151, %c0_152, %c0_153] : memref<8x2x5x96xf32, #tpu.memory_space<vmem>>, vector<1x1x4x96xf32>
    %124 = vector.shape_cast %123 : vector<1x1x4x96xf32> to vector<4x96xf32>
    %c6_154 = arith.constant 6 : index
    %c1_155 = arith.constant 1 : index
    %c0_156 = arith.constant 0 : index
    %c0_157 = arith.constant 0 : index
    %125 = vector.load %arg1[%c6_154, %c1_155, %c0_156, %c0_157] : memref<8x2x5x96xf32, #tpu.memory_space<vmem>>, vector<1x1x4x96xf32>
    %126 = vector.shape_cast %125 : vector<1x1x4x96xf32> to vector<4x96xf32>
    %127 = tpu.concatenate %124, %126 in 0 : vector<4x96xf32>, vector<4x96xf32> -> vector<8x96xf32>
    %128 = arith.truncf %127 : vector<8x96xf32> to vector<8x96xbf16>
    %c0_158 = arith.constant 0 : index
    %c0_159 = arith.constant 0 : index
    %c0_160 = arith.constant 0 : index
    %129 = vector.load %arg2[%c0_158, %c0_159, %c0_160] : memref<4x96x128xbf16, #tpu.memory_space<vmem>>, vector<1x96x128xbf16>
    %130 = vector.shape_cast %129 : vector<1x96x128xbf16> to vector<96x128xbf16>
    %cst_161 = arith.constant dense<0.000000e+00> : vector<8x128xf32>
    %131 = tpu.matmul %128, %130, %cst_161 {dimension_numbers = #tpu.dot_dimension_numbers<[1], [0], [0], [1], [0, 0, 1, 1], [], []>} : vector<8x96xbf16>, vector<96x128xbf16>, vector<8x128xf32> -> vector<8x128xf32>
    %c7_162 = arith.constant 7 : index
    %c0_163 = arith.constant 0 : index
    %c0_164 = arith.constant 0 : index
    %c0_165 = arith.constant 0 : index
    %132 = vector.load %arg1[%c7_162, %c0_163, %c0_164, %c0_165] : memref<8x2x5x96xf32, #tpu.memory_space<vmem>>, vector<1x1x4x96xf32>
    %133 = vector.shape_cast %132 : vector<1x1x4x96xf32> to vector<4x96xf32>
    %c7_166 = arith.constant 7 : index
    %c1_167 = arith.constant 1 : index
    %c0_168 = arith.constant 0 : index
    %c0_169 = arith.constant 0 : index
    %134 = vector.load %arg1[%c7_166, %c1_167, %c0_168, %c0_169] : memref<8x2x5x96xf32, #tpu.memory_space<vmem>>, vector<1x1x4x96xf32>
    %135 = vector.shape_cast %134 : vector<1x1x4x96xf32> to vector<4x96xf32>
    %136 = tpu.concatenate %133, %135 in 0 : vector<4x96xf32>, vector<4x96xf32> -> vector<8x96xf32>
    %137 = arith.truncf %136 : vector<8x96xf32> to vector<8x96xbf16>
    %c1_170 = arith.constant 1 : index
    %c0_171 = arith.constant 0 : index
    %c0_172 = arith.constant 0 : index
    %138 = vector.load %arg2[%c1_170, %c0_171, %c0_172] : memref<4x96x128xbf16, #tpu.memory_space<vmem>>, vector<1x96x128xbf16>
    %139 = vector.shape_cast %138 : vector<1x96x128xbf16> to vector<96x128xbf16>
    %cst_173 = arith.constant dense<0.000000e+00> : vector<8x128xf32>
    %140 = tpu.matmul %137, %139, %cst_173 {dimension_numbers = #tpu.dot_dimension_numbers<[1], [0], [0], [1], [0, 0, 1, 1], [], []>} : vector<8x96xbf16>, vector<96x128xbf16>, vector<8x128xf32> -> vector<8x128xf32>
    %141 = arith.addf %131, %140 : vector<8x128xf32>
    %c0_174 = arith.constant 0 : index
    %c0_175 = arith.constant 0 : index
    %c1_176 = arith.constant 1 : index
    %c0_177 = arith.constant 0 : index
    %142 = vector.load %arg1[%c0_174, %c0_175, %c1_176, %c0_177] : memref<8x2x5x96xf32, #tpu.memory_space<vmem>>, vector<1x1x4x96xf32>
    %143 = vector.shape_cast %142 : vector<1x1x4x96xf32> to vector<4x96xf32>
    %c0_178 = arith.constant 0 : index
    %c1_179 = arith.constant 1 : index
    %c1_180 = arith.constant 1 : index
    %c0_181 = arith.constant 0 : index
    %144 = vector.load %arg1[%c0_178, %c1_179, %c1_180, %c0_181] : memref<8x2x5x96xf32, #tpu.memory_space<vmem>>, vector<1x1x4x96xf32>
    %145 = vector.shape_cast %144 : vector<1x1x4x96xf32> to vector<4x96xf32>
    %146 = tpu.concatenate %143, %145 in 0 : vector<4x96xf32>, vector<4x96xf32> -> vector<8x96xf32>
    %147 = arith.truncf %146 : vector<8x96xf32> to vector<8x96xbf16>
    %c2_182 = arith.constant 2 : index
    %c0_183 = arith.constant 0 : index
    %c0_184 = arith.constant 0 : index
    %148 = vector.load %arg2[%c2_182, %c0_183, %c0_184] : memref<4x96x128xbf16, #tpu.memory_space<vmem>>, vector<1x96x128xbf16>
    %149 = vector.shape_cast %148 : vector<1x96x128xbf16> to vector<96x128xbf16>
    %cst_185 = arith.constant dense<0.000000e+00> : vector<8x128xf32>
    %150 = tpu.matmul %147, %149, %cst_185 {dimension_numbers = #tpu.dot_dimension_numbers<[1], [0], [0], [1], [0, 0, 1, 1], [], []>} : vector<8x96xbf16>, vector<96x128xbf16>, vector<8x128xf32> -> vector<8x128xf32>
    %151 = arith.addf %141, %150 : vector<8x128xf32>
    %c1_186 = arith.constant 1 : index
    %c0_187 = arith.constant 0 : index
    %c1_188 = arith.constant 1 : index
    %c0_189 = arith.constant 0 : index
    %152 = vector.load %arg1[%c1_186, %c0_187, %c1_188, %c0_189] : memref<8x2x5x96xf32, #tpu.memory_space<vmem>>, vector<1x1x4x96xf32>
    %153 = vector.shape_cast %152 : vector<1x1x4x96xf32> to vector<4x96xf32>
    %c1_190 = arith.constant 1 : index
    %c1_191 = arith.constant 1 : index
    %c1_192 = arith.constant 1 : index
    %c0_193 = arith.constant 0 : index
    %154 = vector.load %arg1[%c1_190, %c1_191, %c1_192, %c0_193] : memref<8x2x5x96xf32, #tpu.memory_space<vmem>>, vector<1x1x4x96xf32>
    %155 = vector.shape_cast %154 : vector<1x1x4x96xf32> to vector<4x96xf32>
    %156 = tpu.concatenate %153, %155 in 0 : vector<4x96xf32>, vector<4x96xf32> -> vector<8x96xf32>
    %157 = arith.truncf %156 : vector<8x96xf32> to vector<8x96xbf16>
    %c3_194 = arith.constant 3 : index
    %c0_195 = arith.constant 0 : index
    %c0_196 = arith.constant 0 : index
    %158 = vector.load %arg2[%c3_194, %c0_195, %c0_196] : memref<4x96x128xbf16, #tpu.memory_space<vmem>>, vector<1x96x128xbf16>
    %159 = vector.shape_cast %158 : vector<1x96x128xbf16> to vector<96x128xbf16>
    %cst_197 = arith.constant dense<0.000000e+00> : vector<8x128xf32>
    %160 = tpu.matmul %157, %159, %cst_197 {dimension_numbers = #tpu.dot_dimension_numbers<[1], [0], [0], [1], [0, 0, 1, 1], [], []>} : vector<8x96xbf16>, vector<96x128xbf16>, vector<8x128xf32> -> vector<8x128xf32>
    %161 = arith.addf %151, %160 : vector<8x128xf32>
    %c0_198 = arith.constant 0 : index
    %c0_199 = arith.constant 0 : index
    %162 = vector.load %arg3[%c0_198, %c0_199] : memref<1x128xf32, #tpu.memory_space<vmem>>, vector<1x128xf32>
    %163 = vector.broadcast %162 : vector<1x128xf32> to vector<8x128xf32>
    %164 = arith.addf %44, %163 : vector<8x128xf32>
    %cst_200 = arith.constant 0.000000e+00 : f32
    %165 = vector.broadcast %cst_200 : f32 to vector<8x128xf32>
    %166 = arith.cmpf oge, %164, %165 : vector<8x128xf32>
    %cst_201 = arith.constant 2.000000e-01 : f32
    %167 = vector.broadcast %cst_201 : f32 to vector<8x128xf32>
    %168 = arith.mulf %167, %164 : vector<8x128xf32>
    %169 = arith.select %166, %164, %168 : vector<8x128xi1>, vector<8x128xf32>
    %170 = vector.broadcast %162 : vector<1x128xf32> to vector<8x128xf32>
    %171 = arith.addf %83, %170 : vector<8x128xf32>
    %cst_202 = arith.constant 0.000000e+00 : f32
    %172 = vector.broadcast %cst_202 : f32 to vector<8x128xf32>
    %173 = arith.cmpf oge, %171, %172 : vector<8x128xf32>
    %cst_203 = arith.constant 2.000000e-01 : f32
    %174 = vector.broadcast %cst_203 : f32 to vector<8x128xf32>
    %175 = arith.mulf %174, %171 : vector<8x128xf32>
    %176 = arith.select %173, %171, %175 : vector<8x128xi1>, vector<8x128xf32>
    %177 = vector.broadcast %162 : vector<1x128xf32> to vector<8x128xf32>
    %178 = arith.addf %122, %177 : vector<8x128xf32>
    %cst_204 = arith.constant 0.000000e+00 : f32
    %179 = vector.broadcast %cst_204 : f32 to vector<8x128xf32>
    %180 = arith.cmpf oge, %178, %179 : vector<8x128xf32>
    %cst_205 = arith.constant 2.000000e-01 : f32
    %181 = vector.broadcast %cst_205 : f32 to vector<8x128xf32>
    %182 = arith.mulf %181, %178 : vector<8x128xf32>
    %183 = arith.select %180, %178, %182 : vector<8x128xi1>, vector<8x128xf32>
    %184 = vector.broadcast %162 : vector<1x128xf32> to vector<8x128xf32>
    %185 = arith.addf %161, %184 : vector<8x128xf32>
    %cst_206 = arith.constant 0.000000e+00 : f32
    %186 = vector.broadcast %cst_206 : f32 to vector<8x128xf32>
    %187 = arith.cmpf oge, %185, %186 : vector<8x128xf32>
    %cst_207 = arith.constant 2.000000e-01 : f32
    %188 = vector.broadcast %cst_207 : f32 to vector<8x128xf32>
    %189 = arith.mulf %188, %185 : vector<8x128xf32>
    %190 = arith.select %187, %185, %189 : vector<8x128xi1>, vector<8x128xf32>
    %191 = vector.extract_strided_slice %169 {offsets = [0, 0], sizes = [4, 128], strides = [1, 1]} : vector<8x128xf32> to vector<4x128xf32>
    %c1_208 = arith.constant 1 : index
    %c0_209 = arith.constant 0 : index
    %c0_210 = arith.constant 0 : index
    %c0_211 = arith.constant 0 : index
    %192 = vector.load %arg18[%c1_208, %c0_209, %c0_210, %c0_211] : memref<4x2x5x128xf32, #tpu.memory_space<vmem>>, vector<1x1x4x128xf32>
    %193 = vector.shape_cast %192 : vector<1x1x4x128xf32> to vector<4x128xf32>
    %194 = vector.shape_cast %191 : vector<4x128xf32> to vector<1x1x4x128xf32>
    tpu.vector_store %arg18[%c1_208, %c0_209, %c0_210, %c0_211], %194 {strides = array<i32>} : memref<4x2x5x128xf32, #tpu.memory_space<vmem>>, vector<1x1x4x128xf32>,
    %195 = vector.extract_strided_slice %169 {offsets = [4, 0], sizes = [4, 128], strides = [1, 1]} : vector<8x128xf32> to vector<4x128xf32>
    %c1_212 = arith.constant 1 : index
    %c1_213 = arith.constant 1 : index
    %c0_214 = arith.constant 0 : index
    %c0_215 = arith.constant 0 : index
    %196 = vector.load %arg18[%c1_212, %c1_213, %c0_214, %c0_215] : memref<4x2x5x128xf32, #tpu.memory_space<vmem>>, vector<1x1x4x128xf32>
    %197 = vector.shape_cast %196 : vector<1x1x4x128xf32> to vector<4x128xf32>
    %198 = vector.shape_cast %195 : vector<4x128xf32> to vector<1x1x4x128xf32>
    tpu.vector_store %arg18[%c1_212, %c1_213, %c0_214, %c0_215], %198 {strides = array<i32>} : memref<4x2x5x128xf32, #tpu.memory_space<vmem>>, vector<1x1x4x128xf32>,
    %199 = vector.extract_strided_slice %176 {offsets = [0, 0], sizes = [4, 128], strides = [1, 1]} : vector<8x128xf32> to vector<4x128xf32>
    %c2_216 = arith.constant 2 : index
    %c0_217 = arith.constant 0 : index
    %c0_218 = arith.constant 0 : index
    %c0_219 = arith.constant 0 : index
    %200 = vector.load %arg18[%c2_216, %c0_217, %c0_218, %c0_219] : memref<4x2x5x128xf32, #tpu.memory_space<vmem>>, vector<1x1x4x128xf32>
    %201 = vector.shape_cast %200 : vector<1x1x4x128xf32> to vector<4x128xf32>
    %202 = vector.shape_cast %199 : vector<4x128xf32> to vector<1x1x4x128xf32>
    tpu.vector_store %arg18[%c2_216, %c0_217, %c0_218, %c0_219], %202 {strides = array<i32>} : memref<4x2x5x128xf32, #tpu.memory_space<vmem>>, vector<1x1x4x128xf32>,
    %203 = vector.extract_strided_slice %176 {offsets = [4, 0], sizes = [4, 128], strides = [1, 1]} : vector<8x128xf32> to vector<4x128xf32>
    %c2_220 = arith.constant 2 : index
    %c1_221 = arith.constant 1 : index
    %c0_222 = arith.constant 0 : index
    %c0_223 = arith.constant 0 : index
    %204 = vector.load %arg18[%c2_220, %c1_221, %c0_222, %c0_223] : memref<4x2x5x128xf32, #tpu.memory_space<vmem>>, vector<1x1x4x128xf32>
    %205 = vector.shape_cast %204 : vector<1x1x4x128xf32> to vector<4x128xf32>
    %206 = vector.shape_cast %203 : vector<4x128xf32> to vector<1x1x4x128xf32>
    tpu.vector_store %arg18[%c2_220, %c1_221, %c0_222, %c0_223], %206 {strides = array<i32>} : memref<4x2x5x128xf32, #tpu.memory_space<vmem>>, vector<1x1x4x128xf32>,
    %207 = vector.extract_strided_slice %183 {offsets = [0, 0], sizes = [4, 128], strides = [1, 1]} : vector<8x128xf32> to vector<4x128xf32>
    %c3_224 = arith.constant 3 : index
    %c0_225 = arith.constant 0 : index
    %c0_226 = arith.constant 0 : index
    %c0_227 = arith.constant 0 : index
    %208 = vector.load %arg18[%c3_224, %c0_225, %c0_226, %c0_227] : memref<4x2x5x128xf32, #tpu.memory_space<vmem>>, vector<1x1x4x128xf32>
    %209 = vector.shape_cast %208 : vector<1x1x4x128xf32> to vector<4x128xf32>
    %210 = vector.shape_cast %207 : vector<4x128xf32> to vector<1x1x4x128xf32>
    tpu.vector_store %arg18[%c3_224, %c0_225, %c0_226, %c0_227], %210 {strides = array<i32>} : memref<4x2x5x128xf32, #tpu.memory_space<vmem>>, vector<1x1x4x128xf32>,
    %211 = vector.extract_strided_slice %183 {offsets = [4, 0], sizes = [4, 128], strides = [1, 1]} : vector<8x128xf32> to vector<4x128xf32>
    %c3_228 = arith.constant 3 : index
    %c1_229 = arith.constant 1 : index
    %c0_230 = arith.constant 0 : index
    %c0_231 = arith.constant 0 : index
    %212 = vector.load %arg18[%c3_228, %c1_229, %c0_230, %c0_231] : memref<4x2x5x128xf32, #tpu.memory_space<vmem>>, vector<1x1x4x128xf32>
    %213 = vector.shape_cast %212 : vector<1x1x4x128xf32> to vector<4x128xf32>
    %214 = vector.shape_cast %211 : vector<4x128xf32> to vector<1x1x4x128xf32>
    tpu.vector_store %arg18[%c3_228, %c1_229, %c0_230, %c0_231], %214 {strides = array<i32>} : memref<4x2x5x128xf32, #tpu.memory_space<vmem>>, vector<1x1x4x128xf32>,
    %215 = vector.extract_strided_slice %190 {offsets = [0, 0], sizes = [4, 128], strides = [1, 1]} : vector<8x128xf32> to vector<4x128xf32>
    %c0_232 = arith.constant 0 : index
    %c0_233 = arith.constant 0 : index
    %c1_234 = arith.constant 1 : index
    %c0_235 = arith.constant 0 : index
    %216 = vector.load %arg18[%c0_232, %c0_233, %c1_234, %c0_235] : memref<4x2x5x128xf32, #tpu.memory_space<vmem>>, vector<1x1x4x128xf32>
    %217 = vector.shape_cast %216 : vector<1x1x4x128xf32> to vector<4x128xf32>
    %218 = vector.shape_cast %215 : vector<4x128xf32> to vector<1x1x4x128xf32>
    tpu.vector_store %arg18[%c0_232, %c0_233, %c1_234, %c0_235], %218 {strides = array<i32>} : memref<4x2x5x128xf32, #tpu.memory_space<vmem>>, vector<1x1x4x128xf32>,
    %219 = vector.extract_strided_slice %190 {offsets = [4, 0], sizes = [4, 128], strides = [1, 1]} : vector<8x128xf32> to vector<4x128xf32>
    %c0_236 = arith.constant 0 : index
    %c1_237 = arith.constant 1 : index
    %c1_238 = arith.constant 1 : index
    %c0_239 = arith.constant 0 : index
    %220 = vector.load %arg18[%c0_236, %c1_237, %c1_238, %c0_239] : memref<4x2x5x128xf32, #tpu.memory_space<vmem>>, vector<1x1x4x128xf32>
    %221 = vector.shape_cast %220 : vector<1x1x4x128xf32> to vector<4x128xf32>
    %222 = vector.shape_cast %219 : vector<4x128xf32> to vector<1x1x4x128xf32>
    tpu.vector_store %arg18[%c0_236, %c1_237, %c1_238, %c0_239], %222 {strides = array<i32>} : memref<4x2x5x128xf32, #tpu.memory_space<vmem>>, vector<1x1x4x128xf32>,
    %c0_240 = arith.constant 0 : index
    %c0_241 = arith.constant 0 : index
    %c0_242 = arith.constant 0 : index
    %c0_243 = arith.constant 0 : index
    %223 = vector.load %arg18[%c0_240, %c0_241, %c0_242, %c0_243] : memref<4x2x5x128xf32, #tpu.memory_space<vmem>>, vector<1x1x4x128xf32>
    %224 = vector.shape_cast %223 : vector<1x1x4x128xf32> to vector<4x128xf32>
    %c0_244 = arith.constant 0 : index
    %c1_245 = arith.constant 1 : index
    %c0_246 = arith.constant 0 : index
    %c0_247 = arith.constant 0 : index
    %225 = vector.load %arg18[%c0_244, %c1_245, %c0_246, %c0_247] : memref<4x2x5x128xf32, #tpu.memory_space<vmem>>, vector<1x1x4x128xf32>
    %226 = vector.shape_cast %225 : vector<1x1x4x128xf32> to vector<4x128xf32>
    %227 = tpu.concatenate %224, %226 in 0 : vector<4x128xf32>, vector<4x128xf32> -> vector<8x128xf32>
    %228 = arith.truncf %227 : vector<8x128xf32> to vector<8x128xbf16>
    %c0_248 = arith.constant 0 : index
    %c0_249 = arith.constant 0 : index
    %c0_250 = arith.constant 0 : index
    %229 = vector.load %arg4[%c0_248, %c0_249, %c0_250] : memref<4x128x128xbf16, #tpu.memory_space<vmem>>, vector<1x128x128xbf16>
    %230 = vector.shape_cast %229 : vector<1x128x128xbf16> to vector<128x128xbf16>
    %cst_251 = arith.constant dense<0.000000e+00> : vector<8x128xf32>
    %231 = tpu.matmul %228, %230, %cst_251 {dimension_numbers = #tpu.dot_dimension_numbers<[1], [0], [0], [1], [0, 0, 1, 1], [], []>} : vector<8x128xbf16>, vector<128x128xbf16>, vector<8x128xf32> -> vector<8x128xf32>
    %c1_252 = arith.constant 1 : index
    %c0_253 = arith.constant 0 : index
    %c0_254 = arith.constant 0 : index
    %c0_255 = arith.constant 0 : index
    %232 = vector.load %arg18[%c1_252, %c0_253, %c0_254, %c0_255] : memref<4x2x5x128xf32, #tpu.memory_space<vmem>>, vector<1x1x4x128xf32>
    %233 = vector.shape_cast %232 : vector<1x1x4x128xf32> to vector<4x128xf32>
    %c1_256 = arith.constant 1 : index
    %c1_257 = arith.constant 1 : index
    %c0_258 = arith.constant 0 : index
    %c0_259 = arith.constant 0 : index
    %234 = vector.load %arg18[%c1_256, %c1_257, %c0_258, %c0_259] : memref<4x2x5x128xf32, #tpu.memory_space<vmem>>, vector<1x1x4x128xf32>
    %235 = vector.shape_cast %234 : vector<1x1x4x128xf32> to vector<4x128xf32>
    %236 = tpu.concatenate %233, %235 in 0 : vector<4x128xf32>, vector<4x128xf32> -> vector<8x128xf32>
    %237 = arith.truncf %236 : vector<8x128xf32> to vector<8x128xbf16>
    %c1_260 = arith.constant 1 : index
    %c0_261 = arith.constant 0 : index
    %c0_262 = arith.constant 0 : index
    %238 = vector.load %arg4[%c1_260, %c0_261, %c0_262] : memref<4x128x128xbf16, #tpu.memory_space<vmem>>, vector<1x128x128xbf16>
    %239 = vector.shape_cast %238 : vector<1x128x128xbf16> to vector<128x128xbf16>
    %cst_263 = arith.constant dense<0.000000e+00> : vector<8x128xf32>
    %240 = tpu.matmul %237, %239, %cst_263 {dimension_numbers = #tpu.dot_dimension_numbers<[1], [0], [0], [1], [0, 0, 1, 1], [], []>} : vector<8x128xbf16>, vector<128x128xbf16>, vector<8x128xf32> -> vector<8x128xf32>
    %241 = arith.addf %231, %240 : vector<8x128xf32>
    %c2_264 = arith.constant 2 : index
    %c0_265 = arith.constant 0 : index
    %c0_266 = arith.constant 0 : index
    %c0_267 = arith.constant 0 : index
    %242 = vector.load %arg18[%c2_264, %c0_265, %c0_266, %c0_267] : memref<4x2x5x128xf32, #tpu.memory_space<vmem>>, vector<1x1x4x128xf32>
    %243 = vector.shape_cast %242 : vector<1x1x4x128xf32> to vector<4x128xf32>
    %c2_268 = arith.constant 2 : index
    %c1_269 = arith.constant 1 : index
    %c0_270 = arith.constant 0 : index
    %c0_271 = arith.constant 0 : index
    %244 = vector.load %arg18[%c2_268, %c1_269, %c0_270, %c0_271] : memref<4x2x5x128xf32, #tpu.memory_space<vmem>>, vector<1x1x4x128xf32>
    %245 = vector.shape_cast %244 : vector<1x1x4x128xf32> to vector<4x128xf32>
    %246 = tpu.concatenate %243, %245 in 0 : vector<4x128xf32>, vector<4x128xf32> -> vector<8x128xf32>
    %247 = arith.truncf %246 : vector<8x128xf32> to vector<8x128xbf16>
    %c2_272 = arith.constant 2 : index
    %c0_273 = arith.constant 0 : index
    %c0_274 = arith.constant 0 : index
    %248 = vector.load %arg4[%c2_272, %c0_273, %c0_274] : memref<4x128x128xbf16, #tpu.memory_space<vmem>>, vector<1x128x128xbf16>
    %249 = vector.shape_cast %248 : vector<1x128x128xbf16> to vector<128x128xbf16>
    %cst_275 = arith.constant dense<0.000000e+00> : vector<8x128xf32>
    %250 = tpu.matmul %247, %249, %cst_275 {dimension_numbers = #tpu.dot_dimension_numbers<[1], [0], [0], [1], [0, 0, 1, 1], [], []>} : vector<8x128xbf16>, vector<128x128xbf16>, vector<8x128xf32> -> vector<8x128xf32>
    %251 = arith.addf %241, %250 : vector<8x128xf32>
    %c3_276 = arith.constant 3 : index
    %c0_277 = arith.constant 0 : index
    %c0_278 = arith.constant 0 : index
    %c0_279 = arith.constant 0 : index
    %252 = vector.load %arg18[%c3_276, %c0_277, %c0_278, %c0_279] : memref<4x2x5x128xf32, #tpu.memory_space<vmem>>, vector<1x1x4x128xf32>
    %253 = vector.shape_cast %252 : vector<1x1x4x128xf32> to vector<4x128xf32>
    %c3_280 = arith.constant 3 : index
    %c1_281 = arith.constant 1 : index
    %c0_282 = arith.constant 0 : index
    %c0_283 = arith.constant 0 : index
    %254 = vector.load %arg18[%c3_280, %c1_281, %c0_282, %c0_283] : memref<4x2x5x128xf32, #tpu.memory_space<vmem>>, vector<1x1x4x128xf32>
    %255 = vector.shape_cast %254 : vector<1x1x4x128xf32> to vector<4x128xf32>
    %256 = tpu.concatenate %253, %255 in 0 : vector<4x128xf32>, vector<4x128xf32> -> vector<8x128xf32>
    %257 = arith.truncf %256 : vector<8x128xf32> to vector<8x128xbf16>
    %c3_284 = arith.constant 3 : index
    %c0_285 = arith.constant 0 : index
    %c0_286 = arith.constant 0 : index
    %258 = vector.load %arg4[%c3_284, %c0_285, %c0_286] : memref<4x128x128xbf16, #tpu.memory_space<vmem>>, vector<1x128x128xbf16>
    %259 = vector.shape_cast %258 : vector<1x128x128xbf16> to vector<128x128xbf16>
    %cst_287 = arith.constant dense<0.000000e+00> : vector<8x128xf32>
    %260 = tpu.matmul %257, %259, %cst_287 {dimension_numbers = #tpu.dot_dimension_numbers<[1], [0], [0], [1], [0, 0, 1, 1], [], []>} : vector<8x128xbf16>, vector<128x128xbf16>, vector<8x128xf32> -> vector<8x128xf32>
    %261 = arith.addf %251, %260 : vector<8x128xf32>
    %c2_288 = arith.constant 2 : index
    %c0_289 = arith.constant 0 : index
    %c0_290 = arith.constant 0 : index
    %c0_291 = arith.constant 0 : index
    %262 = vector.load %arg18[%c2_288, %c0_289, %c0_290, %c0_291] : memref<4x2x5x128xf32, #tpu.memory_space<vmem>>, vector<1x1x4x128xf32>
    %263 = vector.shape_cast %262 : vector<1x1x4x128xf32> to vector<4x128xf32>
    %c2_292 = arith.constant 2 : index
    %c1_293 = arith.constant 1 : index
    %c0_294 = arith.constant 0 : index
    %c0_295 = arith.constant 0 : index
    %264 = vector.load %arg18[%c2_292, %c1_293, %c0_294, %c0_295] : memref<4x2x5x128xf32, #tpu.memory_space<vmem>>, vector<1x1x4x128xf32>
    %265 = vector.shape_cast %264 : vector<1x1x4x128xf32> to vector<4x128xf32>
    %266 = tpu.concatenate %263, %265 in 0 : vector<4x128xf32>, vector<4x128xf32> -> vector<8x128xf32>
    %267 = arith.truncf %266 : vector<8x128xf32> to vector<8x128xbf16>
    %c0_296 = arith.constant 0 : index
    %c0_297 = arith.constant 0 : index
    %c0_298 = arith.constant 0 : index
    %268 = vector.load %arg4[%c0_296, %c0_297, %c0_298] : memref<4x128x128xbf16, #tpu.memory_space<vmem>>, vector<1x128x128xbf16>
    %269 = vector.shape_cast %268 : vector<1x128x128xbf16> to vector<128x128xbf16>
    %cst_299 = arith.constant dense<0.000000e+00> : vector<8x128xf32>
    %270 = tpu.matmul %267, %269, %cst_299 {dimension_numbers = #tpu.dot_dimension_numbers<[1], [0], [0], [1], [0, 0, 1, 1], [], []>} : vector<8x128xbf16>, vector<128x128xbf16>, vector<8x128xf32> -> vector<8x128xf32>
    %c3_300 = arith.constant 3 : index
    %c0_301 = arith.constant 0 : index
    %c0_302 = arith.constant 0 : index
    %c0_303 = arith.constant 0 : index
    %271 = vector.load %arg18[%c3_300, %c0_301, %c0_302, %c0_303] : memref<4x2x5x128xf32, #tpu.memory_space<vmem>>, vector<1x1x4x128xf32>
    %272 = vector.shape_cast %271 : vector<1x1x4x128xf32> to vector<4x128xf32>
    %c3_304 = arith.constant 3 : index
    %c1_305 = arith.constant 1 : index
    %c0_306 = arith.constant 0 : index
    %c0_307 = arith.constant 0 : index
    %273 = vector.load %arg18[%c3_304, %c1_305, %c0_306, %c0_307] : memref<4x2x5x128xf32, #tpu.memory_space<vmem>>, vector<1x1x4x128xf32>
    %274 = vector.shape_cast %273 : vector<1x1x4x128xf32> to vector<4x128xf32>
    %275 = tpu.concatenate %272, %274 in 0 : vector<4x128xf32>, vector<4x128xf32> -> vector<8x128xf32>
    %276 = arith.truncf %275 : vector<8x128xf32> to vector<8x128xbf16>
    %c1_308 = arith.constant 1 : index
    %c0_309 = arith.constant 0 : index
    %c0_310 = arith.constant 0 : index
    %277 = vector.load %arg4[%c1_308, %c0_309, %c0_310] : memref<4x128x128xbf16, #tpu.memory_space<vmem>>, vector<1x128x128xbf16>
    %278 = vector.shape_cast %277 : vector<1x128x128xbf16> to vector<128x128xbf16>
    %cst_311 = arith.constant dense<0.000000e+00> : vector<8x128xf32>
    %279 = tpu.matmul %276, %278, %cst_311 {dimension_numbers = #tpu.dot_dimension_numbers<[1], [0], [0], [1], [0, 0, 1, 1], [], []>} : vector<8x128xbf16>, vector<128x128xbf16>, vector<8x128xf32> -> vector<8x128xf32>
    %280 = arith.addf %270, %279 : vector<8x128xf32>
    %c0_312 = arith.constant 0 : index
    %c0_313 = arith.constant 0 : index
    %c1_314 = arith.constant 1 : index
    %c0_315 = arith.constant 0 : index
    %281 = vector.load %arg18[%c0_312, %c0_313, %c1_314, %c0_315] : memref<4x2x5x128xf32, #tpu.memory_space<vmem>>, vector<1x1x4x128xf32>
    %282 = vector.shape_cast %281 : vector<1x1x4x128xf32> to vector<4x128xf32>
    %c0_316 = arith.constant 0 : index
    %c1_317 = arith.constant 1 : index
    %c1_318 = arith.constant 1 : index
    %c0_319 = arith.constant 0 : index
    %283 = vector.load %arg18[%c0_316, %c1_317, %c1_318, %c0_319] : memref<4x2x5x128xf32, #tpu.memory_space<vmem>>, vector<1x1x4x128xf32>
    %284 = vector.shape_cast %283 : vector<1x1x4x128xf32> to vector<4x128xf32>
    %285 = tpu.concatenate %282, %284 in 0 : vector<4x128xf32>, vector<4x128xf32> -> vector<8x128xf32>
    %286 = arith.truncf %285 : vector<8x128xf32> to vector<8x128xbf16>
    %c2_320 = arith.constant 2 : index
    %c0_321 = arith.constant 0 : index
    %c0_322 = arith.constant 0 : index
    %287 = vector.load %arg4[%c2_320, %c0_321, %c0_322] : memref<4x128x128xbf16, #tpu.memory_space<vmem>>, vector<1x128x128xbf16>
    %288 = vector.shape_cast %287 : vector<1x128x128xbf16> to vector<128x128xbf16>
    %cst_323 = arith.constant dense<0.000000e+00> : vector<8x128xf32>
    %289 = tpu.matmul %286, %288, %cst_323 {dimension_numbers = #tpu.dot_dimension_numbers<[1], [0], [0], [1], [0, 0, 1, 1], [], []>} : vector<8x128xbf16>, vector<128x128xbf16>, vector<8x128xf32> -> vector<8x128xf32>
    %290 = arith.addf %280, %289 : vector<8x128xf32>
    %c1_324 = arith.constant 1 : index
    %c0_325 = arith.constant 0 : index
    %c1_326 = arith.constant 1 : index
    %c0_327 = arith.constant 0 : index
    %291 = vector.load %arg18[%c1_324, %c0_325, %c1_326, %c0_327] : memref<4x2x5x128xf32, #tpu.memory_space<vmem>>, vector<1x1x4x128xf32>
    %292 = vector.shape_cast %291 : vector<1x1x4x128xf32> to vector<4x128xf32>
    %c1_328 = arith.constant 1 : index
    %c1_329 = arith.constant 1 : index
    %c1_330 = arith.constant 1 : index
    %c0_331 = arith.constant 0 : index
    %293 = vector.load %arg18[%c1_328, %c1_329, %c1_330, %c0_331] : memref<4x2x5x128xf32, #tpu.memory_space<vmem>>, vector<1x1x4x128xf32>
    %294 = vector.shape_cast %293 : vector<1x1x4x128xf32> to vector<4x128xf32>
    %295 = tpu.concatenate %292, %294 in 0 : vector<4x128xf32>, vector<4x128xf32> -> vector<8x128xf32>
    %296 = arith.truncf %295 : vector<8x128xf32> to vector<8x128xbf16>
    %c3_332 = arith.constant 3 : index
    %c0_333 = arith.constant 0 : index
    %c0_334 = arith.constant 0 : index
    %297 = vector.load %arg4[%c3_332, %c0_333, %c0_334] : memref<4x128x128xbf16, #tpu.memory_space<vmem>>, vector<1x128x128xbf16>
    %298 = vector.shape_cast %297 : vector<1x128x128xbf16> to vector<128x128xbf16>
    %cst_335 = arith.constant dense<0.000000e+00> : vector<8x128xf32>
    %299 = tpu.matmul %296, %298, %cst_335 {dimension_numbers = #tpu.dot_dimension_numbers<[1], [0], [0], [1], [0, 0, 1, 1], [], []>} : vector<8x128xbf16>, vector<128x128xbf16>, vector<8x128xf32> -> vector<8x128xf32>
    %300 = arith.addf %290, %299 : vector<8x128xf32>
    %c0_336 = arith.constant 0 : index
    %c0_337 = arith.constant 0 : index
    %301 = vector.load %arg7[%c0_336, %c0_337] : memref<128x16xf32, #tpu.memory_space<vmem>>, vector<128x16xf32>
    %cst_338 = arith.constant dense<0.000000e+00> : vector<128xf32>
    %302 = vector.multi_reduction <add>, %261, %cst_338 [0] : vector<8x128xf32> to vector<128xf32>
    %303 = vector.shape_cast %302 : vector<128xf32> to vector<1x128xf32>
    %cst_339 = arith.constant 0.000000e+00 : f32
    %304 = vector.broadcast %cst_339 : f32 to vector<1x128xf32>
    %305 = arith.addf %304, %303 : vector<1x128xf32>
    %cst_340 = arith.constant dense<0.000000e+00> : vector<128xf32>
    %306 = vector.multi_reduction <add>, %300, %cst_340 [0] : vector<8x128xf32> to vector<128xf32>
    %307 = vector.shape_cast %306 : vector<128xf32> to vector<1x128xf32>
    %308 = arith.addf %305, %307 : vector<1x128xf32>
    %309 = arith.mulf %261, %261 : vector<8x128xf32>
    %cst_341 = arith.constant dense<0.000000e+00> : vector<128xf32>
    %310 = vector.multi_reduction <add>, %309, %cst_341 [0] : vector<8x128xf32> to vector<128xf32>
    %311 = vector.shape_cast %310 : vector<128xf32> to vector<1x128xf32>
    %cst_342 = arith.constant 0.000000e+00 : f32
    %312 = vector.broadcast %cst_342 : f32 to vector<1x128xf32>
    %313 = arith.addf %312, %311 : vector<1x128xf32>
    %314 = arith.mulf %300, %300 : vector<8x128xf32>
    %cst_343 = arith.constant dense<0.000000e+00> : vector<128xf32>
    %315 = vector.multi_reduction <add>, %314, %cst_343 [0] : vector<8x128xf32> to vector<128xf32>
    %316 = vector.shape_cast %315 : vector<128xf32> to vector<1x128xf32>
    %317 = arith.addf %313, %316 : vector<1x128xf32>
    %cst_344 = arith.constant dense<0.000000e+00> : vector<1x16xf32>
    %318 = tpu.matmul %308, %301, %cst_344 {dimension_numbers = #tpu.dot_dimension_numbers<[1], [0], [0], [1], [0, 0, 1, 1], [], []>} : vector<1x128xf32>, vector<128x16xf32>, vector<1x16xf32> -> vector<1x16xf32>
    %cst_345 = arith.constant 1.280000e+02 : f32
    %319 = vector.broadcast %cst_345 : f32 to vector<1x16xf32>
    %320 = arith.divf %318, %319 : vector<1x16xf32>
    %cst_346 = arith.constant dense<0.000000e+00> : vector<1x16xf32>
    %321 = tpu.matmul %317, %301, %cst_346 {dimension_numbers = #tpu.dot_dimension_numbers<[1], [0], [0], [1], [0, 0, 1, 1], [], []>} : vector<1x128xf32>, vector<128x16xf32>, vector<1x16xf32> -> vector<1x16xf32>
    %cst_347 = arith.constant 1.280000e+02 : f32
    %322 = vector.broadcast %cst_347 : f32 to vector<1x16xf32>
    %323 = arith.divf %321, %322 : vector<1x16xf32>
    %324 = arith.mulf %320, %320 : vector<1x16xf32>
    %325 = arith.subf %323, %324 : vector<1x16xf32>
    %cst_348 = arith.constant 9.99999974E-6 : f32
    %326 = vector.broadcast %cst_348 : f32 to vector<1x16xf32>
    %327 = arith.addf %325, %326 : vector<1x16xf32>
    %328 = math.rsqrt %327 : vector<1x16xf32>
    %329 = tpu.concatenate %320, %320, %320, %320, %320, %320, %320, %320 in 1 : vector<1x16xf32>, vector<1x16xf32>, vector<1x16xf32>, vector<1x16xf32>, vector<1x16xf32>, vector<1x16xf32>, vector<1x16xf32>, vector<1x16xf32> -> vector<1x128xf32>
    %330 = tpu.concatenate %328, %328, %328, %328, %328, %328, %328, %328 in 1 : vector<1x16xf32>, vector<1x16xf32>, vector<1x16xf32>, vector<1x16xf32>, vector<1x16xf32>, vector<1x16xf32>, vector<1x16xf32>, vector<1x16xf32> -> vector<1x128xf32>
    %c0_349 = arith.constant 0 : index
    %c0_350 = arith.constant 0 : index
    %331 = vector.load %arg5[%c0_349, %c0_350] : memref<1x128xf32, #tpu.memory_space<vmem>>, vector<1x128xf32>
    %332 = arith.mulf %331, %330 : vector<1x128xf32>
    %c0_351 = arith.constant 0 : index
    %c0_352 = arith.constant 0 : index
    %333 = vector.load %arg6[%c0_351, %c0_352] : memref<1x128xf32, #tpu.memory_space<vmem>>, vector<1x128xf32>
    %334 = arith.mulf %329, %332 : vector<1x128xf32>
    %335 = arith.subf %333, %334 : vector<1x128xf32>
    %336 = vector.broadcast %332 : vector<1x128xf32> to vector<8x128xf32>
    %337 = arith.mulf %261, %336 : vector<8x128xf32>
    %338 = vector.broadcast %335 : vector<1x128xf32> to vector<8x128xf32>
    %339 = arith.addf %337, %338 : vector<8x128xf32>
    %cst_353 = arith.constant 0.000000e+00 : f32
    %340 = vector.broadcast %cst_353 : f32 to vector<8x128xf32>
    %341 = arith.cmpf oge, %339, %340 : vector<8x128xf32>
    %cst_354 = arith.constant 2.000000e-01 : f32
    %342 = vector.broadcast %cst_354 : f32 to vector<8x128xf32>
    %343 = arith.mulf %342, %339 : vector<8x128xf32>
    %344 = arith.select %341, %339, %343 : vector<8x128xi1>, vector<8x128xf32>
    %345 = vector.broadcast %332 : vector<1x128xf32> to vector<8x128xf32>
    %346 = arith.mulf %300, %345 : vector<8x128xf32>
    %347 = vector.broadcast %335 : vector<1x128xf32> to vector<8x128xf32>
    %348 = arith.addf %346, %347 : vector<8x128xf32>
    %cst_355 = arith.constant 0.000000e+00 : f32
    %349 = vector.broadcast %cst_355 : f32 to vector<8x128xf32>
    %350 = arith.cmpf oge, %348, %349 : vector<8x128xf32>
    %cst_356 = arith.constant 2.000000e-01 : f32
    %351 = vector.broadcast %cst_356 : f32 to vector<8x128xf32>
    %352 = arith.mulf %351, %348 : vector<8x128xf32>
    %353 = arith.select %350, %348, %352 : vector<8x128xi1>, vector<8x128xf32>
    %354 = vector.extract_strided_slice %344 {offsets = [0, 0], sizes = [4, 128], strides = [1, 1]} : vector<8x128xf32> to vector<4x128xf32>
    %c1_357 = arith.constant 1 : index
    %c0_358 = arith.constant 0 : index
    %c0_359 = arith.constant 0 : index
    %c0_360 = arith.constant 0 : index
    %355 = vector.load %arg19[%c1_357, %c0_358, %c0_359, %c0_360] : memref<2x2x5x128xf32, #tpu.memory_space<vmem>>, vector<1x1x4x128xf32>
    %356 = vector.shape_cast %355 : vector<1x1x4x128xf32> to vector<4x128xf32>
    %357 = vector.shape_cast %354 : vector<4x128xf32> to vector<1x1x4x128xf32>
    tpu.vector_store %arg19[%c1_357, %c0_358, %c0_359, %c0_360], %357 {strides = array<i32>} : memref<2x2x5x128xf32, #tpu.memory_space<vmem>>, vector<1x1x4x128xf32>,
    %358 = vector.extract_strided_slice %344 {offsets = [4, 0], sizes = [4, 128], strides = [1, 1]} : vector<8x128xf32> to vector<4x128xf32>
    %c1_361 = arith.constant 1 : index
    %c1_362 = arith.constant 1 : index
    %c0_363 = arith.constant 0 : index
    %c0_364 = arith.constant 0 : index
    %359 = vector.load %arg19[%c1_361, %c1_362, %c0_363, %c0_364] : memref<2x2x5x128xf32, #tpu.memory_space<vmem>>, vector<1x1x4x128xf32>
    %360 = vector.shape_cast %359 : vector<1x1x4x128xf32> to vector<4x128xf32>
    %361 = vector.shape_cast %358 : vector<4x128xf32> to vector<1x1x4x128xf32>
    tpu.vector_store %arg19[%c1_361, %c1_362, %c0_363, %c0_364], %361 {strides = array<i32>} : memref<2x2x5x128xf32, #tpu.memory_space<vmem>>, vector<1x1x4x128xf32>,
    %362 = vector.extract_strided_slice %353 {offsets = [0, 0], sizes = [4, 128], strides = [1, 1]} : vector<8x128xf32> to vector<4x128xf32>
    %c0_365 = arith.constant 0 : index
    %c0_366 = arith.constant 0 : index
    %c1_367 = arith.constant 1 : index
    %c0_368 = arith.constant 0 : index
    %363 = vector.load %arg19[%c0_365, %c0_366, %c1_367, %c0_368] : memref<2x2x5x128xf32, #tpu.memory_space<vmem>>, vector<1x1x4x128xf32>
    %364 = vector.shape_cast %363 : vector<1x1x4x128xf32> to vector<4x128xf32>
    %365 = vector.shape_cast %362 : vector<4x128xf32> to vector<1x1x4x128xf32>
    tpu.vector_store %arg19[%c0_365, %c0_366, %c1_367, %c0_368], %365 {strides = array<i32>} : memref<2x2x5x128xf32, #tpu.memory_space<vmem>>, vector<1x1x4x128xf32>,
    %366 = vector.extract_strided_slice %353 {offsets = [4, 0], sizes = [4, 128], strides = [1, 1]} : vector<8x128xf32> to vector<4x128xf32>
    %c0_369 = arith.constant 0 : index
    %c1_370 = arith.constant 1 : index
    %c1_371 = arith.constant 1 : index
    %c0_372 = arith.constant 0 : index
    %367 = vector.load %arg19[%c0_369, %c1_370, %c1_371, %c0_372] : memref<2x2x5x128xf32, #tpu.memory_space<vmem>>, vector<1x1x4x128xf32>
    %368 = vector.shape_cast %367 : vector<1x1x4x128xf32> to vector<4x128xf32>
    %369 = vector.shape_cast %366 : vector<4x128xf32> to vector<1x1x4x128xf32>
    tpu.vector_store %arg19[%c0_369, %c1_370, %c1_371, %c0_372], %369 {strides = array<i32>} : memref<2x2x5x128xf32, #tpu.memory_space<vmem>>, vector<1x1x4x128xf32>,
    %c0_373 = arith.constant 0 : index
    %c0_374 = arith.constant 0 : index
    %c0_375 = arith.constant 0 : index
    %c0_376 = arith.constant 0 : index
    %370 = vector.load %arg19[%c0_373, %c0_374, %c0_375, %c0_376] : memref<2x2x5x128xf32, #tpu.memory_space<vmem>>, vector<1x1x4x128xf32>
    %371 = vector.shape_cast %370 : vector<1x1x4x128xf32> to vector<4x128xf32>
    %c0_377 = arith.constant 0 : index
    %c1_378 = arith.constant 1 : index
    %c0_379 = arith.constant 0 : index
    %c0_380 = arith.constant 0 : index
    %372 = vector.load %arg19[%c0_377, %c1_378, %c0_379, %c0_380] : memref<2x2x5x128xf32, #tpu.memory_space<vmem>>, vector<1x1x4x128xf32>
    %373 = vector.shape_cast %372 : vector<1x1x4x128xf32> to vector<4x128xf32>
    %374 = tpu.concatenate %371, %373 in 0 : vector<4x128xf32>, vector<4x128xf32> -> vector<8x128xf32>
    %375 = arith.truncf %374 : vector<8x128xf32> to vector<8x128xbf16>
    %c0_381 = arith.constant 0 : index
    %c0_382 = arith.constant 0 : index
    %c0_383 = arith.constant 0 : index
    %376 = vector.load %arg8[%c0_381, %c0_382, %c0_383] : memref<4x128x128xbf16, #tpu.memory_space<vmem>>, vector<1x128x128xbf16>
    %377 = vector.shape_cast %376 : vector<1x128x128xbf16> to vector<128x128xbf16>
    %cst_384 = arith.constant dense<0.000000e+00> : vector<8x128xf32>
    %378 = tpu.matmul %375, %377, %cst_384 {dimension_numbers = #tpu.dot_dimension_numbers<[1], [0], [0], [1], [0, 0, 1, 1], [], []>} : vector<8x128xbf16>, vector<128x128xbf16>, vector<8x128xf32> -> vector<8x128xf32>
    %c1_385 = arith.constant 1 : index
    %c0_386 = arith.constant 0 : index
    %c0_387 = arith.constant 0 : index
    %c0_388 = arith.constant 0 : index
    %379 = vector.load %arg19[%c1_385, %c0_386, %c0_387, %c0_388] : memref<2x2x5x128xf32, #tpu.memory_space<vmem>>, vector<1x1x4x128xf32>
    %380 = vector.shape_cast %379 : vector<1x1x4x128xf32> to vector<4x128xf32>
    %c1_389 = arith.constant 1 : index
    %c1_390 = arith.constant 1 : index
    %c0_391 = arith.constant 0 : index
    %c0_392 = arith.constant 0 : index
    %381 = vector.load %arg19[%c1_389, %c1_390, %c0_391, %c0_392] : memref<2x2x5x128xf32, #tpu.memory_space<vmem>>, vector<1x1x4x128xf32>
    %382 = vector.shape_cast %381 : vector<1x1x4x128xf32> to vector<4x128xf32>
    %383 = tpu.concatenate %380, %382 in 0 : vector<4x128xf32>, vector<4x128xf32> -> vector<8x128xf32>
    %384 = arith.truncf %383 : vector<8x128xf32> to vector<8x128xbf16>
    %c1_393 = arith.constant 1 : index
    %c0_394 = arith.constant 0 : index
    %c0_395 = arith.constant 0 : index
    %385 = vector.load %arg8[%c1_393, %c0_394, %c0_395] : memref<4x128x128xbf16, #tpu.memory_space<vmem>>, vector<1x128x128xbf16>
    %386 = vector.shape_cast %385 : vector<1x128x128xbf16> to vector<128x128xbf16>
    %cst_396 = arith.constant dense<0.000000e+00> : vector<8x128xf32>
    %387 = tpu.matmul %384, %386, %cst_396 {dimension_numbers = #tpu.dot_dimension_numbers<[1], [0], [0], [1], [0, 0, 1, 1], [], []>} : vector<8x128xbf16>, vector<128x128xbf16>, vector<8x128xf32> -> vector<8x128xf32>
    %388 = arith.addf %378, %387 : vector<8x128xf32>
    %c0_397 = arith.constant 0 : index
    %c0_398 = arith.constant 0 : index
    %c1_399 = arith.constant 1 : index
    %c0_400 = arith.constant 0 : index
    %389 = vector.load %arg19[%c0_397, %c0_398, %c1_399, %c0_400] : memref<2x2x5x128xf32, #tpu.memory_space<vmem>>, vector<1x1x4x128xf32>
    %390 = vector.shape_cast %389 : vector<1x1x4x128xf32> to vector<4x128xf32>
    %c0_401 = arith.constant 0 : index
    %c1_402 = arith.constant 1 : index
    %c1_403 = arith.constant 1 : index
    %c0_404 = arith.constant 0 : index
    %391 = vector.load %arg19[%c0_401, %c1_402, %c1_403, %c0_404] : memref<2x2x5x128xf32, #tpu.memory_space<vmem>>, vector<1x1x4x128xf32>
    %392 = vector.shape_cast %391 : vector<1x1x4x128xf32> to vector<4x128xf32>
    %393 = tpu.concatenate %390, %392 in 0 : vector<4x128xf32>, vector<4x128xf32> -> vector<8x128xf32>
    %394 = arith.truncf %393 : vector<8x128xf32> to vector<8x128xbf16>
    %c2_405 = arith.constant 2 : index
    %c0_406 = arith.constant 0 : index
    %c0_407 = arith.constant 0 : index
    %395 = vector.load %arg8[%c2_405, %c0_406, %c0_407] : memref<4x128x128xbf16, #tpu.memory_space<vmem>>, vector<1x128x128xbf16>
    %396 = vector.shape_cast %395 : vector<1x128x128xbf16> to vector<128x128xbf16>
    %cst_408 = arith.constant dense<0.000000e+00> : vector<8x128xf32>
    %397 = tpu.matmul %394, %396, %cst_408 {dimension_numbers = #tpu.dot_dimension_numbers<[1], [0], [0], [1], [0, 0, 1, 1], [], []>} : vector<8x128xbf16>, vector<128x128xbf16>, vector<8x128xf32> -> vector<8x128xf32>
    %398 = arith.addf %388, %397 : vector<8x128xf32>
    %c1_409 = arith.constant 1 : index
    %c0_410 = arith.constant 0 : index
    %c1_411 = arith.constant 1 : index
    %c0_412 = arith.constant 0 : index
    %399 = vector.load %arg19[%c1_409, %c0_410, %c1_411, %c0_412] : memref<2x2x5x128xf32, #tpu.memory_space<vmem>>, vector<1x1x4x128xf32>
    %400 = vector.shape_cast %399 : vector<1x1x4x128xf32> to vector<4x128xf32>
    %c1_413 = arith.constant 1 : index
    %c1_414 = arith.constant 1 : index
    %c1_415 = arith.constant 1 : index
    %c0_416 = arith.constant 0 : index
    %401 = vector.load %arg19[%c1_413, %c1_414, %c1_415, %c0_416] : memref<2x2x5x128xf32, #tpu.memory_space<vmem>>, vector<1x1x4x128xf32>
    %402 = vector.shape_cast %401 : vector<1x1x4x128xf32> to vector<4x128xf32>
    %403 = tpu.concatenate %400, %402 in 0 : vector<4x128xf32>, vector<4x128xf32> -> vector<8x128xf32>
    %404 = arith.truncf %403 : vector<8x128xf32> to vector<8x128xbf16>
    %c3_417 = arith.constant 3 : index
    %c0_418 = arith.constant 0 : index
    %c0_419 = arith.constant 0 : index
    %405 = vector.load %arg8[%c3_417, %c0_418, %c0_419] : memref<4x128x128xbf16, #tpu.memory_space<vmem>>, vector<1x128x128xbf16>
    %406 = vector.shape_cast %405 : vector<1x128x128xbf16> to vector<128x128xbf16>
    %cst_420 = arith.constant dense<0.000000e+00> : vector<8x128xf32>
    %407 = tpu.matmul %404, %406, %cst_420 {dimension_numbers = #tpu.dot_dimension_numbers<[1], [0], [0], [1], [0, 0, 1, 1], [], []>} : vector<8x128xbf16>, vector<128x128xbf16>, vector<8x128xf32> -> vector<8x128xf32>
    %408 = arith.addf %398, %407 : vector<8x128xf32>
    %c0_421 = arith.constant 0 : index
    %c0_422 = arith.constant 0 : index
    %409 = vector.load %arg11[%c0_421, %c0_422] : memref<128x32xf32, #tpu.memory_space<vmem>>, vector<128x32xf32>
    %cst_423 = arith.constant dense<0.000000e+00> : vector<128xf32>
    %410 = vector.multi_reduction <add>, %408, %cst_423 [0] : vector<8x128xf32> to vector<128xf32>
    %411 = vector.shape_cast %410 : vector<128xf32> to vector<1x128xf32>
    %cst_424 = arith.constant 0.000000e+00 : f32
    %412 = vector.broadcast %cst_424 : f32 to vector<1x128xf32>
    %413 = arith.addf %412, %411 : vector<1x128xf32>
    %414 = arith.mulf %408, %408 : vector<8x128xf32>
    %cst_425 = arith.constant dense<0.000000e+00> : vector<128xf32>
    %415 = vector.multi_reduction <add>, %414, %cst_425 [0] : vector<8x128xf32> to vector<128xf32>
    %416 = vector.shape_cast %415 : vector<128xf32> to vector<1x128xf32>
    %cst_426 = arith.constant 0.000000e+00 : f32
    %417 = vector.broadcast %cst_426 : f32 to vector<1x128xf32>
    %418 = arith.addf %417, %416 : vector<1x128xf32>
    %cst_427 = arith.constant dense<0.000000e+00> : vector<1x32xf32>
    %419 = tpu.matmul %413, %409, %cst_427 {dimension_numbers = #tpu.dot_dimension_numbers<[1], [0], [0], [1], [0, 0, 1, 1], [], []>} : vector<1x128xf32>, vector<128x32xf32>, vector<1x32xf32> -> vector<1x32xf32>
    %cst_428 = arith.constant 3.200000e+01 : f32
    %420 = vector.broadcast %cst_428 : f32 to vector<1x32xf32>
    %421 = arith.divf %419, %420 : vector<1x32xf32>
    %cst_429 = arith.constant dense<0.000000e+00> : vector<1x32xf32>
    %422 = tpu.matmul %418, %409, %cst_429 {dimension_numbers = #tpu.dot_dimension_numbers<[1], [0], [0], [1], [0, 0, 1, 1], [], []>} : vector<1x128xf32>, vector<128x32xf32>, vector<1x32xf32> -> vector<1x32xf32>
    %cst_430 = arith.constant 3.200000e+01 : f32
    %423 = vector.broadcast %cst_430 : f32 to vector<1x32xf32>
    %424 = arith.divf %422, %423 : vector<1x32xf32>
    %425 = arith.mulf %421, %421 : vector<1x32xf32>
    %426 = arith.subf %424, %425 : vector<1x32xf32>
    %cst_431 = arith.constant 9.99999974E-6 : f32
    %427 = vector.broadcast %cst_431 : f32 to vector<1x32xf32>
    %428 = arith.addf %426, %427 : vector<1x32xf32>
    %429 = math.rsqrt %428 : vector<1x32xf32>
    %430 = tpu.concatenate %421, %421, %421, %421 in 1 : vector<1x32xf32>, vector<1x32xf32>, vector<1x32xf32>, vector<1x32xf32> -> vector<1x128xf32>
    %431 = tpu.concatenate %429, %429, %429, %429 in 1 : vector<1x32xf32>, vector<1x32xf32>, vector<1x32xf32>, vector<1x32xf32> -> vector<1x128xf32>
    %c0_432 = arith.constant 0 : index
    %c0_433 = arith.constant 0 : index
    %432 = vector.load %arg9[%c0_432, %c0_433] : memref<1x128xf32, #tpu.memory_space<vmem>>, vector<1x128xf32>
    %433 = arith.mulf %432, %431 : vector<1x128xf32>
    %c0_434 = arith.constant 0 : index
    %c0_435 = arith.constant 0 : index
    %434 = vector.load %arg10[%c0_434, %c0_435] : memref<1x128xf32, #tpu.memory_space<vmem>>, vector<1x128xf32>
    %435 = arith.mulf %430, %433 : vector<1x128xf32>
    %436 = arith.subf %434, %435 : vector<1x128xf32>
    %437 = vector.broadcast %433 : vector<1x128xf32> to vector<8x128xf32>
    %438 = arith.mulf %408, %437 : vector<8x128xf32>
    %439 = vector.broadcast %436 : vector<1x128xf32> to vector<8x128xf32>
    %440 = arith.addf %438, %439 : vector<8x128xf32>
    %cst_436 = arith.constant 0.000000e+00 : f32
    %441 = vector.broadcast %cst_436 : f32 to vector<8x128xf32>
    %442 = arith.cmpf oge, %440, %441 : vector<8x128xf32>
    %cst_437 = arith.constant 2.000000e-01 : f32
    %443 = vector.broadcast %cst_437 : f32 to vector<8x128xf32>
    %444 = arith.mulf %443, %440 : vector<8x128xf32>
    %445 = arith.select %442, %440, %444 : vector<8x128xi1>, vector<8x128xf32>
    %446 = vector.extract_strided_slice %445 {offsets = [0, 0], sizes = [4, 128], strides = [1, 1]} : vector<8x128xf32> to vector<4x128xf32>
    %c0_438 = arith.constant 0 : index
    %c0_439 = arith.constant 0 : index
    %c1_440 = arith.constant 1 : index
    %c0_441 = arith.constant 0 : index
    %447 = vector.load %arg20[%c0_438, %c0_439, %c1_440, %c0_441] : memref<1x2x6x128xf32, #tpu.memory_space<vmem>>, vector<1x1x4x128xf32>
    %448 = vector.shape_cast %447 : vector<1x1x4x128xf32> to vector<4x128xf32>
    %449 = vector.shape_cast %446 : vector<4x128xf32> to vector<1x1x4x128xf32>
    tpu.vector_store %arg20[%c0_438, %c0_439, %c1_440, %c0_441], %449 {strides = array<i32>} : memref<1x2x6x128xf32, #tpu.memory_space<vmem>>, vector<1x1x4x128xf32>,
    %450 = vector.extract_strided_slice %445 {offsets = [4, 0], sizes = [4, 128], strides = [1, 1]} : vector<8x128xf32> to vector<4x128xf32>
    %c0_442 = arith.constant 0 : index
    %c1_443 = arith.constant 1 : index
    %c1_444 = arith.constant 1 : index
    %c0_445 = arith.constant 0 : index
    %451 = vector.load %arg20[%c0_442, %c1_443, %c1_444, %c0_445] : memref<1x2x6x128xf32, #tpu.memory_space<vmem>>, vector<1x1x4x128xf32>
    %452 = vector.shape_cast %451 : vector<1x1x4x128xf32> to vector<4x128xf32>
    %453 = vector.shape_cast %450 : vector<4x128xf32> to vector<1x1x4x128xf32>
    tpu.vector_store %arg20[%c0_442, %c1_443, %c1_444, %c0_445], %453 {strides = array<i32>} : memref<1x2x6x128xf32, #tpu.memory_space<vmem>>, vector<1x1x4x128xf32>,
    %c0_446 = arith.constant 0 : index
    %c0_447 = arith.constant 0 : index
    %c0_448 = arith.constant 0 : index
    %c0_449 = arith.constant 0 : index
    %454 = vector.load %arg20[%c0_446, %c0_447, %c0_448, %c0_449] : memref<1x2x6x128xf32, #tpu.memory_space<vmem>>, vector<1x1x3x128xf32>
    %455 = vector.shape_cast %454 : vector<1x1x3x128xf32> to vector<3x128xf32>
    %c0_450 = arith.constant 0 : index
    %c1_451 = arith.constant 1 : index
    %c0_452 = arith.constant 0 : index
    %c0_453 = arith.constant 0 : index
    %456 = vector.load %arg20[%c0_450, %c1_451, %c0_452, %c0_453] : memref<1x2x6x128xf32, #tpu.memory_space<vmem>>, vector<1x1x3x128xf32>
    %457 = vector.shape_cast %456 : vector<1x1x3x128xf32> to vector<3x128xf32>
    %458 = tpu.concatenate %455, %457 in 0 : vector<3x128xf32>, vector<3x128xf32> -> vector<6x128xf32>
    %459 = arith.truncf %458 : vector<6x128xf32> to vector<6x128xbf16>
    %c0_454 = arith.constant 0 : index
    %c0_455 = arith.constant 0 : index
    %c0_456 = arith.constant 0 : index
    %460 = vector.load %arg12[%c0_454, %c0_455, %c0_456] : memref<4x128x192xbf16, #tpu.memory_space<vmem>>, vector<1x128x192xbf16>
    %461 = vector.shape_cast %460 : vector<1x128x192xbf16> to vector<128x192xbf16>
    %cst_457 = arith.constant dense<0.000000e+00> : vector<6x192xf32>
    %462 = tpu.matmul %459, %461, %cst_457 {dimension_numbers = #tpu.dot_dimension_numbers<[1], [0], [0], [1], [0, 0, 1, 1], [], []>} : vector<6x128xbf16>, vector<128x192xbf16>, vector<6x192xf32> -> vector<6x192xf32>
    %c0_458 = arith.constant 0 : index
    %c0_459 = arith.constant 0 : index
    %c1_460 = arith.constant 1 : index
    %c0_461 = arith.constant 0 : index
    %463 = vector.load %arg20[%c0_458, %c0_459, %c1_460, %c0_461] : memref<1x2x6x128xf32, #tpu.memory_space<vmem>>, vector<1x1x3x128xf32>
    %464 = vector.shape_cast %463 : vector<1x1x3x128xf32> to vector<3x128xf32>
    %c0_462 = arith.constant 0 : index
    %c1_463 = arith.constant 1 : index
    %c1_464 = arith.constant 1 : index
    %c0_465 = arith.constant 0 : index
    %465 = vector.load %arg20[%c0_462, %c1_463, %c1_464, %c0_465] : memref<1x2x6x128xf32, #tpu.memory_space<vmem>>, vector<1x1x3x128xf32>
    %466 = vector.shape_cast %465 : vector<1x1x3x128xf32> to vector<3x128xf32>
    %467 = tpu.concatenate %464, %466 in 0 : vector<3x128xf32>, vector<3x128xf32> -> vector<6x128xf32>
    %468 = arith.truncf %467 : vector<6x128xf32> to vector<6x128xbf16>
    %c1_466 = arith.constant 1 : index
    %c0_467 = arith.constant 0 : index
    %c0_468 = arith.constant 0 : index
    %469 = vector.load %arg12[%c1_466, %c0_467, %c0_468] : memref<4x128x192xbf16, #tpu.memory_space<vmem>>, vector<1x128x192xbf16>
    %470 = vector.shape_cast %469 : vector<1x128x192xbf16> to vector<128x192xbf16>
    %cst_469 = arith.constant dense<0.000000e+00> : vector<6x192xf32>
    %471 = tpu.matmul %468, %470, %cst_469 {dimension_numbers = #tpu.dot_dimension_numbers<[1], [0], [0], [1], [0, 0, 1, 1], [], []>} : vector<6x128xbf16>, vector<128x192xbf16>, vector<6x192xf32> -> vector<6x192xf32>
    %472 = arith.addf %462, %471 : vector<6x192xf32>
    %c0_470 = arith.constant 0 : index
    %c0_471 = arith.constant 0 : index
    %c2_472 = arith.constant 2 : index
    %c0_473 = arith.constant 0 : index
    %473 = vector.load %arg20[%c0_470, %c0_471, %c2_472, %c0_473] : memref<1x2x6x128xf32, #tpu.memory_space<vmem>>, vector<1x1x3x128xf32>
    %474 = vector.shape_cast %473 : vector<1x1x3x128xf32> to vector<3x128xf32>
    %c0_474 = arith.constant 0 : index
    %c1_475 = arith.constant 1 : index
    %c2_476 = arith.constant 2 : index
    %c0_477 = arith.constant 0 : index
    %475 = vector.load %arg20[%c0_474, %c1_475, %c2_476, %c0_477] : memref<1x2x6x128xf32, #tpu.memory_space<vmem>>, vector<1x1x3x128xf32>
    %476 = vector.shape_cast %475 : vector<1x1x3x128xf32> to vector<3x128xf32>
    %477 = tpu.concatenate %474, %476 in 0 : vector<3x128xf32>, vector<3x128xf32> -> vector<6x128xf32>
    %478 = arith.truncf %477 : vector<6x128xf32> to vector<6x128xbf16>
    %c2_478 = arith.constant 2 : index
    %c0_479 = arith.constant 0 : index
    %c0_480 = arith.constant 0 : index
    %479 = vector.load %arg12[%c2_478, %c0_479, %c0_480] : memref<4x128x192xbf16, #tpu.memory_space<vmem>>, vector<1x128x192xbf16>
    %480 = vector.shape_cast %479 : vector<1x128x192xbf16> to vector<128x192xbf16>
    %cst_481 = arith.constant dense<0.000000e+00> : vector<6x192xf32>
    %481 = tpu.matmul %478, %480, %cst_481 {dimension_numbers = #tpu.dot_dimension_numbers<[1], [0], [0], [1], [0, 0, 1, 1], [], []>} : vector<6x128xbf16>, vector<128x192xbf16>, vector<6x192xf32> -> vector<6x192xf32>
    %482 = arith.addf %472, %481 : vector<6x192xf32>
    %c0_482 = arith.constant 0 : index
    %c0_483 = arith.constant 0 : index
    %c3_484 = arith.constant 3 : index
    %c0_485 = arith.constant 0 : index
    %483 = vector.load %arg20[%c0_482, %c0_483, %c3_484, %c0_485] : memref<1x2x6x128xf32, #tpu.memory_space<vmem>>, vector<1x1x3x128xf32>
    %484 = vector.shape_cast %483 : vector<1x1x3x128xf32> to vector<3x128xf32>
    %c0_486 = arith.constant 0 : index
    %c1_487 = arith.constant 1 : index
    %c3_488 = arith.constant 3 : index
    %c0_489 = arith.constant 0 : index
    %485 = vector.load %arg20[%c0_486, %c1_487, %c3_488, %c0_489] : memref<1x2x6x128xf32, #tpu.memory_space<vmem>>, vector<1x1x3x128xf32>
    %486 = vector.shape_cast %485 : vector<1x1x3x128xf32> to vector<3x128xf32>
    %487 = tpu.concatenate %484, %486 in 0 : vector<3x128xf32>, vector<3x128xf32> -> vector<6x128xf32>
    %488 = arith.truncf %487 : vector<6x128xf32> to vector<6x128xbf16>
    %c3_490 = arith.constant 3 : index
    %c0_491 = arith.constant 0 : index
    %c0_492 = arith.constant 0 : index
    %489 = vector.load %arg12[%c3_490, %c0_491, %c0_492] : memref<4x128x192xbf16, #tpu.memory_space<vmem>>, vector<1x128x192xbf16>
    %490 = vector.shape_cast %489 : vector<1x128x192xbf16> to vector<128x192xbf16>
    %cst_493 = arith.constant dense<0.000000e+00> : vector<6x192xf32>
    %491 = tpu.matmul %488, %490, %cst_493 {dimension_numbers = #tpu.dot_dimension_numbers<[1], [0], [0], [1], [0, 0, 1, 1], [], []>} : vector<6x128xbf16>, vector<128x192xbf16>, vector<6x192xf32> -> vector<6x192xf32>
    %492 = arith.addf %482, %491 : vector<6x192xf32>
    %c0_494 = arith.constant 0 : index
    %c0_495 = arith.constant 0 : index
    %493 = vector.load %arg15[%c0_494, %c0_495] : memref<192x64xf32, #tpu.memory_space<vmem>>, vector<192x64xf32>
    %cst_496 = arith.constant dense<0.000000e+00> : vector<192xf32>
    %494 = vector.multi_reduction <add>, %492, %cst_496 [0] : vector<6x192xf32> to vector<192xf32>
    %495 = vector.shape_cast %494 : vector<192xf32> to vector<1x192xf32>
    %cst_497 = arith.constant 0.000000e+00 : f32
    %496 = vector.broadcast %cst_497 : f32 to vector<1x192xf32>
    %497 = arith.addf %496, %495 : vector<1x192xf32>
    %498 = arith.mulf %492, %492 : vector<6x192xf32>
    %cst_498 = arith.constant dense<0.000000e+00> : vector<192xf32>
    %499 = vector.multi_reduction <add>, %498, %cst_498 [0] : vector<6x192xf32> to vector<192xf32>
    %500 = vector.shape_cast %499 : vector<192xf32> to vector<1x192xf32>
    %cst_499 = arith.constant 0.000000e+00 : f32
    %501 = vector.broadcast %cst_499 : f32 to vector<1x192xf32>
    %502 = arith.addf %501, %500 : vector<1x192xf32>
    %cst_500 = arith.constant dense<0.000000e+00> : vector<1x64xf32>
    %503 = tpu.matmul %497, %493, %cst_500 {dimension_numbers = #tpu.dot_dimension_numbers<[1], [0], [0], [1], [0, 0, 1, 1], [], []>} : vector<1x192xf32>, vector<192x64xf32>, vector<1x64xf32> -> vector<1x64xf32>
    %cst_501 = arith.constant 1.800000e+01 : f32
    %504 = vector.broadcast %cst_501 : f32 to vector<1x64xf32>
    %505 = arith.divf %503, %504 : vector<1x64xf32>
    %cst_502 = arith.constant dense<0.000000e+00> : vector<1x64xf32>
    %506 = tpu.matmul %502, %493, %cst_502 {dimension_numbers = #tpu.dot_dimension_numbers<[1], [0], [0], [1], [0, 0, 1, 1], [], []>} : vector<1x192xf32>, vector<192x64xf32>, vector<1x64xf32> -> vector<1x64xf32>
    %cst_503 = arith.constant 1.800000e+01 : f32
    %507 = vector.broadcast %cst_503 : f32 to vector<1x64xf32>
    %508 = arith.divf %506, %507 : vector<1x64xf32>
    %509 = arith.mulf %505, %505 : vector<1x64xf32>
    %510 = arith.subf %508, %509 : vector<1x64xf32>
    %cst_504 = arith.constant 9.99999974E-6 : f32
    %511 = vector.broadcast %cst_504 : f32 to vector<1x64xf32>
    %512 = arith.addf %510, %511 : vector<1x64xf32>
    %513 = math.rsqrt %512 : vector<1x64xf32>
    %514 = tpu.concatenate %505, %505, %505 in 1 : vector<1x64xf32>, vector<1x64xf32>, vector<1x64xf32> -> vector<1x192xf32>
    %515 = tpu.concatenate %513, %513, %513 in 1 : vector<1x64xf32>, vector<1x64xf32>, vector<1x64xf32> -> vector<1x192xf32>
    %c0_505 = arith.constant 0 : index
    %c0_506 = arith.constant 0 : index
    %516 = vector.load %arg13[%c0_505, %c0_506] : memref<1x192xf32, #tpu.memory_space<vmem>>, vector<1x192xf32>
    %517 = arith.mulf %516, %515 : vector<1x192xf32>
    %c0_507 = arith.constant 0 : index
    %c0_508 = arith.constant 0 : index
    %518 = vector.load %arg14[%c0_507, %c0_508] : memref<1x192xf32, #tpu.memory_space<vmem>>, vector<1x192xf32>
    %519 = arith.mulf %514, %517 : vector<1x192xf32>
    %520 = arith.subf %518, %519 : vector<1x192xf32>
    %521 = vector.broadcast %517 : vector<1x192xf32> to vector<6x192xf32>
    %522 = arith.mulf %492, %521 : vector<6x192xf32>
    %523 = vector.broadcast %520 : vector<1x192xf32> to vector<6x192xf32>
    %524 = arith.addf %522, %523 : vector<6x192xf32>
    %cst_509 = arith.constant 0.000000e+00 : f32
    %525 = vector.broadcast %cst_509 : f32 to vector<6x192xf32>
    %526 = arith.cmpf oge, %524, %525 : vector<6x192xf32>
    %cst_510 = arith.constant 2.000000e-01 : f32
    %527 = vector.broadcast %cst_510 : f32 to vector<6x192xf32>
    %528 = arith.mulf %527, %524 : vector<6x192xf32>
    %529 = arith.select %526, %524, %528 : vector<6x192xi1>, vector<6x192xf32>
    %530 = vector.extract_strided_slice %529 {offsets = [0, 0], sizes = [3, 192], strides = [1, 1]} : vector<6x192xf32> to vector<3x192xf32>
    %cst_511 = arith.constant dense<0.000000e+00> : vector<192xf32>
    %531 = vector.multi_reduction <add>, %530, %cst_511 [0] : vector<3x192xf32> to vector<192xf32>
    %532 = vector.shape_cast %531 : vector<192xf32> to vector<1x192xf32>
    %cst_512 = arith.constant 3.000000e+00 : f32
    %533 = vector.broadcast %cst_512 : f32 to vector<1x192xf32>
    %534 = arith.divf %532, %533 : vector<1x192xf32>
    %535 = vector.extract_strided_slice %529 {offsets = [3, 0], sizes = [3, 192], strides = [1, 1]} : vector<6x192xf32> to vector<3x192xf32>
    %cst_513 = arith.constant dense<0.000000e+00> : vector<192xf32>
    %536 = vector.multi_reduction <add>, %535, %cst_513 [0] : vector<3x192xf32> to vector<192xf32>
    %537 = vector.shape_cast %536 : vector<192xf32> to vector<1x192xf32>
    %cst_514 = arith.constant 3.000000e+00 : f32
    %538 = vector.broadcast %cst_514 : f32 to vector<1x192xf32>
    %539 = arith.divf %537, %538 : vector<1x192xf32>
    %540 = tpu.concatenate %534, %539 in 0 : vector<1x192xf32>, vector<1x192xf32> -> vector<2x192xf32>
    %c0_515 = arith.constant 0 : index
    %c0_516 = arith.constant 0 : index
    %541 = vector.load %arg15[%c0_515, %c0_516] : memref<192x64xf32, #tpu.memory_space<vmem>>, vector<192x64xf32>
    %cst_517 = arith.constant dense<0.000000e+00> : vector<2x64xf32>
    %542 = tpu.matmul %540, %541, %cst_517 {dimension_numbers = #tpu.dot_dimension_numbers<[1], [0], [0], [1], [0, 0, 1, 1], [], []>} : vector<2x192xf32>, vector<192x64xf32>, vector<2x64xf32> -> vector<2x64xf32>
    %cst_518 = arith.constant 3.000000e+00 : f32
    %543 = vector.broadcast %cst_518 : f32 to vector<2x64xf32>
    %544 = arith.divf %542, %543 : vector<2x64xf32>
    %c0_519 = arith.constant 0 : index
    %c0_520 = arith.constant 0 : index
    %545 = vector.load %arg16[%c0_519, %c0_520] : memref<1x64xf32, #tpu.memory_space<vmem>>, vector<1x64xf32>
    %546 = vector.broadcast %545 : vector<1x64xf32> to vector<2x64xf32>
    %547 = arith.mulf %544, %546 : vector<2x64xf32>
    %cst_521 = arith.constant dense<0.000000e+00> : vector<2xf32>
    %548 = vector.multi_reduction <add>, %547, %cst_521 [1] : vector<2x64xf32> to vector<2xf32>
    %549 = vector.shape_cast %548 : vector<2xf32> to vector<2x1xf32>
    %c0_522 = arith.constant 0 : index
    %c0_523 = arith.constant 0 : index
    %550 = vector.load %arg17[%c0_522, %c0_523] : memref<2x1xf32, #tpu.memory_space<vmem>>, vector<2x1xf32>
    tpu.vector_store %arg17[%c0_522, %c0_523], %549 {strides = array<i32>} : memref<2x1xf32, #tpu.memory_space<vmem>>, vector<2x1xf32>,
    return
  }
  func.func @transform_0(%arg0: i32) -> (i32, i32, i32, i32) {
    %c0_i32 = arith.constant 0 : i32
    %c0_i32_0 = arith.constant 0 : i32
    %c0_i32_1 = arith.constant 0 : i32
    %c0_i32_2 = arith.constant 0 : i32
    %c0_i32_3 = arith.constant 0 : i32
    return %c0_i32, %c0_i32_0, %c0_i32_1, %c0_i32_2 : i32, i32, i32, i32
  }
  func.func @transform_1(%arg0: i32) -> (i32, i32, i32) {
    %c0_i32 = arith.constant 0 : i32
    %c0_i32_0 = arith.constant 0 : i32
    %c0_i32_1 = arith.constant 0 : i32
    %c0_i32_2 = arith.constant 0 : i32
    return %c0_i32, %c0_i32_0, %c0_i32_1 : i32, i32, i32
  }
  func.func @transform_2(%arg0: i32) -> (i32, i32) {
    %c0_i32 = arith.constant 0 : i32
    %c0_i32_0 = arith.constant 0 : i32
    %c0_i32_1 = arith.constant 0 : i32
    return %c0_i32, %c0_i32_0 : i32, i32
  }
  func.func @transform_3(%arg0: i32) -> (i32, i32, i32) {
    %c0_i32 = arith.constant 0 : i32
    %c0_i32_0 = arith.constant 0 : i32
    %c0_i32_1 = arith.constant 0 : i32
    %c0_i32_2 = arith.constant 0 : i32
    return %c0_i32, %c0_i32_0, %c0_i32_1 : i32, i32, i32
  }
  func.func @transform_4(%arg0: i32) -> (i32, i32) {
    %c0_i32 = arith.constant 0 : i32
    %c0_i32_0 = arith.constant 0 : i32
    %c0_i32_1 = arith.constant 0 : i32
    return %c0_i32, %c0_i32_0 : i32, i32
  }
  func.func @transform_5(%arg0: i32) -> (i32, i32) {
    %c0_i32 = arith.constant 0 : i32
    %c0_i32_0 = arith.constant 0 : i32
    %c0_i32_1 = arith.constant 0 : i32
    return %c0_i32, %c0_i32_0 : i32, i32
  }
  func.func @transform_6(%arg0: i32) -> (i32, i32) {
    %c0_i32 = arith.constant 0 : i32
    %c0_i32_0 = arith.constant 0 : i32
    %c0_i32_1 = arith.constant 0 : i32
    return %c0_i32, %c0_i32_0 : i32, i32
  }
  func.func @transform_7(%arg0: i32) -> (i32, i32, i32) {
    %c0_i32 = arith.constant 0 : i32
    %c0_i32_0 = arith.constant 0 : i32
    %c0_i32_1 = arith.constant 0 : i32
    %c0_i32_2 = arith.constant 0 : i32
    return %c0_i32, %c0_i32_0, %c0_i32_1 : i32, i32, i32
  }
  func.func @transform_8(%arg0: i32) -> (i32, i32) {
    %c0_i32 = arith.constant 0 : i32
    %c0_i32_0 = arith.constant 0 : i32
    %c0_i32_1 = arith.constant 0 : i32
    return %c0_i32, %c0_i32_0 : i32, i32
  }
  func.func @transform_9(%arg0: i32) -> (i32, i32) {
    %c0_i32 = arith.constant 0 : i32
    %c0_i32_0 = arith.constant 0 : i32
    %c0_i32_1 = arith.constant 0 : i32
    return %c0_i32, %c0_i32_0 : i32, i32
  }
  func.func @transform_10(%arg0: i32) -> (i32, i32) {
    %c0_i32 = arith.constant 0 : i32
    %c0_i32_0 = arith.constant 0 : i32
    %c0_i32_1 = arith.constant 0 : i32
    return %c0_i32, %c0_i32_0 : i32, i32
  }
  func.func @transform_11(%arg0: i32) -> (i32, i32, i32) {
    %c0_i32 = arith.constant 0 : i32
    %c0_i32_0 = arith.constant 0 : i32
    %c0_i32_1 = arith.constant 0 : i32
    %c0_i32_2 = arith.constant 0 : i32
    return %c0_i32, %c0_i32_0, %c0_i32_1 : i32, i32, i32
  }
  func.func @transform_12(%arg0: i32) -> (i32, i32) {
    %c0_i32 = arith.constant 0 : i32
    %c0_i32_0 = arith.constant 0 : i32
    %c0_i32_1 = arith.constant 0 : i32
    return %c0_i32, %c0_i32_0 : i32, i32
  }
  func.func @transform_13(%arg0: i32) -> (i32, i32) {
    %c0_i32 = arith.constant 0 : i32
    %c0_i32_0 = arith.constant 0 : i32
    %c0_i32_1 = arith.constant 0 : i32
    return %c0_i32, %c0_i32_0 : i32, i32
  }
  func.func @transform_14(%arg0: i32) -> (i32, i32) {
    %c0_i32 = arith.constant 0 : i32
    %c0_i32_0 = arith.constant 0 : i32
    %c0_i32_1 = arith.constant 0 : i32
    return %c0_i32, %c0_i32_0 : i32, i32
  }
  func.func @transform_15(%arg0: i32) -> (i32, i32) {
    %c0_i32 = arith.constant 0 : i32
    %c0_i32_0 = arith.constant 0 : i32
    %c0_i32_1 = arith.constant 0 : i32
    return %c0_i32, %c0_i32_0 : i32, i32
  }
  func.func @transform_16(%arg0: i32) -> (i32, i32) {
    %c0_i32 = arith.constant 0 : i32
    %c0_i32_0 = arith.constant 0 : i32
    %c0_i32_1 = arith.constant 0 : i32
    return %c0_i32, %c0_i32_0 : i32, i32
  }
}

</mosaic_0001>

<bundles_post_ra>
// kernel: base_discriminator_forward.1
= control target key start
LH: loop header
LB: loop body
LE: loop exit
PB: predicated region body
PF: predicated region fallthrough
CT: control target
= control target key end

     0   :  { %v5424_v0 = vmov 0.0   ;;  %vm5425_vm0 = vmmov 0   ;;  %vm74_vm1 = vcmask 1043456   ;;  %vm147_vm2 = vcmask 785408   ;;  %s5428_s18 = smov 16   ;;  %s5429_s19 = smov 48   ;;  %s6993_s1 = inlined_call_operand.vmem [shape: bf16[4,96,128], index: 1, kind: input, shape index: {}]   ;;  %s6994_s0 = inlined_call_operand.vmem [shape: f32[8,2,5,96], index: 0, kind: input, shape index: {}]   ;;  %s6995_s3 = inlined_call_operand.vmem [shape: bf16[4,128,128], index: 3, kind: input, shape index: {}]   ;;  %s6996_s2 = inlined_call_operand.vmem [shape: f32[1,128], index: 2, kind: input, shape index: {}]   ;;  %s6997_s6 = inlined_call_operand.vmem [shape: f32[128,16], index: 6, kind: input, shape index: {}]   ;;  %s6998_s7 = inlined_call_operand.vmem [shape: bf16[4,128,128], index: 7, kind: input, shape index: {}]   ;;  %s6999_s4 = inlined_call_operand.vmem [shape: f32[1,128], index: 4, kind: input, shape index: {}]   ;;  %s7000_s10 = inlined_call_operand.vmem [shape: f32[128,32], index: 10, kind: input, shape index: {}]   ;;  %s7001_s5 = inlined_call_operand.vmem [shape: f32[1,128], index: 5, kind: input, shape index: {}]   ;;  %s7002_s11 = inlined_call_operand.vmem [shape: bf16[4,128,192], index: 11, kind: input, shape index: {}]   ;;  %s7003_s8 = inlined_call_operand.vmem [shape: f32[1,128], index: 8, kind: input, shape index: {}]   ;;  %s7004_s14 = inlined_call_operand.vmem [shape: f32[192,64], index: 14, kind: input, shape index: {}]   ;;  %s7005_s9 = inlined_call_operand.vmem [shape: f32[1,128], index: 9, kind: input, shape index: {}]   ;;  %s7006_s12 = inlined_call_operand.vmem [shape: f32[1,192], index: 12, kind: input, shape index: {}]   ;;  %s7007_s13 = inlined_call_operand.vmem [shape: f32[1,192], index: 13, kind: input, shape index: {}]   ;;  %s7008_s15 = inlined_call_operand.vmem [shape: f32[1,64], index: 15, kind: input, shape index: {}]   ;;  %s7009_s16 = inlined_call_operand.vmem [shape: f32[2,1], index: 16, kind: output, shape index: {}]  }
   0x1   :  { %7011 = sst [smem:[#allocation5_spill]] %s6993_s1  ;;  %4334 = vmatprep.subr.bf16.mxu0 %v5424_v0  ;;  %54 = vst [vmem:[#allocation2] sm:$0x1f] %v5424_v0  ;;  %55 = vst [vmem:[#allocation2 + $0x8] sm:$0x1f] %v5424_v0  ;;  %4350 = vmatprep.subr.bf16.mxu1 %v5424_v0  ;;  %s5430_s20 = smov 64  }
   0x2   :  { %56 = vst [vmem:[#allocation2 + $0x10] sm:$0x1f] %v5424_v0  ;;  %57 = vst [vmem:[#allocation2 + $0x18] sm:$0x1f] %v5424_v0  ;;  %s7012_s23 = sld [smem:[#allocation5_spill]]  ;;  %4346 = vmatprep.mubr.msk.bf16.mxu0 %vm5425_vm0, %v5424_v0  ;;  %4362 = vmatprep.mubr.msk.bf16.mxu1 %vm5425_vm0, %v5424_v0  ;;  %s5432_s28 = smov 96  }
   0x3   :  { %58 = vst [vmem:[#allocation2 + $0x20] sm:$0x1f] %v5424_v0  ;;  %59 = vst [vmem:[#allocation2 + $0x28] sm:$0x1f] %v5424_v0  ;;  %v3677_v10 = vld [vmem:[%s6994_s0 + $0x18] sm:$0xf] }
   0x4   :  { %60 = vst [vmem:[#allocation2 + $0x30] sm:$0x1f] %v5424_v0  ;;  %61 = vst [vmem:[#allocation2 + $0x38] sm:$0x1f] %v5424_v0  ;;  %v3676_v12 = vld [vmem:[%s6994_s0 + $0x10] sm:$0xf] }
   0x5   :  { %62 = vst [vmem:[#allocation3] sm:$0x1f] %v5424_v0  ;;  %63 = vst [vmem:[#allocation3 + $0x8] sm:$0x1f] %v5424_v0  ;;  %v3675_v13 = vld [vmem:[%s6994_s0 + $0x8] sm:$0xf] }
   0x6   :  { %64 = vst [vmem:[#allocation3 + $0x10] sm:$0x1f] %v5424_v0  ;;  %65 = vst [vmem:[#allocation3 + $0x18] sm:$0x1f] %v5424_v0  ;;  %v94_v14 = vrot.slane %v3677_v10, 4  ;;  %v72_v15 = vrot.slane %v3675_v13, 4 }
   0x7   :  { %66 = vst [vmem:[#allocation4] sm:$0x3f] %v5424_v0  ;;  %67 = vst [vmem:[#allocation4 + $0x8] sm:$0x3f] %v5424_v0  ;;  %v68_v16 = vld [vmem:[%s6994_s0] sm:$0xf] }
   0x8   :  { %v5540_v1 = vld [vmem:[%s7012_s23 + $0x30] sm:$0xff]   ;;  %v5545_v2 = vld [vmem:[%s7012_s23] sm:$0xff]   ;;  %v5555_v3 = vld [vmem:[%s7012_s23 + $0x38] sm:$0xff]   ;;  %v96_v18 = vsel %vm74_vm1, %v3676_v12, %v94_v14  ;;  %v75_v20 = vsel %vm74_vm1, %v68_v16, %v72_v15  ;;  %s5433_s30 = smov 112   ;;  %vm1906_vm7 = vcmask 130048   ;;  %vm1908_vm8 = vcmask 261120  }
   0x9   :  { %4335 = vmatpush3.bf16.msra.mxu0 %v5540_v1  ;;  %4351 = vmatpush3.bf16.msra.mxu1 %v5545_v2  ;;  %v5562_v4 = vld [vmem:[%s7012_s23 + $0x8] sm:$0xff]   ;;  %v5569_v5 = vld [vmem:[%s7012_s23 + $0x40] sm:$0xff]   ;;  %v5576_v6 = vld [vmem:[%s7012_s23 + $0x10] sm:$0xff]   ;;  %v97_v21 = vpack.c.bf16 %v96_v18, %v96_v18  ;;  %v76_v22 = vpack.c.bf16 %v75_v20, %v75_v20  ;;  %vm1910_vm9 = vcmask 392192   ;;  %vm1912_vm10 = vcmask 523264  }
   0xa   :  { %4336 = vmatprep.subr.bf16.mxu0 %v5424_v0  ;;  %4352 = vmatprep.subr.bf16.mxu1 %v5424_v0  ;;  %v5583_v7 = vld [vmem:[%s7012_s23 + $0x48] sm:$0xff]   ;;  %v5590_v8 = vld [vmem:[%s7012_s23 + $0x18] sm:$0xff]   ;;  %v5596_v9 = vld [vmem:[%s7012_s23 + $0x50] sm:$0xff]   ;;  %vm1914_vm11 = vcmask 654336   ;;  %vm1917_vm12 = vcmask 916480  }
   0xb   :  { %v5604_v11 = vld [vmem:[%s7012_s23 + $0x20] sm:$0xff]   ;;  %v5623_v17 = vld [vmem:[%s7012_s23 + $0x58] sm:$0xff]   ;;  %v5631_v19 = vld [vmem:[%s7012_s23 + $0x28] sm:$0xff]  }
   0xc   :  { %v5639_v23 = vld [vmem:[%s7012_s23 + $0x60] sm:$0xff]   ;;  %v5646_v24 = vld [vmem:[%s7012_s23 + $0x90] sm:$0xff]   ;;  %v5655_v25 = vld [vmem:[%s7012_s23 + $0x68] sm:$0xff]  }
   0xd   :  { %4337 = vmatpush3.bf16.msra.mxu0 %v5555_v3  ;;  %4353 = vmatpush3.bf16.msra.mxu1 %v5562_v4  ;;  %v5662_v26 = vld [vmem:[%s7012_s23 + $0x98] sm:$0xff]   ;;  %v5673_v27 = vld [vmem:[%s7012_s23 + $0x70] sm:$0xff]   ;;  %v5680_v28 = vld [vmem:[%s7012_s23 + $0xa0] sm:$0xff]  }
   0xe   :  { %4338 = vmatprep.subr.bf16.mxu0 %v5424_v0  ;;  %4354 = vmatprep.subr.bf16.mxu1 %v5424_v0  ;;  %v5687_v29 = vld [vmem:[%s7012_s23 + $0x78] sm:$0xff]   ;;  %v5694_v30 = vld [vmem:[%s7012_s23 + $0xa8] sm:$0xff]   ;;  %v5707_v33 = vld [vmem:[%s7012_s23 + $0x80] sm:$0xff]  }
   0xf   :  { %v3705_v31 = vld [vmem:[%s6994_s0 + $0x28] sm:$0xf]  ;;  %v3726_v32 = vld [vmem:[%s6994_s0 + $0x38] sm:$0xf]  ;;  %v5714_v35 = vld [vmem:[%s7012_s23 + $0xb0] sm:$0xff]  }
  0x10   :  { %v275_v34 = vrot.slane %v3705_v31, 4  ;;  %v3704_v36 = vld [vmem:[%s6994_s0 + $0x20] sm:$0xf]  ;;  %v377_v37 = vrot.slane %v3726_v32, 4  ;;  %v3725_v38 = vld [vmem:[%s6994_s0 + $0x30] sm:$0xf] }
  0x11   :  { %4339 = vmatpush3.bf16.msra.mxu0 %v5569_v5  ;;  %4355 = vmatpush3.bf16.msra.mxu1 %v5576_v6  ;;  %v5727_v39 = vld [vmem:[%s7012_s23 + $0x88] sm:$0xff]   ;;  %v5735_v41 = vld [vmem:[%s7012_s23 + $0xb8] sm:$0xff]   ;;  %v3748_v48 = vld [vmem:[%s6994_s0 + $0x40] sm:$0xf] }
  0x12   :  { %4340 = vmatprep.subr.bf16.mxu0 %v5424_v0  ;;  %4356 = vmatprep.subr.bf16.mxu1 %v5424_v0  ;;  %v277_v40 = vsel %vm74_vm1, %v3704_v36, %v275_v34  ;;  %v379_v42 = vsel %vm74_vm1, %v3725_v38, %v377_v37  ;;  %v3749_v45 = vld [vmem:[%s6994_s0 + $0x48] sm:$0xf]  ;;  %v3752_v46 = vld [vmem:[%s6994_s0 + $0x58] sm:$0xf]  ;;  %v3751_v50 = vld [vmem:[%s6994_s0 + $0x50] sm:$0xf] }
  0x13   :  { %v278_v43 = vpack.c.bf16 %v277_v40, %v277_v40  ;;  %v380_v44 = vpack.c.bf16 %v379_v42, %v379_v42  ;;  %v559_v47 = vrot.slane %v3749_v45, 4  ;;  %v612_v49 = vrot.slane %v3752_v46, 4  ;;  %v3757_v55 = vld [vmem:[%s6994_s0 + $0x68] sm:$0xf]  ;;  %v3760_v57 = vld [vmem:[%s6994_s0 + $0x78] sm:$0xf] }
  0x14   :  { %v745_v56 = vrot.slane %v3757_v55, 4  ;;  %v3756_v58 = vld [vmem:[%s6994_s0 + $0x60] sm:$0xf]  ;;  %v798_v59 = vrot.slane %v3760_v57, 4  ;;  %v3759_v60 = vld [vmem:[%s6994_s0 + $0x70] sm:$0xf] }
  0x15   :  { %4341 = vmatpush3.bf16.msra.mxu0 %v5583_v7  ;;  %4357 = vmatpush3.bf16.msra.mxu1 %v5590_v8  ;;  %v561_v51 = vsel %vm74_vm1, %v3748_v48, %v559_v47  ;;  %v614_v52 = vsel %vm74_vm1, %v3751_v50, %v612_v49  ;;  %v5258_v12 = vld [vmem:[%s6995_s3 + $0x40] sm:$0xff]   ;;  %v5259_v13 = vld [vmem:[%s6995_s3 + $0x48] sm:$0xff]   ;;  %v5260_v14 = vld [vmem:[%s6995_s3 + $0x50] sm:$0xff]  }
  0x16   :  { %4342 = vmatprep.subr.bf16.mxu0 %v5424_v0  ;;  %4358 = vmatprep.subr.bf16.mxu1 %v5424_v0  ;;  %v562_v53 = vpack.c.bf16 %v561_v51, %v561_v51  ;;  %v615_v54 = vpack.c.bf16 %v614_v52, %v614_v52  ;;  %v747_v61 = vsel %vm74_vm1, %v3756_v58, %v745_v56  ;;  %v5261_v15 = vld [vmem:[%s6995_s3 + $0x58] sm:$0xff]   ;;  %v5262_v16 = vld [vmem:[%s6995_s3 + $0x60] sm:$0xff]   ;;  %v5264_v18 = vld [vmem:[%s6995_s3 + $0x70] sm:$0xff]  }
  0x17   :  { %v800_v62 = vsel %vm74_vm1, %v3759_v60, %v798_v59  ;;  %v748_v63 = vpack.c.bf16 %v747_v61, %v747_v61  ;;  %v6021_v48 = vld [vmem:[%s6995_s3] sm:$0xff]   ;;  %v6030_v55 = vld [vmem:[%s6995_s3 + $0x8] sm:$0xff]   ;;  %v6037_v59 = vld [vmem:[%s6995_s3 + $0x10] sm:$0xff]  }
  0x18   :  { %v801_v10 = vpack.c.bf16 %v800_v62, %v800_v62  ;;  %v6044_v60 = vld [vmem:[%s6995_s3 + $0x18] sm:$0xff]   ;;  %v6051_v61 = vld [vmem:[%s6995_s3 + $0x20] sm:$0xff]   ;;  %v6058_v62 = vld [vmem:[%s6995_s3 + $0x28] sm:$0xff]  }
  0x19   :  { %4343 = vmatpush3.bf16.msra.mxu0 %v5596_v9  ;;  %4359 = vmatpush3.bf16.msra.mxu1 %v5604_v11 }
  0x1a   :  { %4344 = vmatprep.subr.bf16.mxu0 %v5424_v0  ;;  %4360 = vmatprep.subr.bf16.mxu1 %v5424_v0 }
  0x1d   :  { %4345 = vmatpush3.bf16.msra.mxu0 %v5623_v17  ;;  %4361 = vmatpush3.bf16.msra.mxu1 %v5631_v19 }
  0x1e   :  { %4366 = vmatprep.subr.bf16.mxu0 %v5424_v0  ;;  %4382 = vmatprep.subr.bf16.mxu1 %v5424_v0 }
  0x20   :  { %4347 = vmatmul.mubr.msk.bf16.vlgmr.msra.gmra.mrb[0].mxu0 %vm147_vm2, %v97_v21  ;;  %4363 = vmatmul.mubr.msk.bf16.vlgmr.msra.gmra.mrb[0].mxu1 %vm147_vm2, %v76_v22 }
  0x21   :  { %4367 = vmatpush3.bf16.msra.mxu0 %v5639_v23  ;;  %4383 = vmatpush3.bf16.msra.mxu1 %v5646_v24 }
  0x22   :  { %4368 = vmatprep.subr.bf16.mxu0 %v5424_v0  ;;  %4384 = vmatprep.subr.bf16.mxu1 %v5424_v0 }
  0x23   :  { %4378 = vmatprep.mubr.msk.bf16.mxu0 %vm5425_vm0, %v5424_v0  ;;  %4394 = vmatprep.mubr.msk.bf16.mxu1 %vm5425_vm0, %v5424_v0 }
  0x25   :  { %4369 = vmatpush3.bf16.msra.mxu0 %v5655_v25  ;;  %4385 = vmatpush3.bf16.msra.mxu1 %v5662_v26 }
  0x26   :  { %4370 = vmatprep.subr.bf16.mxu0 %v5424_v0  ;;  %4386 = vmatprep.subr.bf16.mxu1 %v5424_v0 }
  0x29   :  { %4371 = vmatpush3.bf16.msra.mxu0 %v5673_v27  ;;  %4387 = vmatpush3.bf16.msra.mxu1 %v5680_v28 }
  0x2a   :  { %4372 = vmatprep.subr.bf16.mxu0 %v5424_v0  ;;  %4388 = vmatprep.subr.bf16.mxu1 %v5424_v0 }
  0x2d   :  { %4373 = vmatpush3.bf16.msra.mxu0 %v5687_v29  ;;  %4389 = vmatpush3.bf16.msra.mxu1 %v5694_v30 }
  0x2e   :  { %4374 = vmatprep.subr.bf16.mxu0 %v5424_v0  ;;  %4390 = vmatprep.subr.bf16.mxu1 %v5424_v0 }
  0x31   :  { %4375 = vmatpush3.bf16.msra.mxu0 %v5707_v33  ;;  %4391 = vmatpush3.bf16.msra.mxu1 %v5714_v35 }
  0x32   :  { %4376 = vmatprep.subr.bf16.mxu0 %v5424_v0  ;;  %4392 = vmatprep.subr.bf16.mxu1 %v5424_v0 }
  0x35   :  { %4377 = vmatpush3.bf16.msra.mxu0 %v5727_v39  ;;  %4393 = vmatpush3.bf16.msra.mxu1 %v5735_v41 }
  0x36   :  { %4398 = vmatprep.subr.bf16.mxu0 %v5424_v0  ;;  %4414 = vmatprep.subr.bf16.mxu1 %v5424_v0 }
  0x38   :  { %4379 = vmatmul.mubr.msk.bf16.vlgmr.msra.gmra.mrb[4].mxu0 %vm147_vm2, %v278_v43  ;;  %4395 = vmatmul.mubr.msk.bf16.vlgmr.msra.gmra.mrb[4].mxu1 %vm147_vm2, %v380_v44 }
  0x39   :  { %4399 = vmatpush3.bf16.msra.mxu0 %v5540_v1  ;;  %4415 = vmatpush3.bf16.msra.mxu1 %v5545_v2 }
  0x3a   :  { %4400 = vmatprep.subr.bf16.mxu0 %v5424_v0  ;;  %4416 = vmatprep.subr.bf16.mxu1 %v5424_v0 }
  0x3b   :  { %4410 = vmatprep.mubr.msk.bf16.mxu0 %vm5425_vm0, %v5424_v0  ;;  %4426 = vmatprep.mubr.msk.bf16.mxu1 %vm5425_vm0, %v5424_v0 }
  0x3d   :  { %4401 = vmatpush3.bf16.msra.mxu0 %v5555_v3  ;;  %4417 = vmatpush3.bf16.msra.mxu1 %v5562_v4 }
  0x3e   :  { %4402 = vmatprep.subr.bf16.mxu0 %v5424_v0  ;;  %4418 = vmatprep.subr.bf16.mxu1 %v5424_v0 }
  0x41   :  { %4403 = vmatpush3.bf16.msra.mxu0 %v5569_v5  ;;  %4419 = vmatpush3.bf16.msra.mxu1 %v5576_v6 }
  0x42   :  { %4404 = vmatprep.subr.bf16.mxu0 %v5424_v0  ;;  %4420 = vmatprep.subr.bf16.mxu1 %v5424_v0 }
  0x45   :  { %4405 = vmatpush3.bf16.msra.mxu0 %v5583_v7  ;;  %4421 = vmatpush3.bf16.msra.mxu1 %v5590_v8 }
  0x46   :  { %4406 = vmatprep.subr.bf16.mxu0 %v5424_v0  ;;  %4422 = vmatprep.subr.bf16.mxu1 %v5424_v0 }
  0x49   :  { %4407 = vmatpush3.bf16.msra.mxu0 %v5596_v9  ;;  %4423 = vmatpush3.bf16.msra.mxu1 %v5604_v11 }
  0x4a   :  { %4408 = vmatprep.subr.bf16.mxu0 %v5424_v0  ;;  %4424 = vmatprep.subr.bf16.mxu1 %v5424_v0 }
  0x4d   :  { %4409 = vmatpush3.bf16.msra.mxu0 %v5623_v17  ;;  %4425 = vmatpush3.bf16.msra.mxu1 %v5631_v19 }
  0x4e   :  { %4430 = vmatprep.subr.bf16.mxu0 %v5424_v0  ;;  %4446 = vmatprep.subr.bf16.mxu1 %v5424_v0 }
  0x50   :  { %4411 = vmatmul.mubr.msk.bf16.vlgmr.msra.gmra.mrb[8].mxu0 %vm147_vm2, %v380_v44  ;;  %4427 = vmatmul.mubr.msk.bf16.vlgmr.msra.gmra.mrb[8].mxu1 %vm147_vm2, %v278_v43 }
  0x51   :  { %4431 = vmatpush3.bf16.msra.mxu0 %v5639_v23  ;;  %4447 = vmatpush3.bf16.msra.mxu1 %v5646_v24 }
  0x52   :  { %4432 = vmatprep.subr.bf16.mxu0 %v5424_v0  ;;  %4448 = vmatprep.subr.bf16.mxu1 %v5424_v0 }
  0x53   :  { %4442 = vmatprep.mubr.msk.bf16.mxu0 %vm5425_vm0, %v5424_v0  ;;  %4458 = vmatprep.mubr.msk.bf16.mxu1 %vm5425_vm0, %v5424_v0 }
  0x55   :  { %4433 = vmatpush3.bf16.msra.mxu0 %v5655_v25  ;;  %4449 = vmatpush3.bf16.msra.mxu1 %v5662_v26 }
  0x56   :  { %4434 = vmatprep.subr.bf16.mxu0 %v5424_v0  ;;  %4450 = vmatprep.subr.bf16.mxu1 %v5424_v0 }
  0x59   :  { %4435 = vmatpush3.bf16.msra.mxu0 %v5673_v27  ;;  %4451 = vmatpush3.bf16.msra.mxu1 %v5680_v28 }
  0x5a   :  { %4436 = vmatprep.subr.bf16.mxu0 %v5424_v0  ;;  %4452 = vmatprep.subr.bf16.mxu1 %v5424_v0 }
  0x5d   :  { %4437 = vmatpush3.bf16.msra.mxu0 %v5687_v29  ;;  %4453 = vmatpush3.bf16.msra.mxu1 %v5694_v30 }
  0x5e   :  { %4438 = vmatprep.subr.bf16.mxu0 %v5424_v0  ;;  %4454 = vmatprep.subr.bf16.mxu1 %v5424_v0 }
  0x61   :  { %4439 = vmatpush3.bf16.msra.mxu0 %v5707_v33  ;;  %4455 = vmatpush3.bf16.msra.mxu1 %v5714_v35 }
  0x62   :  { %4440 = vmatprep.subr.bf16.mxu0 %v5424_v0  ;;  %4456 = vmatprep.subr.bf16.mxu1 %v5424_v0 }
  0x65   :  { %4441 = vmatpush3.bf16.msra.mxu0 %v5727_v39  ;;  %4457 = vmatpush3.bf16.msra.mxu1 %v5735_v41 }
  0x66   :  { %4462 = vmatprep.subr.bf16.mxu0 %v5424_v0  ;;  %4478 = vmatprep.subr.bf16.mxu1 %v5424_v0 }
  0x68   :  { %4443 = vmatmul.mubr.msk.bf16.vlgmr.msra.gmra.mrb[12].mxu0 %vm147_vm2, %v562_v53  ;;  %4459 = vmatmul.mubr.msk.bf16.vlgmr.msra.gmra.mrb[12].mxu1 %vm147_vm2, %v615_v54 }
  0x69   :  { %4463 = vmatpush3.bf16.msra.mxu0 %v5540_v1  ;;  %4479 = vmatpush3.bf16.msra.mxu1 %v5545_v2 }
  0x6a   :  { %4464 = vmatprep.subr.bf16.mxu0 %v5424_v0  ;;  %4480 = vmatprep.subr.bf16.mxu1 %v5424_v0 }
  0x6b   :  { %4474 = vmatprep.mubr.msk.bf16.mxu0 %vm5425_vm0, %v5424_v0  ;;  %4490 = vmatprep.mubr.msk.bf16.mxu1 %vm5425_vm0, %v5424_v0 }
  0x6d   :  { %4465 = vmatpush3.bf16.msra.mxu0 %v5555_v3  ;;  %4481 = vmatpush3.bf16.msra.mxu1 %v5562_v4 }
  0x6e   :  { %4466 = vmatprep.subr.bf16.mxu0 %v5424_v0  ;;  %4482 = vmatprep.subr.bf16.mxu1 %v5424_v0 }
  0x71   :  { %4467 = vmatpush3.bf16.msra.mxu0 %v5569_v5  ;;  %4483 = vmatpush3.bf16.msra.mxu1 %v5576_v6 }
  0x72   :  { %4468 = vmatprep.subr.bf16.mxu0 %v5424_v0  ;;  %4484 = vmatprep.subr.bf16.mxu1 %v5424_v0 }
  0x75   :  { %4469 = vmatpush3.bf16.msra.mxu0 %v5583_v7  ;;  %4485 = vmatpush3.bf16.msra.mxu1 %v5590_v8 }
  0x76   :  { %4470 = vmatprep.subr.bf16.mxu0 %v5424_v0  ;;  %4486 = vmatprep.subr.bf16.mxu1 %v5424_v0 }
  0x79   :  { %4471 = vmatpush3.bf16.msra.mxu0 %v5596_v9  ;;  %4487 = vmatpush3.bf16.msra.mxu1 %v5604_v11 }
  0x7a   :  { %4472 = vmatprep.subr.bf16.mxu0 %v5424_v0  ;;  %4488 = vmatprep.subr.bf16.mxu1 %v5424_v0 }
  0x7d   :  { %4473 = vmatpush3.bf16.msra.mxu0 %v5623_v17  ;;  %4489 = vmatpush3.bf16.msra.mxu1 %v5631_v19 }
  0x7e   :  { %4494 = vmatprep.subr.bf16.mxu0 %v5424_v0  ;;  %4510 = vmatprep.subr.bf16.mxu1 %v5424_v0 }
  0x80   :  { %4475 = vmatmul.mubr.msk.bf16.vlgmr.msra.gmra.mrb[16].mxu0 %vm147_vm2, %v615_v54  ;;  %4491 = vmatmul.mubr.msk.bf16.vlgmr.msra.gmra.mrb[16].mxu1 %vm147_vm2, %v562_v53 }
  0x81   :  { %4495 = vmatpush3.bf16.msra.mxu0 %v5639_v23  ;;  %4511 = vmatpush3.bf16.msra.mxu1 %v5646_v24 }
  0x82   :  { %4496 = vmatprep.subr.bf16.mxu0 %v5424_v0  ;;  %4512 = vmatprep.subr.bf16.mxu1 %v5424_v0 }
  0x83   :  { %4506 = vmatprep.mubr.msk.bf16.mxu0 %vm5425_vm0, %v5424_v0  ;;  %4522 = vmatprep.mubr.msk.bf16.mxu1 %vm5425_vm0, %v5424_v0 }
  0x85   :  { %4497 = vmatpush3.bf16.msra.mxu0 %v5655_v25  ;;  %4513 = vmatpush3.bf16.msra.mxu1 %v5662_v26 }
  0x86   :  { %4498 = vmatprep.subr.bf16.mxu0 %v5424_v0  ;;  %4514 = vmatprep.subr.bf16.mxu1 %v5424_v0 }
  0x89   :  { %4499 = vmatpush3.bf16.msra.mxu0 %v5673_v27  ;;  %4515 = vmatpush3.bf16.msra.mxu1 %v5680_v28 }
  0x8a   :  { %4500 = vmatprep.subr.bf16.mxu0 %v5424_v0  ;;  %4516 = vmatprep.subr.bf16.mxu1 %v5424_v0 }
  0x8d   :  { %4501 = vmatpush3.bf16.msra.mxu0 %v5687_v29  ;;  %4517 = vmatpush3.bf16.msra.mxu1 %v5694_v30 }
  0x8e   :  { %4502 = vmatprep.subr.bf16.mxu0 %v5424_v0  ;;  %4518 = vmatprep.subr.bf16.mxu1 %v5424_v0 }
  0x91   :  { %4503 = vmatpush3.bf16.msra.mxu0 %v5707_v33  ;;  %4519 = vmatpush3.bf16.msra.mxu1 %v5714_v35 }
  0x92   :  { %4504 = vmatprep.subr.bf16.mxu0 %v5424_v0  ;;  %4520 = vmatprep.subr.bf16.mxu1 %v5424_v0 }
  0x95   :  { %4505 = vmatpush3.bf16.msra.mxu0 %v5727_v39  ;;  %4521 = vmatpush3.bf16.msra.mxu1 %v5735_v41 }
  0x96   :  { %4526 = vmatprep.subr.bf16.mxu0 %v5424_v0  ;;  %4542 = vmatprep.subr.bf16.mxu1 %v5424_v0 }
  0x98   :  { %4507 = vmatmul.mubr.msk.bf16.vlgmr.msra.gmra.mrb[20].mxu0 %vm147_vm2, %v748_v63  ;;  %4523 = vmatmul.mubr.msk.bf16.vlgmr.msra.gmra.mrb[20].mxu1 %vm147_vm2, %v801_v10 }
  0x99   :  { %4527 = vmatpush3.bf16.msra.mxu0 %v5540_v1  ;;  %4543 = vmatpush3.bf16.msra.mxu1 %v5545_v2  ;;  %v3764_v1 = vld [vmem:[%s6994_s0 + $0x9] sm:$0xf]  ;;  %v3767_v2 = vld [vmem:[%s6994_s0 + $0x19] sm:$0xf] }
  0x9a   :  { %4528 = vmatprep.subr.bf16.mxu0 %v5424_v0  ;;  %4544 = vmatprep.subr.bf16.mxu1 %v5424_v0 }
  0x9b   :  { %4538 = vmatprep.mubr.msk.bf16.mxu0 %vm5425_vm0, %v5424_v0  ;;  %4554 = vmatprep.mubr.msk.bf16.mxu1 %vm5425_vm0, %v5424_v0 }
  0x9d   :  { %4529 = vmatpush3.bf16.msra.mxu0 %v5555_v3  ;;  %4545 = vmatpush3.bf16.msra.mxu1 %v5562_v4  ;;  %v929_v3 = vrot.slane %v3764_v1, 4  ;;  %v926_v4 = vld [vmem:[%s6994_s0 + $0x1] sm:$0xf] }
  0x9e   :  { %4530 = vmatprep.subr.bf16.mxu0 %v5424_v0  ;;  %4546 = vmatprep.subr.bf16.mxu1 %v5424_v0 }
  0xa1   :  { %4531 = vmatpush3.bf16.msra.mxu0 %v5569_v5  ;;  %4547 = vmatpush3.bf16.msra.mxu1 %v5576_v6  ;;  %v980_v5 = vrot.slane %v3767_v2, 4  ;;  %v3766_v6 = vld [vmem:[%s6994_s0 + $0x11] sm:$0xf]  ;;  %s5431_s0 = smov 80  }
  0xa2   :  { %4532 = vmatprep.subr.bf16.mxu0 %v5424_v0  ;;  %4548 = vmatprep.subr.bf16.mxu1 %v5424_v0 }
  0xa5   :  { %4533 = vmatpush3.bf16.msra.mxu0 %v5583_v7  ;;  %4549 = vmatpush3.bf16.msra.mxu1 %v5590_v8  ;;  %v931_v7 = vsel %vm74_vm1, %v926_v4, %v929_v3  ;;  %v982_v8 = vsel %vm74_vm1, %v3766_v6, %v980_v5  ;;  %v6072_v6 = vld [vmem:[%s6995_s3 + $0x38] sm:$0xff]  }
  0xa6   :  { %4534 = vmatprep.subr.bf16.mxu0 %v5424_v0  ;;  %4550 = vmatprep.subr.bf16.mxu1 %v5424_v0 }
  0xa9   :  { %4535 = vmatpush3.bf16.msra.mxu0 %v5596_v9  ;;  %4551 = vmatpush3.bf16.msra.mxu1 %v5604_v11  ;;  %v932_v9 = vpack.c.bf16 %v931_v7, %v931_v7  ;;  %v983_v11 = vpack.c.bf16 %v982_v8, %v982_v8 }
  0xaa   :  { %4536 = vmatprep.subr.bf16.mxu0 %v5424_v0  ;;  %4552 = vmatprep.subr.bf16.mxu1 %v5424_v0 }
  0xad   :  { %4537 = vmatpush3.bf16.msra.mxu0 %v5623_v17  ;;  %4553 = vmatpush3.bf16.msra.mxu1 %v5631_v19  ;;  %v5263_v17 = vld [vmem:[%s6995_s3 + $0x68] sm:$0xff]   ;;  %v5265_v19 = vld [vmem:[%s6995_s3 + $0x78] sm:$0xff]  }
  0xae   :  { %4558 = vmatprep.subr.bf16.mxu0 %v5424_v0  ;;  %4574 = vmatprep.subr.bf16.mxu1 %v5424_v0 }
  0xb0   :  { %4539 = vmatmul.mubr.msk.bf16.vlgmr.msra.gmra.mrb[24].mxu0 %vm147_vm2, %v801_v10  ;;  %4555 = vmatmul.mubr.msk.bf16.vlgmr.msra.gmra.mrb[24].mxu1 %vm147_vm2, %v748_v63  ;;  %v6065_v63 = vld [vmem:[%s6995_s3 + $0x30] sm:$0xff]  }
  0xb1   :  { %4559 = vmatpush3.bf16.msra.mxu0 %v5639_v23  ;;  %4575 = vmatpush3.bf16.msra.mxu1 %v5646_v24 }
  0xb2   :  { %4560 = vmatprep.subr.bf16.mxu0 %v5424_v0  ;;  %4576 = vmatprep.subr.bf16.mxu1 %v5424_v0 }
  0xb3   :  { %4570 = vmatprep.mubr.msk.bf16.mxu0 %vm5425_vm0, %v5424_v0  ;;  %4586 = vmatprep.mubr.msk.bf16.mxu1 %vm5425_vm0, %v5424_v0 }
  0xb5   :  { %4561 = vmatpush3.bf16.msra.mxu0 %v5655_v25  ;;  %4577 = vmatpush3.bf16.msra.mxu1 %v5662_v26 }
  0xb6   :  { %4562 = vmatprep.subr.bf16.mxu0 %v5424_v0  ;;  %4578 = vmatprep.subr.bf16.mxu1 %v5424_v0 }
  0xb9   :  { %4563 = vmatpush3.bf16.msra.mxu0 %v5673_v27  ;;  %4579 = vmatpush3.bf16.msra.mxu1 %v5680_v28 }
  0xba   :  { %4564 = vmatprep.subr.bf16.mxu0 %v5424_v0  ;;  %4580 = vmatprep.subr.bf16.mxu1 %v5424_v0 }
  0xbd   :  { %4565 = vmatpush3.bf16.msra.mxu0 %v5687_v29  ;;  %4581 = vmatpush3.bf16.msra.mxu1 %v5694_v30 }
  0xbe   :  { %4566 = vmatprep.subr.bf16.mxu0 %v5424_v0  ;;  %4582 = vmatprep.subr.bf16.mxu1 %v5424_v0 }
  0xc1   :  { %4567 = vmatpush3.bf16.msra.mxu0 %v5707_v33  ;;  %4583 = vmatpush3.bf16.msra.mxu1 %v5714_v35  ;;  %v6014_v33 = vld [vmem:[%s6996_s2] ss:$0 sm:$0xff] }
  0xc2   :  { %4568 = vmatprep.subr.bf16.mxu0 %v5424_v0  ;;  %4584 = vmatprep.subr.bf16.mxu1 %v5424_v0 }
  0xc5   :  { %4569 = vmatpush3.bf16.msra.mxu0 %v5727_v39  ;;  %4585 = vmatpush3.bf16.msra.mxu1 %v5735_v41 }
  0xc6   :  { %4590 = vmatprep.subr.bf16.mxu0 %v5424_v0  ;;  %4670 = vmatprep.subr.bf16.mxu1 %v5424_v0 }
  0xc8   :  { %4571 = vmatmul.mubr.msk.bf16.vlgmr.msra.gmra.mrb[28].mxu0 %vm147_vm2, %v932_v9  ;;  %4587 = vmatmul.mubr.msk.bf16.vlgmr.msra.gmra.mrb[28].mxu1 %vm147_vm2, %v983_v11 }
  0xc9   :  { %4591 = vmatpush3.bf16.msra.mxu0 %v5258_v12  ;;  %4606 = vmatprep.mubr.msk.bf16.mxu0 %vm5425_vm0, %v5424_v0 }
  0xca   :  { %4592 = vmatprep.subr.bf16.mxu0 %v5424_v0  ;;  %4671 = vmatpush3.bf16.msra.mxu1 %v5258_v12 }
  0xcb   :  { %4686 = vmatprep.mubr.msk.bf16.mxu1 %vm5425_vm0, %v5424_v0  ;;  %4672 = vmatprep.subr.bf16.mxu1 %v5424_v0 }
  0xcd   :  { %4593 = vmatpush3.bf16.msra.mxu0 %v5259_v13 }
  0xce   :  { %4594 = vmatprep.subr.bf16.mxu0 %v5424_v0  ;;  %4673 = vmatpush3.bf16.msra.mxu1 %v5259_v13 }
  0xcf   :  { %4674 = vmatprep.subr.bf16.mxu1 %v5424_v0 }
  0xd1   :  { %4595 = vmatpush3.bf16.msra.mxu0 %v5260_v14 }
  0xd2   :  { %4596 = vmatprep.subr.bf16.mxu0 %v5424_v0  ;;  %4675 = vmatpush3.bf16.msra.mxu1 %v5260_v14 }
  0xd3   :  { %4676 = vmatprep.subr.bf16.mxu1 %v5424_v0 }
  0xd5   :  { %4597 = vmatpush3.bf16.msra.mxu0 %v5261_v15 }
  0xd6   :  { %4598 = vmatprep.subr.bf16.mxu0 %v5424_v0  ;;  %4677 = vmatpush3.bf16.msra.mxu1 %v5261_v15 }
  0xd7   :  { %4678 = vmatprep.subr.bf16.mxu1 %v5424_v0 }
  0xd9   :  { %4599 = vmatpush3.bf16.msra.mxu0 %v5262_v16 }
  0xda   :  { %4600 = vmatprep.subr.bf16.mxu0 %v5424_v0  ;;  %4679 = vmatpush3.bf16.msra.mxu1 %v5262_v16 }
  0xdb   :  { %4680 = vmatprep.subr.bf16.mxu1 %v5424_v0 }
  0xdd   :  { %4601 = vmatpush3.bf16.msra.mxu0 %v5263_v17 }
  0xde   :  { %4602 = vmatprep.subr.bf16.mxu0 %v5424_v0  ;;  %4681 = vmatpush3.bf16.msra.mxu1 %v5263_v17 }
  0xdf   :  { %4682 = vmatprep.subr.bf16.mxu1 %v5424_v0 }
  0xe1   :  { %4603 = vmatpush3.bf16.msra.mxu0 %v5264_v18 }
  0xe2   :  { %4604 = vmatprep.subr.bf16.mxu0 %v5424_v0  ;;  %4683 = vmatpush3.bf16.msra.mxu1 %v5264_v18 }
  0xe3   :  { %4684 = vmatprep.subr.bf16.mxu1 %v5424_v0 }
  0xe5   :  { %4605 = vmatpush3.bf16.msra.mxu0 %v5265_v19 }
  0xe6   :  { %4610 = vmatprep.subr.bf16.mxu0 %v5424_v0  ;;  %4685 = vmatpush3.bf16.msra.mxu1 %v5265_v19 }
  0xe7   :  { %4690 = vmatprep.subr.bf16.mxu1 %v5424_v0 }
  0xf3   :  { %v185_v20 = vpop.f32.mrb[0].mxu0  ;;  %v264_v21 = vpop.f32.mrb[0].mxu1 }
  0xf4   :  { %v4348_v22 = vpop.f32.mrb[1].mxu0  ;;  %v265_v23 = vadd.f32 %v264_v21, %v185_v20  ;;  %v4364_v24 = vpop.f32.mrb[1].mxu1 }
  0xf5   :  { %v188_v25 = vpop.f32.mrb[2].mxu0  ;;  %v267_v26 = vpop.f32.mrb[2].mxu1 }
  0xf6   :  { %v4349_v27 = vpop.f32.mrb[3].mxu0  ;;  %v4365_v28 = vpop.f32.mrb[3].mxu1 }
 0x10b   :  { %v365_v29 = vpop.f32.mrb[4].mxu0  ;;  %v467_v31 = vpop.f32.mrb[4].mxu1 }
 0x10c   :  { %v371_v30 = vadd.f32 %v365_v29, %v265_v23  ;;  %v4380_v32 = vpop.f32.mrb[5].mxu0  ;;  %v4396_v34 = vpop.f32.mrb[5].mxu1 }
 0x10d   :  { %v368_v35 = vpop.f32.mrb[6].mxu0  ;;  %v470_v37 = vpop.f32.mrb[6].mxu1 }
 0x10e   :  { %v473_v36 = vadd.f32 %v467_v31, %v371_v30  ;;  %v4381_v38 = vpop.f32.mrb[7].mxu0  ;;  %v4397_v39 = vpop.f32.mrb[7].mxu1 }
 0x110   :  { %v1035_v40 = vadd.f32 %v6014_v33, %v473_v36 }
 0x112   :  { %vm1036_vm3 = vcmp.ge.f32.partialorder %v1035_v40, 0.0  ;;  %v1037_v41 = vmul.f32 0.2, %v1035_v40 }
 0x114   :  { %v1038_v42 = vsel %vm1036_vm3, %v1035_v40, %v1037_v41  ;;  %vm3547_vm3 = vcmask 518144  }
 0x115   :  { %1052 = vst [vmem:[#allocation2 + $0x10] ss:$8 sps:$4 sm:$0xff] %v1038_v42  }
 0x11c   :  { %v1090_v43 = vld [vmem:[#allocation2 + $0x18] sm:$0xf]  ;;  %v1089_v45 = vld [vmem:[#allocation2 + $0x10] sm:$0xf] }
 0x11d   :  { %v1092_v44 = vrot.slane %v1090_v43, 4 }
 0x11f   :  { %v1094_v46 = vsel %vm74_vm1, %v1089_v45, %v1092_v44 }
 0x120   :  { %v1095_v47 = vpack.c.bf16 %v1094_v46, %v1094_v46 }
 0x122   :  { %4607 = vmatmul.mubr.bf16.vlgmr.msra.gmra.mrb[32].mxu0 %v1095_v47 }
 0x123   :  { %v508_v49 = vpop.f32.mrb[8].mxu0  ;;  %4611 = vmatpush3.bf16.msra.mxu0 %v6021_v48  ;;  %4626 = vmatprep.mubr.msk.bf16.mxu0 %vm5425_vm0, %v5424_v0  ;;  %v548_v50 = vpop.f32.mrb[8].mxu1 }
 0x124   :  { %v4412_v51 = vpop.f32.mrb[9].mxu0  ;;  %4612 = vmatprep.subr.bf16.mxu0 %v5424_v0  ;;  %v549_v52 = vadd.f32 %v548_v50, %v508_v49  ;;  %v4428_v53 = vpop.f32.mrb[9].mxu1 }
 0x125   :  { %v511_v54 = vpop.f32.mrb[10].mxu0  ;;  %v551_v56 = vpop.f32.mrb[10].mxu1 }
 0x126   :  { %v4413_v57 = vpop.f32.mrb[11].mxu0  ;;  %v4429_v58 = vpop.f32.mrb[11].mxu1 }
 0x127   :  { %4613 = vmatpush3.bf16.msra.mxu0 %v6030_v55 }
 0x128   :  { %4614 = vmatprep.subr.bf16.mxu0 %v5424_v0 }
 0x12b   :  { %4615 = vmatpush3.bf16.msra.mxu0 %v6037_v59 }
 0x12c   :  { %4616 = vmatprep.subr.bf16.mxu0 %v5424_v0 }
 0x12f   :  { %4617 = vmatpush3.bf16.msra.mxu0 %v6044_v60 }
 0x130   :  { %4618 = vmatprep.subr.bf16.mxu0 %v5424_v0 }
 0x133   :  { %4619 = vmatpush3.bf16.msra.mxu0 %v6051_v61 }
 0x134   :  { %4620 = vmatprep.subr.bf16.mxu0 %v5424_v0 }
 0x137   :  { %4621 = vmatpush3.bf16.msra.mxu0 %v6058_v62 }
 0x138   :  { %4622 = vmatprep.subr.bf16.mxu0 %v5424_v0 }
 0x13b   :  { %v600_v10 = vpop.f32.mrb[12].mxu0  ;;  %4623 = vmatpush3.bf16.msra.mxu0 %v6065_v63  ;;  %v653_v2 = vpop.f32.mrb[12].mxu1 }
 0x13c   :  { %v606_v1 = vadd.f32 %v600_v10, %v549_v52  ;;  %v4444_v3 = vpop.f32.mrb[13].mxu0  ;;  %4624 = vmatprep.subr.bf16.mxu0 %v5424_v0  ;;  %v4460_v4 = vpop.f32.mrb[13].mxu1 }
 0x13d   :  { %v603_v5 = vpop.f32.mrb[14].mxu0  ;;  %v656_v8 = vpop.f32.mrb[14].mxu1 }
 0x13e   :  { %v659_v7 = vadd.f32 %v653_v2, %v606_v1  ;;  %v4445_v9 = vpop.f32.mrb[15].mxu0  ;;  %v4461_v11 = vpop.f32.mrb[15].mxu1  ;;  %v5277_v8 = vld [vmem:[%s6995_s3 + $0x98] sm:$0xff]  }
 0x13f   :  { %4625 = vmatpush3.bf16.msra.mxu0 %v6072_v6 }
 0x140   :  { %v1039_v12 = vadd.f32 %v6014_v33, %v659_v7  ;;  %4630 = vmatprep.subr.bf16.mxu0 %v5424_v0  ;;  %v5275_v7 = vld [vmem:[%s6995_s3 + $0x88] sm:$0xff]  }
 0x142   :  { %vm1040_vm4 = vcmp.ge.f32.partialorder %v1039_v12, 0.0  ;;  %v1041_v13 = vmul.f32 0.2, %v1039_v12 }
 0x144   :  { %v1042_v14 = vsel %vm1040_vm4, %v1039_v12, %v1041_v13 }
 0x145   :  { %1056 = vst [vmem:[#allocation2 + $0x20] ss:$8 sps:$4 sm:$0xff] %v1042_v14   ;;  %v5278_v14 = vld [vmem:[%s6995_s3 + $0xa0] sm:$0xff]  }
 0x14c   :  { %v1289_v58 = vld [vmem:[#allocation2 + $0x20] sm:$0xf] }
 0x153   :  { %v694_v15 = vpop.f32.mrb[16].mxu0  ;;  %v734_v16 = vpop.f32.mrb[16].mxu1 }
 0x154   :  { %v4476_v17 = vpop.f32.mrb[17].mxu0  ;;  %v735_v18 = vadd.f32 %v734_v16, %v694_v15  ;;  %v4492_v19 = vpop.f32.mrb[17].mxu1  ;;  %v5279_v16 = vld [vmem:[%s6995_s3 + $0xa8] sm:$0xff]  }
 0x155   :  { %v697_v20 = vpop.f32.mrb[18].mxu0  ;;  %v737_v21 = vpop.f32.mrb[18].mxu1 }
 0x156   :  { %v4477_v22 = vpop.f32.mrb[19].mxu0  ;;  %v4493_v23 = vpop.f32.mrb[19].mxu1  ;;  %v5281_v20 = vld [vmem:[%s6995_s3 + $0xb8] sm:$0xff]  }
 0x157   :  { %v5282_v23 = vld [vmem:[%s6995_s3 + $0xc0] sm:$0xff]  }
 0x16b   :  { %v786_v24 = vpop.f32.mrb[20].mxu0  ;;  %v839_v26 = vpop.f32.mrb[20].mxu1 }
 0x16c   :  { %v792_v25 = vadd.f32 %v786_v24, %v735_v18  ;;  %v4508_v27 = vpop.f32.mrb[21].mxu0  ;;  %v4524_v28 = vpop.f32.mrb[21].mxu1  ;;  %v5280_v18 = vld [vmem:[%s6995_s3 + $0xb0] sm:$0xff]  }
 0x16d   :  { %v789_v29 = vpop.f32.mrb[22].mxu0  ;;  %v842_v31 = vpop.f32.mrb[22].mxu1  ;;  %v5285_v27 = vld [vmem:[%s6995_s3 + $0xd8] sm:$0xff]   ;;  %v5286_v28 = vld [vmem:[%s6995_s3 + $0xe0] sm:$0xff]  }
 0x16e   :  { %v845_v30 = vadd.f32 %v839_v26, %v792_v25  ;;  %v4509_v32 = vpop.f32.mrb[23].mxu0  ;;  %v4525_v34 = vpop.f32.mrb[23].mxu1  ;;  %v5283_v25 = vld [vmem:[%s6995_s3 + $0xc8] sm:$0xff]   ;;  %v5284_v26 = vld [vmem:[%s6995_s3 + $0xd0] sm:$0xff]  }
 0x16f   :  { %v5287_v29 = vld [vmem:[%s6995_s3 + $0xe8] sm:$0xff]   ;;  %v5288_v31 = vld [vmem:[%s6995_s3 + $0xf0] sm:$0xff]   ;;  %v5289_v34 = vld [vmem:[%s6995_s3 + $0xf8] sm:$0xff]  }
 0x170   :  { %v1043_v35 = vadd.f32 %v6014_v33, %v845_v30  ;;  %v1644_v30 = vld [vmem:[#allocation2 + $0x19] sm:$0xf] }
 0x171   :  { %v1646_v32 = vrot.slane %v1644_v30, 4 }
 0x172   :  { %vm1044_vm5 = vcmp.ge.f32.partialorder %v1043_v35, 0.0  ;;  %v1045_v36 = vmul.f32 0.2, %v1043_v35 }
 0x174   :  { %v1046_v37 = vsel %vm1044_vm5, %v1043_v35, %v1045_v36  ;;  %v1643_v35 = vld [vmem:[#allocation2 + $0x11] sm:$0xf] }
 0x175   :  { %1060 = vst [vmem:[#allocation2 + $0x30] ss:$8 sps:$4 sm:$0xff] %v1046_v37   ;;  %v1648_v36 = vsel %vm74_vm1, %v1643_v35, %v1646_v32 }
 0x176   :  { %v1649_v37 = vpack.c.bf16 %v1648_v36, %v1648_v36 }
 0x17c   :  { %v1403_v38 = vld [vmem:[#allocation2 + $0x38] sm:$0xf]  ;;  %v1402_v40 = vld [vmem:[#allocation2 + $0x30] sm:$0xf] }
 0x17d   :  { %v1405_v39 = vrot.slane %v1403_v38, 4  ;;  %v5426_v38 = vmov 0.0|0.0  }
 0x17f   :  { %v1407_v41 = vsel %vm74_vm1, %v1402_v40, %v1405_v39  ;;  %v1691_v39 = vld [vmem:[%s6997_s6] sm:$0xff]  ;;  %v1692_v40 = vld [vmem:[%s6997_s6 + $0x8] sm:$0xff] }
 0x180   :  { %v6079_v42 = vpack.c.bf16 %v1407_v41, %v1407_v41  ;;  %v4971_v41 = vpack.c.bf16 %v1692_v40, %v1691_v39 }
 0x182   :  { %4687 = vmatmul.mubr.bf16.vlgmr.msra.gmra.mrb[32].mxu1 %v6079_v42 }
 0x183   :  { %4691 = vmatpush3.bf16.msra.mxu1 %v6021_v48  ;;  %v880_v43 = vpop.f32.mrb[24].mxu0  ;;  %4706 = vmatprep.mubr.msk.bf16.mxu1 %vm5425_vm0, %v5424_v0  ;;  %v920_v44 = vpop.f32.mrb[24].mxu1  ;;  %v1290_v48 = vld [vmem:[#allocation2 + $0x28] sm:$0xf] }
 0x184   :  { %v4540_v45 = vpop.f32.mrb[25].mxu0  ;;  %4692 = vmatprep.subr.bf16.mxu1 %v5424_v0  ;;  %v921_v46 = vadd.f32 %v920_v44, %v880_v43  ;;  %v4556_v47 = vpop.f32.mrb[25].mxu1  ;;  %v1292_v53 = vrot.slane %v1290_v48, 4  ;;  %v1694_v43 = vld [vmem:[%s6997_s6 + $0x18] sm:$0xff]  ;;  %v1700_v48 = vld [vmem:[%s6997_s6 + $0x48] sm:$0xff] }
 0x185   :  { %v883_v49 = vpop.f32.mrb[26].mxu0  ;;  %v923_v50 = vpop.f32.mrb[26].mxu1  ;;  %v1695_v45 = vld [vmem:[%s6997_s6 + $0x20] sm:$0xff] }
 0x186   :  { %v4541_v51 = vpop.f32.mrb[27].mxu0  ;;  %v4557_v52 = vpop.f32.mrb[27].mxu1  ;;  %v1697_v49 = vld [vmem:[%s6997_s6 + $0x30] sm:$0xff]  ;;  %v1698_v50 = vld [vmem:[%s6997_s6 + $0x38] sm:$0xff] }
 0x187   :  { %4693 = vmatpush3.bf16.msra.mxu1 %v6030_v55  ;;  %v4980_v51 = vpack.c.bf16 %v1698_v50, %v1697_v49  ;;  %v1699_v52 = vld [vmem:[%s6997_s6 + $0x40] sm:$0xff]  ;;  %v5291_v49 = vld [vmem:[%s6998_s7 + $0x48] sm:$0xff]   ;;  %v5292_v50 = vld [vmem:[%s6998_s7 + $0x50] sm:$0xff]  }
 0x188   :  { %4694 = vmatprep.subr.bf16.mxu1 %v5424_v0 }
 0x18b   :  { %4695 = vmatpush3.bf16.msra.mxu1 %v6037_v59 }
 0x18c   :  { %4696 = vmatprep.subr.bf16.mxu1 %v5424_v0 }
 0x18f   :  { %4697 = vmatpush3.bf16.msra.mxu1 %v6044_v60 }
 0x190   :  { %4698 = vmatprep.subr.bf16.mxu1 %v5424_v0 }
 0x193   :  { %4699 = vmatpush3.bf16.msra.mxu1 %v6051_v61  ;;  %v1294_v61 = vsel %vm74_vm1, %v1289_v58, %v1292_v53  ;;  %v4983_v53 = vpack.c.bf16 %v1700_v48, %v1699_v52  ;;  %v1704_v58 = vld [vmem:[%s6997_s6 + $0x68] sm:$0xff]  ;;  %v5294_v52 = vld [vmem:[%s6998_s7 + $0x60] sm:$0xff]  }
 0x194   :  { %4700 = vmatprep.subr.bf16.mxu1 %v5424_v0  ;;  %v6104_v4 = vpack.c.bf16 %v1294_v61, %v1294_v61  ;;  %v1706_v61 = vld [vmem:[%s6997_s6 + $0x78] sm:$0xff]  ;;  %v5295_v48 = vld [vmem:[%s6998_s7 + $0x68] sm:$0xff]  }
 0x197   :  { %4701 = vmatpush3.bf16.msra.mxu1 %v6058_v62 }
 0x198   :  { %4702 = vmatprep.subr.bf16.mxu1 %v5424_v0 }
 0x19b   :  { %4703 = vmatpush3.bf16.msra.mxu1 %v6065_v63  ;;  %v970_v54 = vpop.f32.mrb[28].mxu0  ;;  %v1021_v56 = vpop.f32.mrb[28].mxu1  ;;  %v5274_v63 = vld [vmem:[%s6995_s3 + $0x80] sm:$0xff]  }
 0x19c   :  { %v976_v55 = vadd.f32 %v970_v54, %v921_v46  ;;  %v4572_v57 = vpop.f32.mrb[29].mxu0  ;;  %4704 = vmatprep.subr.bf16.mxu1 %v5424_v0  ;;  %v4588_v59 = vpop.f32.mrb[29].mxu1  ;;  %v1696_v46 = vld [vmem:[%s6997_s6 + $0x28] sm:$0xff]  ;;  %v1701_v54 = vld [vmem:[%s6997_s6 + $0x50] sm:$0xff] }
 0x19d   :  { %v973_v60 = vpop.f32.mrb[30].mxu0  ;;  %v1024_v1 = vpop.f32.mrb[30].mxu1  ;;  %v4977_v47 = vpack.c.bf16 %v1696_v46, %v1695_v45  ;;  %v1703_v57 = vld [vmem:[%s6997_s6 + $0x60] sm:$0xff] }
 0x19e   :  { %v1027_v10 = vadd.f32 %v1021_v56, %v976_v55  ;;  %v4573_v2 = vpop.f32.mrb[31].mxu0  ;;  %v4589_v62 = vpop.f32.mrb[31].mxu1  ;;  %v1702_v55 = vld [vmem:[%s6997_s6 + $0x58] sm:$0xff]  ;;  %v4989_v59 = vpack.c.bf16 %v1704_v58, %v1703_v57  ;;  %v1705_v60 = vld [vmem:[%s6997_s6 + $0x70] sm:$0xff]  ;;  %v5290_v46 = vld [vmem:[%s6998_s7 + $0x40] sm:$0xff]  }
 0x19f   :  { %4705 = vmatpush3.bf16.msra.mxu1 %v6072_v6  ;;  %v4986_v56 = vpack.c.bf16 %v1702_v55, %v1701_v54  ;;  %v5297_v54 = vld [vmem:[%s6998_s7 + $0x78] sm:$0xff]  }
 0x1a0   :  { %v1047_v3 = vadd.f32 %v6014_v33, %v1027_v10  ;;  %4710 = vmatprep.subr.bf16.mxu1 %v5424_v0  ;;  %v5276_v33 = vld [vmem:[%s6995_s3 + $0x90] sm:$0xff]   ;;  %v4992_v10 = vpack.c.bf16 %v1706_v61, %v1705_v60 }
 0x1a2   :  { %vm1048_vm6 = vcmp.ge.f32.partialorder %v1047_v3, 0.0  ;;  %v1049_v5 = vmul.f32 0.2, %v1047_v3  ;;  %4707 = vmatmul.mubr.bf16.vlgmr.msra.gmra.mrb[32].mxu1 %v6104_v4 }
 0x1a3   :  { %4711 = vmatpush3.bf16.msra.mxu1 %v5274_v63  ;;  %4726 = vmatprep.mubr.msk.bf16.mxu1 %vm5425_vm0, %v5424_v0 }
 0x1a4   :  { %v1050_v6 = vsel %vm1048_vm6, %v1047_v3, %v1049_v5  ;;  %4712 = vmatprep.subr.bf16.mxu1 %v5424_v0  ;;  %vm3580_vm6 = vcmask 1040384  }
 0x1a5   :  { %1063 = vst [vmem:[#allocation2 + $0x1] ss:$8 sps:$4 sm:$0xff] %v1050_v6  }
 0x1a7   :  { %4713 = vmatpush3.bf16.msra.mxu1 %v5275_v7 }
 0x1a8   :  { %4714 = vmatprep.subr.bf16.mxu1 %v5424_v0 }
 0x1ab   :  { %4715 = vmatpush3.bf16.msra.mxu1 %v5276_v33 }
 0x1ac   :  { %4716 = vmatprep.subr.bf16.mxu1 %v5424_v0  ;;  %v1067_v9 = vld [vmem:[#allocation2 + $0x8] sm:$0xf]  ;;  %v1066_v12 = vld [vmem:[#allocation2] sm:$0xf] }
 0x1ad   :  { %v1069_v11 = vrot.slane %v1067_v9, 4  ;;  %v1596_v17 = vld [vmem:[#allocation2 + $0x9] sm:$0xf]  ;;  %v1595_v21 = vld [vmem:[#allocation2 + $0x1] sm:$0xf] }
 0x1ae   :  { %v1598_v19 = vrot.slane %v1596_v17, 4 }
 0x1af   :  { %4717 = vmatpush3.bf16.msra.mxu1 %v5277_v8  ;;  %v1071_v13 = vsel %vm74_vm1, %v1066_v12, %v1069_v11 }
 0x1b0   :  { %4718 = vmatprep.subr.bf16.mxu1 %v5424_v0  ;;  %v1072_v15 = vpack.c.bf16 %v1071_v13, %v1071_v13  ;;  %v1600_v22 = vsel %vm74_vm1, %v1595_v21, %v1598_v19 }
 0x1b1   :  { %v1601_v24 = vpack.c.bf16 %v1600_v22, %v1600_v22 }
 0x1b2   :  { %4627 = vmatmul.mubr.bf16.vlgmr.msra.gmra.mrb[32].mxu0 %v1072_v15 }
 0x1b3   :  { %4631 = vmatpush3.bf16.msra.mxu0 %v5274_v63  ;;  %4719 = vmatpush3.bf16.msra.mxu1 %v5278_v14 }
 0x1b4   :  { %4632 = vmatprep.subr.bf16.mxu0 %v5424_v0  ;;  %4720 = vmatprep.subr.bf16.mxu1 %v5424_v0 }
 0x1b5   :  { %4646 = vmatprep.mubr.msk.bf16.mxu0 %vm5425_vm0, %v5424_v0 }
 0x1b7   :  { %4633 = vmatpush3.bf16.msra.mxu0 %v5275_v7  ;;  %4721 = vmatpush3.bf16.msra.mxu1 %v5279_v16 }
 0x1b8   :  { %4634 = vmatprep.subr.bf16.mxu0 %v5424_v0  ;;  %4722 = vmatprep.subr.bf16.mxu1 %v5424_v0 }
 0x1bb   :  { %4635 = vmatpush3.bf16.msra.mxu0 %v5276_v33  ;;  %4723 = vmatpush3.bf16.msra.mxu1 %v5280_v18 }
 0x1bc   :  { %4636 = vmatprep.subr.bf16.mxu0 %v5424_v0  ;;  %4724 = vmatprep.subr.bf16.mxu1 %v5424_v0 }
 0x1bf   :  { %4637 = vmatpush3.bf16.msra.mxu0 %v5277_v8  ;;  %4725 = vmatpush3.bf16.msra.mxu1 %v5281_v20 }
 0x1c0   :  { %4638 = vmatprep.subr.bf16.mxu0 %v5424_v0  ;;  %4730 = vmatprep.subr.bf16.mxu1 %v5424_v0 }
 0x1c2   :  { %4727 = vmatmul.mubr.bf16.vlgmr.msra.gmra.mrb[32].mxu1 %v1601_v24 }
 0x1c3   :  { %4639 = vmatpush3.bf16.msra.mxu0 %v5278_v14  ;;  %4731 = vmatpush3.bf16.msra.mxu1 %v5282_v23 }
 0x1c4   :  { %4640 = vmatprep.subr.bf16.mxu0 %v5424_v0  ;;  %4732 = vmatprep.subr.bf16.mxu1 %v5424_v0 }
 0x1c5   :  { %4746 = vmatprep.mubr.msk.bf16.mxu1 %vm5425_vm0, %v5424_v0 }
 0x1c7   :  { %4641 = vmatpush3.bf16.msra.mxu0 %v5279_v16  ;;  %4733 = vmatpush3.bf16.msra.mxu1 %v5283_v25 }
 0x1c8   :  { %4642 = vmatprep.subr.bf16.mxu0 %v5424_v0  ;;  %4734 = vmatprep.subr.bf16.mxu1 %v5424_v0 }
 0x1cb   :  { %4643 = vmatpush3.bf16.msra.mxu0 %v5280_v18  ;;  %4735 = vmatpush3.bf16.msra.mxu1 %v5284_v26 }
 0x1cc   :  { %4644 = vmatprep.subr.bf16.mxu0 %v5424_v0  ;;  %4736 = vmatprep.subr.bf16.mxu1 %v5424_v0 }
 0x1cf   :  { %4645 = vmatpush3.bf16.msra.mxu0 %v5281_v20  ;;  %4737 = vmatpush3.bf16.msra.mxu1 %v5285_v27 }
 0x1d0   :  { %4650 = vmatprep.subr.bf16.mxu0 %v5424_v0  ;;  %4738 = vmatprep.subr.bf16.mxu1 %v5424_v0 }
 0x1d2   :  { %4647 = vmatmul.mubr.bf16.vlgmr.msra.gmra.mrb[32].mxu0 %v6104_v4 }
 0x1d3   :  { %4651 = vmatpush3.bf16.msra.mxu0 %v5282_v23  ;;  %4739 = vmatpush3.bf16.msra.mxu1 %v5286_v28 }
 0x1d4   :  { %4652 = vmatprep.subr.bf16.mxu0 %v5424_v0  ;;  %4740 = vmatprep.subr.bf16.mxu1 %v5424_v0 }
 0x1d5   :  { %4666 = vmatprep.mubr.msk.bf16.mxu0 %vm5425_vm0, %v5424_v0 }
 0x1d7   :  { %4653 = vmatpush3.bf16.msra.mxu0 %v5283_v25  ;;  %4741 = vmatpush3.bf16.msra.mxu1 %v5287_v29 }
 0x1d8   :  { %4654 = vmatprep.subr.bf16.mxu0 %v5424_v0  ;;  %4742 = vmatprep.subr.bf16.mxu1 %v5424_v0 }
 0x1db   :  { %4655 = vmatpush3.bf16.msra.mxu0 %v5284_v26  ;;  %4743 = vmatpush3.bf16.msra.mxu1 %v5288_v31 }
 0x1dc   :  { %4656 = vmatprep.subr.bf16.mxu0 %v5424_v0  ;;  %4744 = vmatprep.subr.bf16.mxu1 %v5424_v0 }
 0x1df   :  { %4657 = vmatpush3.bf16.msra.mxu0 %v5285_v27  ;;  %4745 = vmatpush3.bf16.msra.mxu1 %v5289_v34 }
 0x1e0   :  { %4658 = vmatprep.subr.bf16.mxu0 %v5424_v0  ;;  %4994 = vmatprep.subr.bf16.mxu1 %v5426_v38 }
 0x1e2   :  { %4747 = vmatmul.mubr.bf16.vlgmr.msra.gmra.mrb[32].mxu1 %v1649_v37 }
 0x1e3   :  { %4659 = vmatpush3.bf16.msra.mxu0 %v5286_v28  ;;  %4817 = vmatprep.mubr.msk.f32.mxu1 %vm5425_vm0, %v5424_v0 }
 0x1e4   :  { %4660 = vmatprep.subr.bf16.mxu0 %v5424_v0  ;;  %4996 = vmatpush3.bf16.msra.mxu1 %v4971_v41 }
 0x1e5   :  { %4997 = vmatprep.subr.bf16.mxu1 %v5426_v38 }
 0x1e7   :  { %4661 = vmatpush3.bf16.msra.mxu0 %v5287_v29 }
 0x1e8   :  { %4662 = vmatprep.subr.bf16.mxu0 %v5424_v0 }
 0x1eb   :  { %4663 = vmatpush3.bf16.msra.mxu0 %v5288_v31 }
 0x1ec   :  { %4664 = vmatprep.subr.bf16.mxu0 %v5424_v0 }
 0x1ef   :  { %4665 = vmatpush3.bf16.msra.mxu0 %v5289_v34 }
 0x1f0   :  { %4970 = vmatprep.subr.bf16.mxu0 %v5426_v38 }
 0x1f2   :  { %4667 = vmatmul.mubr.bf16.vlgmr.msra.gmra.mrb[32].mxu0 %v6079_v42  ;;  %v1693_v42 = vld [vmem:[%s6997_s6 + $0x10] sm:$0xff]  ;;  %s5427_s6 = smov 32  }
 0x1f3   :  { %4782 = vmatprep.mubr.msk.f32.mxu0 %vm5425_vm0, %v5424_v0  ;;  %4972 = vmatpush3.bf16.msra.mxu0 %v4971_v41  ;;  %v4974_v44 = vpack.c.bf16 %v1694_v43, %v1693_v42 }
 0x1f4   :  { %4973 = vmatprep.subr.bf16.mxu0 %v5426_v38 }
 0x1f5   :  { %4999 = vmatpush3.bf16.msra.mxu1 %v4974_v44 }
 0x1f6   :  { %5000 = vmatprep.subr.bf16.mxu1 %v5426_v38 }
 0x1f7   :  { %4975 = vmatpush3.bf16.msra.mxu0 %v4974_v44 }
 0x1f8   :  { %4976 = vmatprep.subr.bf16.mxu0 %v5426_v38 }
 0x1f9   :  { %5002 = vmatpush3.bf16.msra.mxu1 %v4977_v47 }
 0x1fa   :  { %5003 = vmatprep.subr.bf16.mxu1 %v5426_v38 }
 0x1fb   :  { %4978 = vmatpush3.bf16.msra.mxu0 %v4977_v47 }
 0x1fc   :  { %4979 = vmatprep.subr.bf16.mxu0 %v5426_v38 }
 0x1fd   :  { %5005 = vmatpush3.bf16.msra.mxu1 %v4980_v51 }
 0x1fe   :  { %5006 = vmatprep.subr.bf16.mxu1 %v5426_v38 }
 0x1ff   :  { %4981 = vmatpush3.bf16.msra.mxu0 %v4980_v51  ;;  %v5293_v51 = vld [vmem:[%s6998_s7 + $0x58] sm:$0xff]  }
 0x200   :  { %4982 = vmatprep.subr.bf16.mxu0 %v5426_v38 }
 0x201   :  { %5008 = vmatpush3.bf16.msra.mxu1 %v4983_v53 }
 0x202   :  { %5009 = vmatprep.subr.bf16.mxu1 %v5426_v38 }
 0x203   :  { %4984 = vmatpush3.bf16.msra.mxu0 %v4983_v53  ;;  %v5296_v53 = vld [vmem:[%s6998_s7 + $0x70] sm:$0xff]  }
 0x204   :  { %4985 = vmatprep.subr.bf16.mxu0 %v5426_v38 }
 0x205   :  { %5011 = vmatpush3.bf16.msra.mxu1 %v4986_v56 }
 0x206   :  { %5012 = vmatprep.subr.bf16.mxu1 %v5426_v38 }
 0x207   :  { %4987 = vmatpush3.bf16.msra.mxu0 %v4986_v56 }
 0x208   :  { %4988 = vmatprep.subr.bf16.mxu0 %v5426_v38 }
 0x209   :  { %5014 = vmatpush3.bf16.msra.mxu1 %v4989_v59 }
 0x20a   :  { %5015 = vmatprep.subr.bf16.mxu1 %v5426_v38 }
 0x20b   :  { %4990 = vmatpush3.bf16.msra.mxu0 %v4989_v59 }
 0x20c   :  { %4991 = vmatprep.subr.bf16.mxu0 %v5426_v38 }
 0x20d   :  { %5017 = vmatpush3.bf16.msra.mxu1 %v4992_v10 }
 0x20e   :  { %5018 = vmatprep.subr.bf16.mxu1 %v5426_v38 }
 0x20f   :  { %4993 = vmatpush3.bf16.msra.mxu0 %v4992_v10 }
 0x210   :  { %4820 = vmatprep.subr.bf16.mxu0 %v5424_v0 }
 0x2b5   :  { %v6266_v1 = vpop.f32.mrb[32].mxu1 }
 0x2b6   :  { %v4748_v2 = vpop.f32.mrb[33].mxu1  ;;  %v1729_v3 = vmul.f32 %v6266_v1, %v6266_v1  ;;  %v1714_v4 = vrot.slane %v6266_v1, 4 }
 0x2b7   :  { %v1687_v62 = vpop.f32.mrb[34].mxu1 }
 0x2b8   :  { %v4749_v63 = vpop.f32.mrb[35].mxu1  ;;  %v1730_v5 = vrot.slane %v1729_v3, 4  ;;  %v1715_v7 = vadd.f32 %v1714_v4, %v6266_v1  ;;  %v1954_v4 = vlaneseq }
 0x2ba   :  { %v1731_v6 = vadd.f32 %v1730_v5, %v1729_v3  ;;  %v1716_v33 = vrot.slane %v1715_v7, 2 }
 0x2bc   :  { %v1732_v9 = vrot.slane %v1731_v6, 2  ;;  %v1717_v15 = vadd.f32 %v1716_v33, %v1715_v7 }
 0x2be   :  { %v1733_v19 = vadd.f32 %v1732_v9, %v1731_v6  ;;  %v1718_v22 = vrot.slane %v1717_v15, 1  ;;  %v1948_v9 = vld [vmem:[%s6999_s4] sm:$0x1] }
 0x2c0   :  { %v1734_v27 = vrot.slane %v1733_v19, 1  ;;  %v1719_v29 = vadd.f32 %v1718_v22, %v1717_v15  ;;  %v2433_v15 = vld [vmem:[%s7000_s10 + $0x10] sm:$0xff] }
 0x2c2   :  { %v1735_v34 = vadd.f32 %v1734_v27, %v1733_v19 }
 0x2c5   :  { %v6272_v8 = vpop.f32.mrb[32].mxu0 }
 0x2c6   :  { %v1707_v11 = vrot.slane %v6272_v8, 4  ;;  %v1721_v12 = vmul.f32 %v6272_v8, %v6272_v8  ;;  %v4668_v13 = vpop.f32.mrb[33].mxu0 }
 0x2c7   :  { %v1511_v14 = vpop.f32.mrb[34].mxu0  ;;  %v2431_v13 = vld [vmem:[%s7000_s10] sm:$0xff] }
 0x2c8   :  { %v1708_v16 = vadd.f32 %v1707_v11, %v6272_v8  ;;  %v1722_v17 = vrot.slane %v1721_v12, 4  ;;  %v4669_v18 = vpop.f32.mrb[35].mxu0  ;;  %v6340_v11 = vshrl.u32 %v1954_v4, 7  ;;  %v2432_v14 = vld [vmem:[%s7000_s10 + $0x8] sm:$0xff] }
 0x2c9   :  { %v6354_v19 = vpack.c.bf16 %v2432_v14, %v2431_v13  ;;  %v5308_v13 = vld [vmem:[%s6998_s7 + $0x90] sm:$0xff]   ;;  %v5309_v14 = vld [vmem:[%s6998_s7 + $0x98] sm:$0xff]  }
 0x2ca   :  { %v1709_v20 = vrot.slane %v1708_v16, 2  ;;  %v1723_v21 = vadd.f32 %v1722_v17, %v1721_v12 }
 0x2cc   :  { %v1710_v23 = vadd.f32 %v1709_v20, %v1708_v16  ;;  %v1724_v24 = vrot.slane %v1723_v21, 2  ;;  %v2434_v20 = vld [vmem:[%s7000_s10 + $0x18] sm:$0xff] }
 0x2cd   :  { %v6366_v27 = vpack.c.bf16 %v2434_v20, %v2433_v15  ;;  %v5310_v15 = vld [vmem:[%s6998_s7 + $0xa0] sm:$0xff]  }
 0x2ce   :  { %v1711_v25 = vrot.slane %v1710_v23, 1  ;;  %v1725_v26 = vadd.f32 %v1724_v24, %v1723_v21 }
 0x2d0   :  { %v1712_v28 = vadd.f32 %v1711_v25, %v1710_v23  ;;  %v1726_v30 = vrot.slane %v1725_v26, 1  ;;  %v6363_v25 = vsub.s32 0, %v6340_v11 }
 0x2d2   :  { %v1720_v31 = vadd.f32 %v1719_v29, %v1712_v28  ;;  %v1727_v32 = vadd.f32 %v1726_v30, %v1725_v26  ;;  %v2435_v29 = vld [vmem:[%s7000_s10 + $0x20] sm:$0xff]  ;;  %v2436_v30 = vld [vmem:[%s7000_s10 + $0x28] sm:$0xff] }
 0x2d4   :  { %4783 = vmatmul.mubr.f32.vlgmr.msra.gmra.mrb[36].mxu0 %v1720_v31  ;;  %v1736_v35 = vadd.f32 %v1735_v34, %v1727_v32  ;;  %v1950_v34 = vld [vmem:[%s7001_s5] sm:$0x1] }
 0x2d5   :  { %4836 = vmatprep.mubr.msk.bf16.mxu0 %vm5425_vm0, %v5424_v0  ;;  %4821 = vmatpush3.bf16.msra.mxu0 %v5290_v46 }
 0x2d6   :  { %4818 = vmatmul.mubr.f32.vlgmr.msra.gmra.mrb[36].mxu1 %v1736_v35  ;;  %4822 = vmatprep.subr.bf16.mxu0 %v5424_v0 }
 0x2d7   :  { %4932 = vmatprep.mubr.msk.f32.mxu1 %vm5425_vm0, %v5424_v0  ;;  %5020 = vmatpush3.bf16.msra.mxu1 %v6354_v19 }
 0x2d8   :  { %5021 = vmatprep.subr.bf16.mxu1 %v5426_v38 }
 0x2d9   :  { %4823 = vmatpush3.bf16.msra.mxu0 %v5291_v49  ;;  %v2440_v49 = vld [vmem:[%s7000_s10 + $0x48] sm:$0xff] }
 0x2da   :  { %4824 = vmatprep.subr.bf16.mxu0 %v5424_v0 }
 0x2db   :  { %5023 = vmatpush3.bf16.msra.mxu1 %v6366_v27 }
 0x2dc   :  { %5024 = vmatprep.subr.bf16.mxu1 %v5426_v38 }
 0x2dd   :  { %4825 = vmatpush3.bf16.msra.mxu0 %v5292_v50 }
 0x2de   :  { %4826 = vmatprep.subr.bf16.mxu0 %v5424_v0 }
 0x2e1   :  { %4827 = vmatpush3.bf16.msra.mxu0 %v5293_v51 }
 0x2e2   :  { %4828 = vmatprep.subr.bf16.mxu0 %v5424_v0 }
 0x2e5   :  { %4829 = vmatpush3.bf16.msra.mxu0 %v5294_v52 }
 0x2e6   :  { %4830 = vmatprep.subr.bf16.mxu0 %v5424_v0 }
 0x2e9   :  { %4831 = vmatpush3.bf16.msra.mxu0 %v5295_v48 }
 0x2ea   :  { %4832 = vmatprep.subr.bf16.mxu0 %v5424_v0 }
 0x2ed   :  { %4833 = vmatpush3.bf16.msra.mxu0 %v5296_v53 }
 0x2ee   :  { %4834 = vmatprep.subr.bf16.mxu0 %v5424_v0 }
 0x2f1   :  { %4835 = vmatpush3.bf16.msra.mxu0 %v5297_v54 }
 0x2f2   :  { %4840 = vmatprep.subr.bf16.mxu0 %v5424_v0 }
 0x3a7   :  { %v1803_v36 = vpop.f32.mrb[36].mxu0 }
 0x3a8   :  { %v6282_v37 = vmul.f32 0.0078125, %v1803_v36  ;;  %v4784_v39 = vpop.f32.mrb[37].mxu0 }
 0x3a9   :  { %v1875_v40 = vpop.f32.mrb[36].mxu1  ;;  %v6383_v39 = vpack.c.bf16 %v2436_v30, %v2435_v29  ;;  %v5316_v29 = vld [vmem:[%s6998_s7 + $0xd0] sm:$0xff]   ;;  %v5317_v30 = vld [vmem:[%s6998_s7 + $0xd8] sm:$0xff]  }
 0x3aa   :  { %v1879_v41 = vmul.f32 0.0078125, %v1875_v40  ;;  %v1880_v42 = vmul.f32 %v6282_v37, %v6282_v37  ;;  %1888 = vrot.lane.b32.xlu0 %v6282_v37, %s5427_s6  ;;  %1885 = vrot.lane.b32.xlu1 %v6282_v37, %s5428_s18  ;;  %v4819_v43 = vpop.f32.mrb[37].mxu1  ;;  %v2437_v40 = vld [vmem:[%s7000_s10 + $0x30] sm:$0xff] }
 0x3ab   :  { %5026 = vmatpush3.bf16.msra.mxu1 %v6383_v39 }
 0x3ac   :  { %v1881_v44 = vsub.f32 %v1879_v41, %v1880_v42  ;;  %v2438_v41 = vld [vmem:[%s7000_s10 + $0x38] sm:$0xff]  ;;  %5027 = vmatprep.subr.bf16.mxu1 %v5426_v38 }
 0x3ad   :  { %v6396_v46 = vpack.c.bf16 %v2438_v41, %v2437_v40 }
 0x3ae   :  { %v1882_v45 = vadd.f32 1e-05, %v1881_v44  ;;  %1891 = vrot.lane.b32.xlu0 %v6282_v37, %s5429_s19 }
 0x3af   :  { %5029 = vmatpush3.bf16.msra.mxu1 %v6396_v46 }
 0x3b0   :  { %5418 = vrsqrt.f32 %v1882_v45  ;;  %5030 = vmatprep.subr.bf16.mxu1 %v5426_v38 }
 0x3b2   :  { %1894 = vrot.lane.b32.xlu0 %v6282_v37, %s5430_s20 }
 0x3ba   :  { %v5419_v47 = vpop.eup %5418 }
 0x3bb   :  { %1926 = vrot.lane.b32.xlu1 %v5419_v47, %s5429_s19  ;;  %1920 = vrot.lane.b32.xlu0 %v5419_v47, %s5428_s18 }
 0x3bf   :  { %1929 = vrot.lane.b32.xlu1 %v5419_v47, %s5430_s20  ;;  %1923 = vrot.lane.b32.xlu0 %v5419_v47, %s5427_s6 }
 0x3c3   :  { %1932 = vrot.lane.b32.xlu1 %v5419_v47, %s5431_s0  ;;  %1897 = vrot.lane.b32.xlu0 %v6282_v37, %s5431_s0 }
 0x3c7   :  { %1935 = vrot.lane.b32.xlu1 %v5419_v47, %s5432_s28  ;;  %1900 = vrot.lane.b32.xlu0 %v6282_v37, %s5432_s28 }
 0x3cb   :  { %1938 = vrot.lane.b32.xlu1 %v5419_v47, %s5433_s30 }
 0x3cf   :  { %1903 = vrot.lane.b32.xlu1 %v6282_v37, %s5433_s30 }
 0x41c   :  { %v1889_v55 = vpop.permute.xlu0 %1888  ;;  %v1886_v57 = vpop.permute.xlu1 %1885 }
 0x41d   :  { %v1907_v33 = vsel %vm1906_vm7, %v6282_v37, %v1886_v57 }
 0x41e   :  { %v1909_v16 = vsel %vm1908_vm8, %v1907_v33, %v1889_v55  ;;  %v5306_v33 = vld [vmem:[%s6998_s7 + $0x80] sm:$0xff]  }
 0x420   :  { %v1892_v56 = vpop.permute.xlu0 %1891 }
 0x421   :  { %v1911_v21 = vsel %vm1910_vm9, %v1909_v16, %v1892_v56  ;;  %v5311_v16 = vld [vmem:[%s6998_s7 + $0xa8] sm:$0xff]  }
 0x424   :  { %v1895_v58 = vpop.permute.xlu0 %1894 }
 0x425   :  { %v1913_v24 = vsel %vm1912_vm10, %v1911_v21, %v1895_v58  ;;  %v5298_v58 = vld [vmem:[%s6998_s7] sm:$0xff]   ;;  %v5313_v21 = vld [vmem:[%s6998_s7 + $0xb8] sm:$0xff]  }
 0x42d   :  { %v1927_v59 = vpop.permute.xlu1 %1926  ;;  %v1921_v60 = vpop.permute.xlu0 %1920 }
 0x42e   :  { %v1941_v2 = vsel %vm1906_vm7, %v5419_v47, %v1921_v60  ;;  %v2439_v47 = vld [vmem:[%s7000_s10 + $0x40] sm:$0xff]  ;;  %v5299_v60 = vld [vmem:[%s6998_s7 + $0x8] sm:$0xff]   ;;  %vm3665_vm7 = vcmask 517120  }
 0x42f   :  { %v6405_v51 = vpack.c.bf16 %v2440_v49, %v2439_v47  ;;  %v2443_v47 = vld [vmem:[%s7000_s10 + $0x60] sm:$0xff]  ;;  %v2444_v49 = vld [vmem:[%s7000_s10 + $0x68] sm:$0xff] }
 0x431   :  { %v1930_v61 = vpop.permute.xlu1 %1929  ;;  %v1924_v10 = vpop.permute.xlu0 %1923  ;;  %5032 = vmatpush3.bf16.msra.mxu1 %v6405_v51 }
 0x432   :  { %v1942_v62 = vsel %vm1908_vm8, %v1941_v2, %v1924_v10  ;;  %5033 = vmatprep.subr.bf16.mxu1 %v5426_v38  ;;  %v5301_v10 = vld [vmem:[%s6998_s7 + $0x18] sm:$0xff]   ;;  %v5302_v2 = vld [vmem:[%s6998_s7 + $0x20] sm:$0xff]  }
 0x433   :  { %v1943_v3 = vsel %vm1910_vm9, %v1942_v62, %v1927_v59  ;;  %v5303_v62 = vld [vmem:[%s6998_s7 + $0x28] sm:$0xff]  }
 0x434   :  { %v1944_v7 = vsel %vm1912_vm10, %v1943_v3, %v1930_v61  ;;  %v5300_v61 = vld [vmem:[%s6998_s7 + $0x10] sm:$0xff]  }
 0x435   :  { %v1933_v63 = vpop.permute.xlu1 %1932  ;;  %v1898_v5 = vpop.permute.xlu0 %1897  ;;  %v5304_v3 = vld [vmem:[%s6998_s7 + $0x30] sm:$0xff]  }
 0x436   :  { %v1945_v12 = vsel %vm1914_vm11, %v1944_v7, %v1933_v63  ;;  %v1915_v28 = vsel %vm1914_vm11, %v1913_v24, %v1898_v5  ;;  %v5305_v5 = vld [vmem:[%s6998_s7 + $0x38] sm:$0xff]   ;;  %v5314_v24 = vld [vmem:[%s6998_s7 + $0xc0] sm:$0xff]  }
 0x439   :  { %v1936_v6 = vpop.permute.xlu1 %1935  ;;  %v1901_v22 = vpop.permute.xlu0 %1900 }
 0x43a   :  { %v1946_v17 = vsel %vm147_vm2, %v1945_v12, %v1936_v6  ;;  %v1916_v31 = vsel %vm147_vm2, %v1915_v28, %v1901_v22  ;;  %v5307_v12 = vld [vmem:[%s6998_s7 + $0x88] sm:$0xff]  }
 0x43b   :  { %v5315_v28 = vld [vmem:[%s6998_s7 + $0xc8] sm:$0xff]  }
 0x43d   :  { %v1939_v18 = vpop.permute.xlu1 %1938 }
 0x43e   :  { %v1947_v23 = vsel %vm1917_vm12, %v1946_v17, %v1939_v18  ;;  %v5312_v18 = vld [vmem:[%s6998_s7 + $0xb0] sm:$0xff]  }
 0x43f   :  { %v1949_v26 = vmul.f32 %v1948_v9, %v1947_v23 }
 0x441   :  { %v1904_v32 = vpop.permute.xlu1 %1903  ;;  %v1957_v36 = vrot.slane %v1949_v26, %v6363_v25 }
 0x442   :  { %v1918_v35 = vsel %vm1917_vm12, %v1916_v31, %v1904_v32  ;;  %v5318_v31 = vld [vmem:[%s6998_s7 + $0xe0] sm:$0xff]   ;;  %v5319_v32 = vld [vmem:[%s6998_s7 + $0xe8] sm:$0xff]  }
 0x443   :  { %v1951_v37 = vmul.f32 %v1949_v26, %v1918_v35  ;;  %v1959_v43 = vmul.f32 %v1957_v36, %v6272_v8  ;;  %v1970_v44 = vmul.f32 %v1957_v36, %v6266_v1  ;;  %v5320_v35 = vld [vmem:[%s6998_s7 + $0xf0] sm:$0xff]  }
 0x445   :  { %v1952_v42 = vsub.f32 %v1950_v34, %v1951_v37  ;;  %v5321_v37 = vld [vmem:[%s6998_s7 + $0xf8] sm:$0xff]  }
 0x447   :  { %v1964_v45 = vrot.slane %v1952_v42, %v6363_v25 }
 0x449   :  { %v1966_v50 = vadd.f32 %v1964_v45, %v1959_v43  ;;  %v1971_v8 = vadd.f32 %v1970_v44, %v1964_v45  ;;  %v2441_v43 = vld [vmem:[%s7000_s10 + $0x50] sm:$0xff]  ;;  %v2442_v44 = vld [vmem:[%s7000_s10 + $0x58] sm:$0xff] }
 0x44a   :  { %v5034_v45 = vpack.c.bf16 %v2442_v44, %v2441_v43  ;;  %v3246_v43 = vld [vmem:[%s7004_s14 + $0x10] sm:$0xff] }
 0x44b   :  { %vm1967_vm13 = vcmp.ge.f32.partialorder %v1966_v50, 0.0  ;;  %v1968_v1 = vmul.f32 0.2, %v1966_v50  ;;  %vm1972_vm14 = vcmp.ge.f32.partialorder %v1971_v8, 0.0  ;;  %v1973_v52 = vmul.f32 0.2, %v1971_v8 }
 0x44c   :  { %5035 = vmatpush3.bf16.msra.mxu1 %v5034_v45 }
 0x44d   :  { %v1969_v48 = vsel %vm1967_vm13, %v1966_v50, %v1968_v1  ;;  %v1974_v53 = vsel %vm1972_vm14, %v1971_v8, %v1973_v52  ;;  %5036 = vmatprep.subr.bf16.mxu1 %v5426_v38  ;;  %v5037_v50 = vpack.c.bf16 %v2444_v49, %v2443_v47  ;;  %v2445_v8 = vld [vmem:[%s7000_s10 + $0x70] sm:$0xff]  ;;  %v2446_v1 = vld [vmem:[%s7000_s10 + $0x78] sm:$0xff] }
 0x44e   :  { %1976 = vst [vmem:[#allocation3 + $0x10] ss:$8 sps:$4 sm:$0xff] %v1969_v48   ;;  %1979 = vst [vmem:[#allocation3 + $0x1] ss:$8 sps:$4 sm:$0xff] %v1974_v53   ;;  %v5040_v52 = vpack.c.bf16 %v2446_v1, %v2445_v8  ;;  %v3247_v49 = vld [vmem:[%s7004_s14 + $0x18] sm:$0xff] }
 0x450   :  { %5038 = vmatpush3.bf16.msra.mxu1 %v5037_v50 }
 0x451   :  { %5039 = vmatprep.subr.bf16.mxu1 %v5426_v38 }
 0x454   :  { %5041 = vmatpush3.bf16.msra.mxu1 %v5040_v52 }
 0x455   :  { %v2006_v54 = vld [vmem:[#allocation3 + $0x18] sm:$0xf]  ;;  %v2005_v56 = vld [vmem:[#allocation3 + $0x10] sm:$0xf]  ;;  %v1983_v63 = vld [vmem:[#allocation3 + $0x8] sm:$0xf]  ;;  %5042 = vmatprep.subr.bf16.mxu1 %v5426_v38 }
 0x456   :  { %v2008_v55 = vrot.slane %v2006_v54, 4  ;;  %v1985_v4 = vrot.slane %v1983_v63, 4  ;;  %v1982_v7 = vld [vmem:[#allocation3] sm:$0xf]  ;;  %v2206_v17 = vld [vmem:[#allocation3 + $0x9] sm:$0xf] }
 0x457   :  { %v2208_v20 = vrot.slane %v2206_v17, 4  ;;  %v2205_v22 = vld [vmem:[#allocation3 + $0x1] sm:$0xf]  ;;  %v2319_v34 = vld [vmem:[#allocation3 + $0x19] sm:$0xf] }
 0x458   :  { %v2010_v57 = vsel %vm74_vm1, %v2005_v56, %v2008_v55  ;;  %v1987_v6 = vsel %vm74_vm1, %v1982_v7, %v1985_v4  ;;  %v2321_v36 = vrot.slane %v2319_v34, 4  ;;  %v2318_v40 = vld [vmem:[#allocation3 + $0x11] sm:$0xf] }
 0x459   :  { %v2011_v59 = vpack.c.bf16 %v2010_v57, %v2010_v57  ;;  %v1988_v9 = vpack.c.bf16 %v1987_v6, %v1987_v6  ;;  %v2210_v23 = vsel %vm74_vm1, %v2205_v22, %v2208_v20  ;;  %v5333_v17 = vld [vmem:[%s7002_s11 + $0xb4] ss:$8 sps:$4 sm:$0xff]   ;;  %v5331_v20 = vld [vmem:[%s7002_s11 + $0xb0] ss:$8 sps:$4 sm:$0xff]   ;;  %v5334_v22 = vld [vmem:[%s7002_s11 + $0xc0] ss:$8 sps:$4 sm:$0xff]  }
 0x45a   :  { %v2211_v26 = vpack.c.bf16 %v2210_v23, %v2210_v23  ;;  %v2323_v41 = vsel %vm74_vm1, %v2318_v40, %v2321_v36  ;;  %v5339_v23 = vld [vmem:[%s7002_s11 + $0xd4] ss:$8 sps:$4 sm:$0xff]   ;;  %v2635_v40 = vld [vmem:[%s7003_s8] sm:$0x1]  ;;  %vm3268_vm1 = vcmask 1045504  }
 0x45b   :  { %4837 = vmatmul.mubr.bf16.vlgmr.msra.gmra.mrb[40].mxu0 %v2011_v59  ;;  %v2324_v42 = vpack.c.bf16 %v2323_v41, %v2323_v41  ;;  %v3244_v41 = vld [vmem:[%s7004_s14] sm:$0xff] }
 0x45c   :  { %4841 = vmatpush3.bf16.msra.mxu0 %v5298_v58  ;;  %4856 = vmatprep.mubr.msk.bf16.mxu0 %vm5425_vm0, %v5424_v0 }
 0x45d   :  { %4842 = vmatprep.subr.bf16.mxu0 %v5424_v0 }
 0x460   :  { %4843 = vmatpush3.bf16.msra.mxu0 %v5299_v60 }
 0x461   :  { %4844 = vmatprep.subr.bf16.mxu0 %v5424_v0 }
 0x464   :  { %4845 = vmatpush3.bf16.msra.mxu0 %v5300_v61 }
 0x465   :  { %4846 = vmatprep.subr.bf16.mxu0 %v5424_v0 }
 0x468   :  { %4847 = vmatpush3.bf16.msra.mxu0 %v5301_v10 }
 0x469   :  { %4848 = vmatprep.subr.bf16.mxu0 %v5424_v0 }
 0x46c   :  { %4849 = vmatpush3.bf16.msra.mxu0 %v5302_v2 }
 0x46d   :  { %4850 = vmatprep.subr.bf16.mxu0 %v5424_v0 }
 0x470   :  { %4851 = vmatpush3.bf16.msra.mxu0 %v5303_v62 }
 0x471   :  { %4852 = vmatprep.subr.bf16.mxu0 %v5424_v0 }
 0x474   :  { %4853 = vmatpush3.bf16.msra.mxu0 %v5304_v3 }
 0x475   :  { %4854 = vmatprep.subr.bf16.mxu0 %v5424_v0 }
 0x478   :  { %4855 = vmatpush3.bf16.msra.mxu0 %v5305_v5 }
 0x479   :  { %4860 = vmatprep.subr.bf16.mxu0 %v5424_v0 }
 0x47b   :  { %4857 = vmatmul.mubr.bf16.vlgmr.msra.gmra.mrb[40].mxu0 %v1988_v9 }
 0x47c   :  { %4861 = vmatpush3.bf16.msra.mxu0 %v5306_v33  ;;  %4876 = vmatprep.mubr.msk.bf16.mxu0 %vm5425_vm0, %v5424_v0  ;;  %v5324_v33 = vld [vmem:[%s7002_s11 + $0x84] ss:$8 sps:$4 sm:$0xff]  }
 0x47d   :  { %4862 = vmatprep.subr.bf16.mxu0 %v5424_v0 }
 0x480   :  { %4863 = vmatpush3.bf16.msra.mxu0 %v5307_v12  ;;  %v5322_v12 = vld [vmem:[%s7002_s11 + $0x80] ss:$8 sps:$4 sm:$0xff]  }
 0x481   :  { %4864 = vmatprep.subr.bf16.mxu0 %v5424_v0 }
 0x484   :  { %4865 = vmatpush3.bf16.msra.mxu0 %v5308_v13  ;;  %v5327_v13 = vld [vmem:[%s7002_s11 + $0x94] ss:$8 sps:$4 sm:$0xff]  }
 0x485   :  { %4866 = vmatprep.subr.bf16.mxu0 %v5424_v0 }
 0x488   :  { %4867 = vmatpush3.bf16.msra.mxu0 %v5309_v14  ;;  %v5325_v14 = vld [vmem:[%s7002_s11 + $0x90] ss:$8 sps:$4 sm:$0xff]  }
 0x489   :  { %4868 = vmatprep.subr.bf16.mxu0 %v5424_v0 }
 0x48c   :  { %4869 = vmatpush3.bf16.msra.mxu0 %v5310_v15  ;;  %v5330_v15 = vld [vmem:[%s7002_s11 + $0xa4] ss:$8 sps:$4 sm:$0xff]  }
 0x48d   :  { %4870 = vmatprep.subr.bf16.mxu0 %v5424_v0 }
 0x490   :  { %4871 = vmatpush3.bf16.msra.mxu0 %v5311_v16  ;;  %v5328_v16 = vld [vmem:[%s7002_s11 + $0xa0] ss:$8 sps:$4 sm:$0xff]  }
 0x491   :  { %4872 = vmatprep.subr.bf16.mxu0 %v5424_v0 }
 0x494   :  { %4873 = vmatpush3.bf16.msra.mxu0 %v5312_v18 }
 0x495   :  { %4874 = vmatprep.subr.bf16.mxu0 %v5424_v0 }
 0x498   :  { %4875 = vmatpush3.bf16.msra.mxu0 %v5313_v21  ;;  %v5336_v21 = vld [vmem:[%s7002_s11 + $0xc4] ss:$8 sps:$4 sm:$0xff]  }
 0x499   :  { %4880 = vmatprep.subr.bf16.mxu0 %v5424_v0 }
 0x49b   :  { %4877 = vmatmul.mubr.bf16.vlgmr.msra.gmra.mrb[40].mxu0 %v2211_v26  ;;  %v5342_v26 = vld [vmem:[%s7002_s11 + $0xe4] ss:$8 sps:$4 sm:$0xff]  }
 0x49c   :  { %4881 = vmatpush3.bf16.msra.mxu0 %v5314_v24  ;;  %4896 = vmatprep.mubr.msk.bf16.mxu0 %vm5425_vm0, %v5424_v0  ;;  %v5337_v24 = vld [vmem:[%s7002_s11 + $0xd0] ss:$8 sps:$4 sm:$0xff]  }
 0x49d   :  { %4882 = vmatprep.subr.bf16.mxu0 %v5424_v0 }
 0x4a0   :  { %4883 = vmatpush3.bf16.msra.mxu0 %v5315_v28  ;;  %v5340_v28 = vld [vmem:[%s7002_s11 + $0xe0] ss:$8 sps:$4 sm:$0xff]  }
 0x4a1   :  { %4884 = vmatprep.subr.bf16.mxu0 %v5424_v0 }
 0x4a4   :  { %4885 = vmatpush3.bf16.msra.mxu0 %v5316_v29  ;;  %v5345_v29 = vld [vmem:[%s7002_s11 + $0xf4] ss:$8 sps:$4 sm:$0xff]  }
 0x4a5   :  { %4886 = vmatprep.subr.bf16.mxu0 %v5424_v0 }
 0x4a8   :  { %4887 = vmatpush3.bf16.msra.mxu0 %v5317_v30  ;;  %v5434_v30 = vmov 0  }
 0x4a9   :  { %4888 = vmatprep.subr.bf16.mxu0 %v5424_v0 }
 0x4ac   :  { %4889 = vmatpush3.bf16.msra.mxu0 %v5318_v31  ;;  %v5343_v31 = vld [vmem:[%s7002_s11 + $0xf0] ss:$8 sps:$4 sm:$0xff]  }
 0x4ad   :  { %4890 = vmatprep.subr.bf16.mxu0 %v5424_v0 }
 0x4b0   :  { %4891 = vmatpush3.bf16.msra.mxu0 %v5319_v32  ;;  %v5348_v32 = vld [vmem:[%s7002_s11 + $0x4] ss:$8 sps:$4 sm:$0xff]  }
 0x4b1   :  { %4892 = vmatprep.subr.bf16.mxu0 %v5424_v0 }
 0x4b4   :  { %4893 = vmatpush3.bf16.msra.mxu0 %v5320_v35 }
 0x4b5   :  { %4894 = vmatprep.subr.bf16.mxu0 %v5424_v0 }
 0x4b8   :  { %4895 = vmatpush3.bf16.msra.mxu0 %v5321_v37 }
 0x4b9   :  { %5066 = vmatprep.subr.bf16.mxu0 %v5426_v38 }
 0x4bb   :  { %4897 = vmatmul.mubr.bf16.vlgmr.msra.gmra.mrb[40].mxu0 %v2324_v42  ;;  %v3245_v42 = vld [vmem:[%s7004_s14 + $0x8] sm:$0xff] }
 0x4bc   :  { %v6637_v47 = vpack.c.bf16 %v3245_v42, %v3244_v41  ;;  %v5364_v41 = vld [vmem:[%s7002_s11 + $0x60] ss:$8 sps:$4 sm:$0xff]   ;;  %v5369_v42 = vld [vmem:[%s7002_s11 + $0x74] ss:$8 sps:$4 sm:$0xff]  }
 0x4be   :  { %5068 = vmatpush1.bf16.msra.mxu0 %v6637_v47 }
 0x4bf   :  { %5069 = vmatprep.subr.bf16.mxu0 %v5426_v38 }
 0x58e   :  { %v6538_v48 = vpop.f32.mrb[40].mxu0 }
 0x58f   :  { %v2447_v53 = vrot.slane %v6538_v48, 4  ;;  %v4898_v54 = vpop.f32.mrb[41].mxu0  ;;  %v2454_v10 = vmul.f32 %v6538_v48, %v6538_v48 }
 0x590   :  { %v2427_v55 = vpop.f32.mrb[42].mxu0  ;;  %v3248_v54 = vld [vmem:[%s7004_s14 + $0x20] sm:$0xff] }
 0x591   :  { %v2448_v56 = vadd.f32 %v2447_v53, %v6538_v48  ;;  %v4899_v57 = vpop.f32.mrb[43].mxu0  ;;  %v2455_v2 = vrot.slane %v2454_v10, 4  ;;  %v3249_v55 = vld [vmem:[%s7004_s14 + $0x28] sm:$0xff] }
 0x593   :  { %v2449_v58 = vrot.slane %v2448_v56, 2 }
 0x595   :  { %v2450_v59 = vadd.f32 %v2449_v58, %v2448_v56  ;;  %v2637_v58 = vld [vmem:[%s7005_s9] sm:$0x1] }
 0x597   :  { %v2451_v60 = vrot.slane %v2450_v59, 1 }
 0x599   :  { %v2452_v61 = vadd.f32 %v2451_v60, %v2450_v59 }
 0x59b   :  { %4933 = vmatmul.mubr.f32.vlgmr.msra.gmra.mrb[38].mxu1 %v2452_v61 }
 0x59c   :  { %5044 = vmatpush3.bf16.msra.mxu1 %v6354_v19  ;;  %4967 = vmatprep.mubr.msk.f32.mxu1 %vm5425_vm0, %v5424_v0  ;;  %v2456_v19 = vadd.f32 %v2455_v2, %v2454_v10  ;;  %v6662_v10 = vpack.c.bf16 %v3249_v55, %v3248_v54  ;;  %v3250_v2 = vld [vmem:[%s7004_s14 + $0x30] sm:$0xff]  ;;  %vm2665_vm0 = vcmask 1042432   ;;  %v5378_v55 = vld [vmem:[%s7002_s11 + $0x124] ss:$8 sps:$4 sm:$0xff]  }
 0x59d   :  { %5045 = vmatprep.subr.bf16.mxu1 %v5426_v38  ;;  %v5373_v54 = vld [vmem:[%s7002_s11 + $0x110] ss:$8 sps:$4 sm:$0xff]  }
 0x59e   :  { %v2457_v0 = vrot.slane %v2456_v19, 2 }
 0x5a0   :  { %5047 = vmatpush3.bf16.msra.mxu1 %v6366_v27  ;;  %v2458_v27 = vadd.f32 %v2457_v0, %v2456_v19  ;;  %v3251_v19 = vld [vmem:[%s7004_s14 + $0x38] sm:$0xff] }
 0x5a1   :  { %5048 = vmatprep.subr.bf16.mxu1 %v5426_v38 }
 0x5a4   :  { %5050 = vmatpush3.bf16.msra.mxu1 %v6383_v39  ;;  %v2459_v39 = vrot.slane %v2458_v27, 1 }
 0x5a5   :  { %5051 = vmatprep.subr.bf16.mxu1 %v5426_v38 }
 0x5a6   :  { %v2460_v62 = vadd.f32 %v2459_v39, %v2458_v27 }
 0x5a8   :  { %5053 = vmatpush3.bf16.msra.mxu1 %v6396_v46 }
 0x5a9   :  { %5054 = vmatprep.subr.bf16.mxu1 %v5426_v38 }
 0x5ac   :  { %5056 = vmatpush3.bf16.msra.mxu1 %v6405_v51 }
 0x5ad   :  { %5057 = vmatprep.subr.bf16.mxu1 %v5426_v38 }
 0x5b0   :  { %5059 = vmatpush3.bf16.msra.mxu1 %v5034_v45 }
 0x5b1   :  { %5060 = vmatprep.subr.bf16.mxu1 %v5426_v38 }
 0x5b4   :  { %5062 = vmatpush3.bf16.msra.mxu1 %v5037_v50 }
 0x5b5   :  { %5063 = vmatprep.subr.bf16.mxu1 %v5426_v38 }
 0x5b8   :  { %5065 = vmatpush3.bf16.msra.mxu1 %v5040_v52  ;;  %v6644_v52 = vpack.c.bf16 %v3247_v49, %v3246_v43  ;;  %v5372_v49 = vld [vmem:[%s7002_s11 + $0x104] ss:$8 sps:$4 sm:$0xff]  }
 0x5b9   :  { %2788 = vmatprep.subr.bf16.mxu1 %v5324_v33  ;;  %v3256_v33 = vld [vmem:[%s7004_s14 + $0x60] sm:$0xff] }
 0x5ba   :  { %5071 = vmatpush1.bf16.msra.mxu0 %v6644_v52 }
 0x5bb   :  { %4968 = vmatmul.mubr.f32.vlgmr.msra.gmra.mrb[40].mxu1 %v2460_v62  ;;  %5072 = vmatprep.subr.bf16.mxu0 %v5426_v38  ;;  %v6674_v62 = vpack.c.bf16 %v3251_v19, %v3250_v2  ;;  %v5385_v2 = vld [vmem:[%s7002_s11 + $0x150] ss:$8 sps:$4 sm:$0xff]   ;;  %v5390_v19 = vld [vmem:[%s7002_s11 + $0x164] ss:$8 sps:$4 sm:$0xff]  }
 0x5bc   :  { %2789 = vmatpush1.bf16.msra.mxu1 %v5322_v12  ;;  %2820 = vmatprep.mubr.bf16.mxu1 %v5434_v30 }
 0x5bd   :  { %2790 = vmatprep.subr.bf16.mxu1 %v5327_v13  ;;  %v3258_v13 = vld [vmem:[%s7004_s14 + $0x70] sm:$0xff] }
 0x5be   :  { %5074 = vmatpush1.bf16.msra.mxu0 %v6662_v10 }
 0x5bf   :  { %5075 = vmatprep.subr.bf16.mxu0 %v5426_v38 }
 0x5c0   :  { %2791 = vmatpush1.bf16.msra.mxu1 %v5325_v14  ;;  %v3259_v14 = vld [vmem:[%s7004_s14 + $0x78] sm:$0xff] }
 0x5c1   :  { %2792 = vmatprep.subr.bf16.mxu1 %v5330_v15 }
 0x5c2   :  { %5077 = vmatpush1.bf16.msra.mxu0 %v6674_v62 }
 0x5c3   :  { %5078 = vmatprep.subr.bf16.mxu0 %v5426_v38 }
 0x5c4   :  { %2793 = vmatpush1.bf16.msra.mxu1 %v5328_v16 }
 0x5c5   :  { %2794 = vmatprep.subr.bf16.mxu1 %v5333_v17 }
 0x5c8   :  { %2795 = vmatpush1.bf16.msra.mxu1 %v5331_v20  ;;  %v5346_v20 = vld [vmem:[%s7002_s11] ss:$8 sps:$4 sm:$0xff]  }
 0x5c9   :  { %2796 = vmatprep.subr.bf16.mxu1 %v5336_v21 }
 0x5cc   :  { %2797 = vmatpush1.bf16.msra.mxu1 %v5334_v22 }
 0x5cd   :  { %2798 = vmatprep.subr.bf16.mxu1 %v5339_v23  ;;  %v5351_v23 = vld [vmem:[%s7002_s11 + $0x14] ss:$8 sps:$4 sm:$0xff]  }
 0x5d0   :  { %2799 = vmatpush1.bf16.msra.mxu1 %v5337_v24  ;;  %v5349_v24 = vld [vmem:[%s7002_s11 + $0x10] ss:$8 sps:$4 sm:$0xff]  }
 0x5d1   :  { %2800 = vmatprep.subr.bf16.mxu1 %v5342_v26  ;;  %v5354_v26 = vld [vmem:[%s7002_s11 + $0x24] ss:$8 sps:$4 sm:$0xff]  }
 0x5d4   :  { %2801 = vmatpush1.bf16.msra.mxu1 %v5340_v28  ;;  %v5352_v28 = vld [vmem:[%s7002_s11 + $0x20] ss:$8 sps:$4 sm:$0xff]  }
 0x5d5   :  { %2802 = vmatprep.subr.bf16.mxu1 %v5345_v29  ;;  %v5357_v29 = vld [vmem:[%s7002_s11 + $0x34] ss:$8 sps:$4 sm:$0xff]  }
 0x5d8   :  { %2803 = vmatpush1.bf16.msra.mxu1 %v5343_v31  ;;  %v5355_v31 = vld [vmem:[%s7002_s11 + $0x30] ss:$8 sps:$4 sm:$0xff]  }
 0x5d9   :  { %2909 = vmatprep.subr.bf16.mxu1 %v5348_v32  ;;  %v5360_v32 = vld [vmem:[%s7002_s11 + $0x44] ss:$8 sps:$4 sm:$0xff]  }
 0x66e   :  { %v2528_v46 = vpop.f32.mrb[38].mxu1 }
 0x66f   :  { %v6558_v63 = vmul.f32 0.03125, %v2528_v46  ;;  %v4934_v3 = vpop.f32.mrb[39].mxu1  ;;  %v3252_v46 = vld [vmem:[%s7004_s14 + $0x40] sm:$0xff] }
 0x671   :  { %2610 = vrot.lane.b32.xlu0 %v6558_v63, %s5427_s6  ;;  %v2605_v5 = vmul.f32 %v6558_v63, %v6558_v63 }
 0x68e   :  { %v2600_v51 = vpop.f32.mrb[40].mxu1 }
 0x68f   :  { %v2604_v4 = vmul.f32 0.03125, %v2600_v51  ;;  %v4969_v7 = vpop.f32.mrb[41].mxu1 }
 0x691   :  { %v2606_v6 = vsub.f32 %v2604_v4, %v2605_v5  ;;  %v3254_v4 = vld [vmem:[%s7004_s14 + $0x50] sm:$0xff]  ;;  %v3255_v5 = vld [vmem:[%s7004_s14 + $0x58] sm:$0xff] }
 0x693   :  { %v2607_v9 = vadd.f32 1e-05, %v2606_v6  ;;  %v6694_v6 = vpack.c.bf16 %v3255_v5, %v3254_v4  ;;  %v5394_v5 = vld [vmem:[%s7002_s11 + $0x180] ss:$8 sps:$4 sm:$0xff]  }
 0x695   :  { %5420 = vrsqrt.f32 %v2607_v9  ;;  %v3257_v9 = vld [vmem:[%s7004_s14 + $0x68] sm:$0xff] }
 0x696   :  { %v6704_v12 = vpack.c.bf16 %v3257_v9, %v3256_v33  ;;  %v5399_v33 = vld [vmem:[%s7002_s11 + $0x194] ss:$8 sps:$4 sm:$0xff]   ;;  %v5397_v9 = vld [vmem:[%s7002_s11 + $0x190] ss:$8 sps:$4 sm:$0xff]  }
 0x69f   :  { %v5421_v18 = vpop.eup %5420 }
 0x6a0   :  { %2626 = vrot.lane.b32.xlu1 %v5421_v18, %s5430_s20  ;;  %2623 = vrot.lane.b32.xlu0 %v5421_v18, %s5427_s6 }
 0x6a4   :  { %2629 = vrot.lane.b32.xlu1 %v5421_v18, %s5432_s28  ;;  %2613 = vrot.lane.b32.xlu0 %v6558_v63, %s5430_s20 }
 0x6a8   :  { %2616 = vrot.lane.b32.xlu1 %v6558_v63, %s5432_s28 }
 0x6e3   :  { %v2611_v34 = vpop.permute.xlu0 %2610 }
 0x6e4   :  { %v2619_v53 = vsel %vm1908_vm8, %v6558_v63, %v2611_v34  ;;  %v3253_v63 = vld [vmem:[%s7004_s14 + $0x48] sm:$0xff] }
 0x6e5   :  { %v5358_v34 = vld [vmem:[%s7002_s11 + $0x40] ss:$8 sps:$4 sm:$0xff]  }
 0x712   :  { %v2627_v35 = vpop.permute.xlu1 %2626  ;;  %v2624_v36 = vpop.permute.xlu0 %2623 }
 0x713   :  { %v2632_v37 = vsel %vm1908_vm8, %v5421_v18, %v2624_v36  ;;  %v6714_v18 = vpack.c.bf16 %v3259_v14, %v3258_v13  ;;  %v5361_v36 = vld [vmem:[%s7002_s11 + $0x50] ss:$8 sps:$4 sm:$0xff]   ;;  %v5402_v13 = vld [vmem:[%s7002_s11 + $0x1a4] ss:$8 sps:$4 sm:$0xff]   ;;  %v5400_v14 = vld [vmem:[%s7002_s11 + $0x1a0] ss:$8 sps:$4 sm:$0xff]  }
 0x714   :  { %v2633_v45 = vsel %vm1912_vm10, %v2632_v37, %v2627_v35  ;;  %v5363_v35 = vld [vmem:[%s7002_s11 + $0x54] ss:$8 sps:$4 sm:$0xff]   ;;  %v5366_v37 = vld [vmem:[%s7002_s11 + $0x64] ss:$8 sps:$4 sm:$0xff]   ;;  %vm3669_vm8 = vcmask 1024  }
 0x716   :  { %v2630_v44 = vpop.permute.xlu1 %2629  ;;  %v2614_v8 = vpop.permute.xlu0 %2613 }
 0x717   :  { %v2634_v50 = vsel %vm147_vm2, %v2633_v45, %v2630_v44  ;;  %v2620_v56 = vsel %vm1912_vm10, %v2619_v53, %v2614_v8  ;;  %v5367_v44 = vld [vmem:[%s7002_s11 + $0x70] ss:$8 sps:$4 sm:$0xff]   ;;  %v5370_v8 = vld [vmem:[%s7002_s11 + $0x100] ss:$8 sps:$4 sm:$0xff]   ;;  %v5375_v53 = vld [vmem:[%s7002_s11 + $0x114] ss:$8 sps:$4 sm:$0xff]  }
 0x718   :  { %v2636_v1 = vmul.f32 %v2635_v40, %v2634_v50 }
 0x71a   :  { %v2617_v57 = vpop.permute.xlu1 %2616  ;;  %v2644_v60 = vrot.slane %v2636_v1, %v6363_v25 }
 0x71b   :  { %v2621_v59 = vsel %vm147_vm2, %v2620_v56, %v2617_v57  ;;  %v5376_v56 = vld [vmem:[%s7002_s11 + $0x120] ss:$8 sps:$4 sm:$0xff]   ;;  %v5381_v57 = vld [vmem:[%s7002_s11 + $0x134] ss:$8 sps:$4 sm:$0xff]   ;;  %vm3276_vm2 = vcmask 521216  }
 0x71c   :  { %v2638_v61 = vmul.f32 %v2636_v1, %v2621_v59  ;;  %v2646_v27 = vmul.f32 %v2644_v60, %v6538_v48  ;;  %v6684_v48 = vpack.c.bf16 %v3253_v63, %v3252_v46  ;;  %v5384_v59 = vld [vmem:[%s7002_s11 + $0x144] ss:$8 sps:$4 sm:$0xff]   ;;  %v5382_v60 = vld [vmem:[%s7002_s11 + $0x140] ss:$8 sps:$4 sm:$0xff]   ;;  %v5391_v63 = vld [vmem:[%s7002_s11 + $0x170] ss:$8 sps:$4 sm:$0xff]  }
 0x71e   :  { %v2639_v0 = vsub.f32 %v2637_v58, %v2638_v61  ;;  %5080 = vmatpush1.bf16.msra.mxu0 %v6684_v48  ;;  %v5379_v58 = vld [vmem:[%s7002_s11 + $0x130] ss:$8 sps:$4 sm:$0xff]   ;;  %v5387_v61 = vld [vmem:[%s7002_s11 + $0x154] ss:$8 sps:$4 sm:$0xff]  }
 0x71f   :  { %5081 = vmatprep.subr.bf16.mxu0 %v5426_v38 }
 0x720   :  { %v2651_v39 = vrot.slane %v2639_v0, %v6363_v25 }
 0x722   :  { %v2653_v3 = vadd.f32 %v2651_v39, %v2646_v27  ;;  %5083 = vmatpush1.bf16.msra.mxu0 %v6694_v6  ;;  %v5388_v27 = vld [vmem:[%s7002_s11 + $0x160] ss:$8 sps:$4 sm:$0xff]   ;;  %v5393_v39 = vld [vmem:[%s7002_s11 + $0x174] ss:$8 sps:$4 sm:$0xff]  }
 0x723   :  { %5084 = vmatprep.subr.bf16.mxu0 %v5426_v38 }
 0x724   :  { %vm2654_vm15 = vcmp.ge.f32.partialorder %v2653_v3, 0.0  ;;  %v2655_v51 = vmul.f32 0.2, %v2653_v3 }
 0x726   :  { %v2656_v7 = vsel %vm2654_vm15, %v2653_v3, %v2655_v51  ;;  %5086 = vmatpush1.bf16.msra.mxu0 %v6704_v12  ;;  %v5396_v51 = vld [vmem:[%s7002_s11 + $0x184] ss:$8 sps:$4 sm:$0xff]  }
 0x727   :  { %2657 = vst [vmem:[#allocation4 + $0x1] ss:$8 sps:$4 sm:$0xff] %v2656_v7   ;;  %5087 = vmatprep.subr.bf16.mxu0 %v5426_v38 }
 0x72a   :  { %5089 = vmatpush1.bf16.msra.mxu0 %v6714_v18 }
 0x72b   :  { %5090 = vmatprep.subr.bf16.mxu0 %v5426_v38 }
 0x72e   :  { %v2685_v15 = vld [vmem:[#allocation4 + $0x9] sm:$0x7]  ;;  %v2684_v17 = vld [vmem:[#allocation4 + $0x1] sm:$0x7] }
 0x72f   :  { %v2687_v16 = vrot.slane %v2685_v15, 5  ;;  %v2661_v40 = vld [vmem:[#allocation4 + $0x8] sm:$0x7]  ;;  %v2660_v45 = vld [vmem:[#allocation4] sm:$0x7] }
 0x730   :  { %v2663_v43 = vrot.slane %v2661_v40, 5  ;;  %v2951_v0 = vld [vmem:[#allocation4 + $0xa] sm:$0x7]  ;;  %v2950_v3 = vld [vmem:[#allocation4 + $0x2] sm:$0x7]  ;;  %v3262_v40 = vld [vmem:[%s7004_s14 + $0x90] sm:$0xff] }
 0x731   :  { %v2689_v21 = vsel %vm2665_vm0, %v2684_v17, %v2687_v16  ;;  %v2953_v46 = vrot.slane %v2951_v0, 5  ;;  %v5405_v15 = vld [vmem:[%s7002_s11 + $0x1b4] ss:$8 sps:$4 sm:$0xff]   ;;  %v5408_v16 = vld [vmem:[%s7002_s11 + $0x1c4] ss:$8 sps:$4 sm:$0xff]  }
 0x732   :  { %v2690_v22 = vpack.c.bf16 %v2689_v21, %v2689_v21  ;;  %v2666_v50 = vsel %vm2665_vm0, %v2660_v45, %v2663_v43  ;;  %v5406_v17 = vld [vmem:[%s7002_s11 + $0x1c0] ss:$8 sps:$4 sm:$0xff]   ;;  %v5409_v21 = vld [vmem:[%s7002_s11 + $0x1d0] ss:$8 sps:$4 sm:$0xff]  }
 0x733   :  { %v2667_v1 = vpack.c.bf16 %v2666_v50, %v2666_v50  ;;  %v2955_v4 = vsel %vm2665_vm0, %v2950_v3, %v2953_v46  ;;  %v3264_v43 = vld [vmem:[%s7004_s14 + $0xa0] sm:$0xff]  ;;  %v3267_v50 = vld [vmem:[%s7004_s14 + $0xb8] sm:$0xff] }
 0x734   :  { %2821 = vmatmul.mubr.bf16.vlgmr.msra.gmra.mrb[44].mxu1 %v2690_v22  ;;  %v2956_v7 = vpack.c.bf16 %v2955_v4, %v2955_v4  ;;  %v5414_v22 = vld [vmem:[%s7002_s11 + $0x1e4] ss:$8 sps:$4 sm:$0xff]  }
 0x735   :  { %2910 = vmatpush1.bf16.msra.mxu1 %v5346_v20  ;;  %2941 = vmatprep.mubr.bf16.mxu1 %v5434_v30  ;;  %v5411_v20 = vld [vmem:[%s7002_s11 + $0x1d4] ss:$8 sps:$4 sm:$0xff]  }
 0x736   :  { %2911 = vmatprep.subr.bf16.mxu1 %v5351_v23  ;;  %v3098_v23 = vld [vmem:[#allocation4 + $0xb] sm:$0x7] }
 0x739   :  { %2912 = vmatpush1.bf16.msra.mxu1 %v5349_v24  ;;  %v5412_v24 = vld [vmem:[%s7002_s11 + $0x1e0] ss:$8 sps:$4 sm:$0xff]  }
 0x73a   :  { %2913 = vmatprep.subr.bf16.mxu1 %v5354_v26  ;;  %v5417_v26 = vld [vmem:[%s7002_s11 + $0x1f4] ss:$8 sps:$4 sm:$0xff]  }
 0x73d   :  { %2914 = vmatpush1.bf16.msra.mxu1 %v5352_v28  ;;  %v3100_v28 = vrot.slane %v3098_v23, 5 }
 0x73e   :  { %2915 = vmatprep.subr.bf16.mxu1 %v5357_v29  ;;  %v5415_v29 = vld [vmem:[%s7002_s11 + $0x1f0] ss:$8 sps:$4 sm:$0xff]  }
 0x741   :  { %2916 = vmatpush1.bf16.msra.mxu1 %v5355_v31  ;;  %v3097_v31 = vld [vmem:[#allocation4 + $0x3] sm:$0x7] }
 0x742   :  { %2917 = vmatprep.subr.bf16.mxu1 %v5360_v32  ;;  %v3102_v32 = vsel %vm2665_vm0, %v3097_v31, %v3100_v28 }
 0x745   :  { %2918 = vmatpush1.bf16.msra.mxu1 %v5358_v34  ;;  %v3103_v34 = vpack.c.bf16 %v3102_v32, %v3102_v32 }
 0x746   :  { %2919 = vmatprep.subr.bf16.mxu1 %v5363_v35  ;;  %v3260_v35 = vld [vmem:[%s7004_s14 + $0x80] sm:$0xff] }
 0x749   :  { %2920 = vmatpush1.bf16.msra.mxu1 %v5361_v36  ;;  %v3261_v36 = vld [vmem:[%s7004_s14 + $0x88] sm:$0xff] }
 0x74a   :  { %2921 = vmatprep.subr.bf16.mxu1 %v5366_v37  ;;  %v6890_v37 = vpack.c.bf16 %v3261_v36, %v3260_v35 }
 0x74c   :  { %5092 = vmatpush1.bf16.msra.mxu0 %v6890_v37 }
 0x74d   :  { %2922 = vmatpush1.bf16.msra.mxu1 %v5364_v41  ;;  %5093 = vmatprep.subr.bf16.mxu0 %v5426_v38  ;;  %v3263_v41 = vld [vmem:[%s7004_s14 + $0x98] sm:$0xff] }
 0x74e   :  { %2923 = vmatprep.subr.bf16.mxu1 %v5369_v42  ;;  %v6902_v42 = vpack.c.bf16 %v3263_v41, %v3262_v40  ;;  %v3494_v40 = vsub.s32 1, %v6340_v11 }
 0x750   :  { %5095 = vmatpush1.bf16.msra.mxu0 %v6902_v42 }
 0x751   :  { %2924 = vmatpush1.bf16.msra.mxu1 %v5367_v44  ;;  %5096 = vmatprep.subr.bf16.mxu0 %v5426_v38  ;;  %v3265_v44 = vld [vmem:[%s7004_s14 + $0xa8] sm:$0xff] }
 0x752   :  { %3054 = vmatprep.subr.bf16.mxu1 %v5372_v49  ;;  %v6914_v45 = vpack.c.bf16 %v3265_v44, %v3264_v43  ;;  %v3266_v49 = vld [vmem:[%s7004_s14 + $0xb0] sm:$0xff] }
 0x754   :  { %2942 = vmatmul.mubr.bf16.vlgmr.msra.gmra.mrb[44].mxu1 %v2667_v1  ;;  %5098 = vmatpush1.bf16.msra.mxu0 %v6914_v45 }
 0x755   :  { %3055 = vmatpush1.bf16.msra.mxu1 %v5370_v8  ;;  %3086 = vmatprep.mubr.bf16.mxu1 %v5434_v30  ;;  %v6926_v8 = vpack.c.bf16 %v3267_v50, %v3266_v49 }
 0x756   :  { %3056 = vmatprep.subr.bf16.mxu1 %v5375_v53  ;;  %5099 = vmatprep.subr.bf16.mxu0 %v5426_v38 }
 0x758   :  { %5101 = vmatpush1.bf16.msra.mxu0 %v6926_v8 }
 0x759   :  { %3057 = vmatpush1.bf16.msra.mxu1 %v5373_v54  ;;  %5102 = vmatprep.subr.bf16.mxu0 %v5426_v38 }
 0x75a   :  { %3058 = vmatprep.subr.bf16.mxu1 %v5378_v55 }
 0x75d   :  { %3059 = vmatpush1.bf16.msra.mxu1 %v5376_v56 }
 0x75e   :  { %3060 = vmatprep.subr.bf16.mxu1 %v5381_v57 }
 0x761   :  { %3061 = vmatpush1.bf16.msra.mxu1 %v5379_v58 }
 0x762   :  { %3062 = vmatprep.subr.bf16.mxu1 %v5384_v59 }
 0x765   :  { %3063 = vmatpush1.bf16.msra.mxu1 %v5382_v60 }
 0x766   :  { %3064 = vmatprep.subr.bf16.mxu1 %v5387_v61 }
 0x769   :  { %3065 = vmatpush1.bf16.msra.mxu1 %v5385_v2 }
 0x76a   :  { %3066 = vmatprep.subr.bf16.mxu1 %v5390_v19 }
 0x76d   :  { %3067 = vmatpush1.bf16.msra.mxu1 %v5388_v27 }
 0x76e   :  { %3068 = vmatprep.subr.bf16.mxu1 %v5393_v39 }
 0x771   :  { %3069 = vmatpush1.bf16.msra.mxu1 %v5391_v63 }
 0x772   :  { %3201 = vmatprep.subr.bf16.mxu1 %v5396_v51 }
 0x774   :  { %3087 = vmatmul.mubr.bf16.vlgmr.msra.gmra.mrb[44].mxu1 %v2956_v7 }
 0x775   :  { %3202 = vmatpush1.bf16.msra.mxu1 %v5394_v5  ;;  %3233 = vmatprep.mubr.bf16.mxu1 %v5434_v30  ;;  %v5403_v30 = vld [vmem:[%s7002_s11 + $0x1b0] ss:$8 sps:$4 sm:$0xff]  }
 0x776   :  { %3203 = vmatprep.subr.bf16.mxu1 %v5399_v33 }
 0x779   :  { %3204 = vmatpush1.bf16.msra.mxu1 %v5397_v9 }
 0x77a   :  { %3205 = vmatprep.subr.bf16.mxu1 %v5402_v13 }
 0x77d   :  { %3206 = vmatpush1.bf16.msra.mxu1 %v5400_v14 }
 0x77e   :  { %3207 = vmatprep.subr.bf16.mxu1 %v5405_v15 }
 0x781   :  { %3208 = vmatpush1.bf16.msra.mxu1 %v5403_v30 }
 0x782   :  { %3209 = vmatprep.subr.bf16.mxu1 %v5408_v16 }
 0x785   :  { %3210 = vmatpush1.bf16.msra.mxu1 %v5406_v17 }
 0x786   :  { %3211 = vmatprep.subr.bf16.mxu1 %v5411_v20 }
 0x789   :  { %3212 = vmatpush1.bf16.msra.mxu1 %v5409_v21 }
 0x78a   :  { %3213 = vmatprep.subr.bf16.mxu1 %v5414_v22 }
 0x78d   :  { %3214 = vmatpush1.bf16.msra.mxu1 %v5412_v24 }
 0x78e   :  { %3215 = vmatprep.subr.bf16.mxu1 %v5417_v26 }
 0x791   :  { %3216 = vmatpush1.bf16.msra.mxu1 %v5415_v29 }
 0x792   :  { %5138 = vmatprep.subr.bf16.mxu1 %v5426_v38 }
 0x794   :  { %3234 = vmatmul.mubr.bf16.vlgmr.msra.gmra.mrb[44].mxu1 %v3103_v34 }
 0x795   :  { %5140 = vmatpush1.bf16.msra.mxu1 %v6637_v47 }
 0x796   :  { %5141 = vmatprep.subr.bf16.mxu1 %v5426_v38 }
 0x799   :  { %5143 = vmatpush1.bf16.msra.mxu1 %v6644_v52 }
 0x79a   :  { %5144 = vmatprep.subr.bf16.mxu1 %v5426_v38 }
 0x79d   :  { %5146 = vmatpush1.bf16.msra.mxu1 %v6662_v10 }
 0x79e   :  { %5147 = vmatprep.subr.bf16.mxu1 %v5426_v38 }
 0x7a1   :  { %5149 = vmatpush1.bf16.msra.mxu1 %v6674_v62 }
 0x7a2   :  { %5150 = vmatprep.subr.bf16.mxu1 %v5426_v38 }
 0x7a5   :  { %5152 = vmatpush1.bf16.msra.mxu1 %v6684_v48 }
 0x7a6   :  { %5153 = vmatprep.subr.bf16.mxu1 %v5426_v38 }
 0x7a9   :  { %5155 = vmatpush1.bf16.msra.mxu1 %v6694_v6 }
 0x7aa   :  { %5156 = vmatprep.subr.bf16.mxu1 %v5426_v38 }
 0x7ad   :  { %5158 = vmatpush1.bf16.msra.mxu1 %v6704_v12 }
 0x7ae   :  { %5159 = vmatprep.subr.bf16.mxu1 %v5426_v38 }
 0x7b1   :  { %5161 = vmatpush1.bf16.msra.mxu1 %v6714_v18 }
 0x7b2   :  { %5162 = vmatprep.subr.bf16.mxu1 %v5426_v38 }
 0x7b5   :  { %5164 = vmatpush1.bf16.msra.mxu1 %v6890_v37 }
 0x7b6   :  { %5165 = vmatprep.subr.bf16.mxu1 %v5426_v38 }
 0x7b9   :  { %5167 = vmatpush1.bf16.msra.mxu1 %v6902_v42 }
 0x7ba   :  { %5168 = vmatprep.subr.bf16.mxu1 %v5426_v38 }
 0x7bd   :  { %5170 = vmatpush1.bf16.msra.mxu1 %v6914_v45 }
 0x7be   :  { %5171 = vmatprep.subr.bf16.mxu1 %v5426_v38 }
 0x7c1   :  { %5173 = vmatpush1.bf16.msra.mxu1 %v6926_v8 }
 0x867   :  { %v6931_v1 = vpop.f32.mrb[44].mxu1 }
 0x868   :  { %v3269_v53 = vsel %vm3268_vm1, %v6931_v1, 0.0  ;;  %v6935_v54 = vpop.f32.mrb[45].mxu1 }
 0x869   :  { %v3270_v55 = vrot.slane %v3269_v53, 4  ;;  %v3277_v56 = vsel %vm3276_vm2, %v6935_v54, 0.0  ;;  %v3287_v57 = vmul.f32 %v6935_v54, %v6935_v54  ;;  %v3239_v58 = vpop.f32.mrb[46].mxu1 }
 0x86a   :  { %v3278_v59 = vrot.slane %v3277_v56, 4  ;;  %v3240_v60 = vpop.f32.mrb[47].mxu1 }
 0x86b   :  { %v3271_v61 = vadd.f32 %v3270_v55, %v3269_v53  ;;  %v3295_v2 = vsel %vm3276_vm2, %v3287_v57, 0.0 }
 0x86c   :  { %v3279_v19 = vadd.f32 %v3278_v59, %v3277_v56  ;;  %v3296_v0 = vrot.slane %v3295_v2, 4  ;;  %v3486_v56 = vld [vmem:[%s7007_s13] sm:$0x3] }
 0x86d   :  { %v3272_v27 = vrot.slane %v3271_v61, 2 }
 0x86e   :  { %v3280_v39 = vrot.slane %v3279_v19, 2  ;;  %v3297_v46 = vadd.f32 %v3296_v0, %v3295_v2 }
 0x86f   :  { %v3273_v63 = vadd.f32 %v3272_v27, %v3271_v61 }
 0x870   :  { %v3281_v3 = vadd.f32 %v3280_v39, %v3279_v19  ;;  %v3298_v51 = vrot.slane %v3297_v46, 2 }
 0x871   :  { %v3274_v4 = vrot.slane %v3273_v63, 1 }
 0x872   :  { %v3282_v5 = vrot.slane %v3281_v3, 1  ;;  %v3299_v7 = vadd.f32 %v3298_v51, %v3297_v46 }
 0x873   :  { %v3275_v13 = vadd.f32 %v3274_v4, %v3273_v63 }
 0x874   :  { %v3283_v33 = vadd.f32 %v3282_v5, %v3281_v3  ;;  %v3300_v9 = vrot.slane %v3299_v7, 1 }
 0x876   :  { %4042 = vmatprep.mubr.msk.f32.mxu0 %vm1912_vm10, %v3283_v33  ;;  %v3301_v14 = vadd.f32 %v3300_v9, %v3299_v7 }
 0x877   :  { %3372 = vmatmul.mubr.f32.vlgmr.msra.gmra.mrb[38].mxu0 %v3275_v13 }
 0x878   :  { %5104 = vmatpush1.bf16.msra.mxu0 %v6637_v47  ;;  %4043 = vmatprep.mubr.msk.f32.mxu0 %vm1912_vm10, %v3301_v14  ;;  %v3286_v47 = vmul.f32 %v6931_v1, %v6931_v1 }
 0x879   :  { %5105 = vmatprep.subr.bf16.mxu0 %v5426_v38 }
 0x87c   :  { %5107 = vmatpush1.bf16.msra.mxu0 %v6644_v52  ;;  %v3288_v52 = vsel %vm3268_vm1, %v3286_v47, 0.0 }
 0x87d   :  { %5108 = vmatprep.subr.bf16.mxu0 %v5426_v38 }
 0x880   :  { %5110 = vmatpush1.bf16.msra.mxu0 %v6662_v10  ;;  %v3289_v10 = vrot.slane %v3288_v52, 4 }
 0x881   :  { %5111 = vmatprep.subr.bf16.mxu0 %v5426_v38 }
 0x884   :  { %5113 = vmatpush1.bf16.msra.mxu0 %v6674_v62  ;;  %v3290_v62 = vadd.f32 %v3289_v10, %v3288_v52 }
 0x885   :  { %5114 = vmatprep.subr.bf16.mxu0 %v5426_v38 }
 0x888   :  { %5116 = vmatpush1.bf16.msra.mxu0 %v6684_v48  ;;  %v3291_v48 = vrot.slane %v3290_v62, 2 }
 0x889   :  { %5117 = vmatprep.subr.bf16.mxu0 %v5426_v38 }
 0x88c   :  { %5119 = vmatpush1.bf16.msra.mxu0 %v6694_v6  ;;  %v3292_v6 = vadd.f32 %v3291_v48, %v3290_v62 }
 0x88d   :  { %5120 = vmatprep.subr.bf16.mxu0 %v5426_v38 }
 0x890   :  { %5122 = vmatpush1.bf16.msra.mxu0 %v6704_v12  ;;  %v3293_v12 = vrot.slane %v3292_v6, 1 }
 0x891   :  { %5123 = vmatprep.subr.bf16.mxu0 %v5426_v38 }
 0x894   :  { %5125 = vmatpush1.bf16.msra.mxu0 %v6714_v18  ;;  %v3294_v18 = vadd.f32 %v3293_v12, %v3292_v6 }
 0x895   :  { %5126 = vmatprep.subr.bf16.mxu0 %v5426_v38 }
 0x898   :  { %5128 = vmatpush1.bf16.msra.mxu0 %v6890_v37  ;;  %v3467_v37 = vld [vmem:[%s7006_s12] sm:$0x3] }
 0x899   :  { %5129 = vmatprep.subr.bf16.mxu0 %v5426_v38 }
 0x89c   :  { %5131 = vmatpush1.bf16.msra.mxu0 %v6902_v42 }
 0x89d   :  { %5132 = vmatprep.subr.bf16.mxu0 %v5426_v38 }
 0x8a0   :  { %5134 = vmatpush1.bf16.msra.mxu0 %v6914_v45 }
 0x8a1   :  { %5135 = vmatprep.subr.bf16.mxu0 %v5426_v38  ;;  %v5435_v38 = vmov 1966171168  }
 0x8a2   :  { %v3471_v28 = vunpack.c.l.s4 %v5435_v38 }
 0x8a4   :  { %5137 = vmatpush1.bf16.msra.mxu0 %v6926_v8  ;;  %v3472_v29 = vunpack.c.0.s8 %v3471_v28 }
 0x8a6   :  { %v3475_v31 = vsub.s32 %v3472_v29, %v6340_v11 }
 0x8a7   :  { %3447 = vmatmul.mubr.f32.vlgmr.msra.gmra.mrb[44].mxu0 %v3294_v18 }
 0x94a   :  { %v3373_v15 = vpop.f32.mrb[38].mxu0 }
 0x94b   :  { %v3378_v30 = vmul.f32 0.055555556, %v3373_v15  ;;  %v3375_v16 = vpop.f32.mrb[39].mxu0 }
 0x94d   :  { %3458 = vrot.lane.b32.xlu1 %v3378_v30, %s5430_s20  ;;  %v3453_v21 = vmul.f32 %v3378_v30, %v3378_v30 }
 0x97a   :  { %v3448_v17 = vpop.f32.mrb[44].mxu0 }
 0x97b   :  { %v3452_v20 = vmul.f32 0.055555556, %v3448_v17  ;;  %v3450_v22 = vpop.f32.mrb[45].mxu0 }
 0x97d   :  { %v3454_v23 = vsub.f32 %v3452_v20, %v3453_v21 }
 0x97f   :  { %v3455_v24 = vadd.f32 1e-05, %v3454_v23 }
 0x981   :  { %5422 = vrsqrt.f32 %v3455_v24 }
 0x98b   :  { %v5423_v26 = vpop.eup %5422 }
 0x98c   :  { %3463 = vrot.lane.b32.xlu0 %v5423_v26, %s5430_s20 }
 0x9bf   :  { %v3459_v42 = vpop.permute.xlu1 %3458 }
 0x9c0   :  { %v3461_v49 = vsel %vm1912_vm10, %v3378_v30, %v3459_v42 }
 0x9fe   :  { %v3464_v32 = vpop.permute.xlu0 %3463 }
 0x9ff   :  { %v3466_v34 = vsel %vm1912_vm10, %v5423_v26, %v3464_v32 }
 0xa00   :  { %v3469_v35 = vcombine.low %v3466_v34, %v5423_v26 }
 0xa02   :  { %v3476_v36 = vrot.slane %v3469_v35, %v3475_v31  ;;  %v4045_v35 = vld [vmem:[%s7008_s15] ss:$0 sm:$0xff] }
 0xa04   :  { %v3483_v41 = vrot.slane %v3476_v36, %v3475_v31 }
 0xa06   :  { %v3485_v43 = vmul.f32 %v3483_v41, %v3467_v37 }
 0xa08   :  { %v3491_v44 = vrot.slane %v3485_v43, %v6363_v25  ;;  %v3495_v45 = vrot.slane %v3485_v43, %v3494_v40 }
 0xa0a   :  { %v3498_v50 = vmul.f32 %v3491_v44, %v3461_v49  ;;  %v3499_v8 = vmul.f32 %v3495_v45, %v3378_v30  ;;  %v3519_v11 = vmul.f32 %v3491_v44, %v6931_v1  ;;  %v3520_v59 = vmul.f32 %v3495_v45, %v6935_v54 }
 0xa0c   :  { %v3502_v53 = vcombine.low %v3498_v50, %v3499_v8 }
 0xa0e   :  { %v3509_v55 = vrot.slane %v3502_v53, %v3475_v31 }
 0xa10   :  { %v3516_v57 = vrot.slane %v3509_v55, %v3475_v31 }
 0xa12   :  { %v3518_v58 = vsub.f32 %v3486_v56, %v3516_v57 }
 0xa14   :  { %v3525_v60 = vrot.slane %v3518_v58, %v6363_v25  ;;  %v3529_v61 = vrot.slane %v3518_v58, %v3494_v40 }
 0xa16   :  { %v3532_v2 = vadd.f32 %v3525_v60, %v3519_v11  ;;  %v3533_v19 = vadd.f32 %v3529_v61, %v3520_v59 }
 0xa18   :  { %vm3535_vm4 = vcmp.ge.f32.partialorder %v3533_v19, 0.0  ;;  %v3537_v0 = vmul.f32 0.2, %v3533_v19  ;;  %vm3534_vm5 = vcmp.ge.f32.partialorder %v3532_v2, 0.0  ;;  %v3536_v27 = vmul.f32 0.2, %v3532_v2 }
 0xa1a   :  { %v3539_v39 = vsel %vm3535_vm4, %v3533_v19, %v3537_v0  ;;  %v3538_v46 = vsel %vm3534_vm5, %v3532_v2, %v3536_v27 }
 0xa1b   :  { %v3548_v63 = vsel %vm3547_vm3, %v3539_v39, 0.0  ;;  %v3561_v3 = vrot.slane %v3539_v39, 3  ;;  %v3540_v51 = vsel %vm2665_vm0, %v3538_v46, 0.0  ;;  %v3560_v4 = vrot.slane %v3538_v46, 3 }
 0xa1c   :  { %v3549_v1 = vrot.slane %v3548_v63, 4  ;;  %v3541_v5 = vrot.slane %v3540_v51, 4 }
 0xa1d   :  { %v3571_v54 = vsel %vm3547_vm3, %v3561_v3, 0.0  ;;  %v3564_v25 = vsel %vm2665_vm0, %v3560_v4, 0.0 }
 0xa1e   :  { %v3550_v7 = vadd.f32 %v3549_v1, %v3548_v63  ;;  %v3572_v33 = vrot.slane %v3571_v54, 4  ;;  %v3542_v9 = vadd.f32 %v3541_v5, %v3540_v51  ;;  %v3565_v13 = vrot.slane %v3564_v25, 4 }
 0xa20   :  { %v3551_v14 = vrot.slane %v3550_v7, 2  ;;  %v3573_v47 = vadd.f32 %v3572_v33, %v3571_v54  ;;  %v3543_v52 = vrot.slane %v3542_v9, 2  ;;  %v3566_v10 = vadd.f32 %v3565_v13, %v3564_v25 }
 0xa22   :  { %v3552_v62 = vadd.f32 %v3551_v14, %v3550_v7  ;;  %v3574_v48 = vrot.slane %v3573_v47, 2  ;;  %v3544_v6 = vadd.f32 %v3543_v52, %v3542_v9  ;;  %v3567_v12 = vrot.slane %v3566_v10, 2 }
 0xa24   :  { %v3553_v18 = vrot.slane %v3552_v62, 1  ;;  %v3575_v15 = vadd.f32 %v3574_v48, %v3573_v47  ;;  %v3545_v30 = vrot.slane %v3544_v6, 1  ;;  %v3568_v16 = vadd.f32 %v3567_v12, %v3566_v10 }
 0xa26   :  { %v3554_v17 = vadd.f32 %v3553_v18, %v3552_v62  ;;  %v3576_v20 = vrot.slane %v3575_v15, 1  ;;  %v3546_v21 = vadd.f32 %v3545_v30, %v3544_v6  ;;  %v3569_v22 = vrot.slane %v3568_v16, 1 }
 0xa28   :  { %v3577_v23 = vadd.f32 %v3576_v20, %v3575_v15  ;;  %v3570_v24 = vadd.f32 %v3569_v22, %v3568_v16  ;;  %v3557_v26 = vmul.f32 0.33333334, %v3554_v17  ;;  %v3556_v28 = vmul.f32 0.33333334, %v3546_v21 }
 0xa2a   :  { %v3579_v38 = vmul.f32 0.33333334, %v3577_v23  ;;  %v3578_v29 = vmul.f32 0.33333334, %v3570_v24 }
 0xa2c   :  { %v3582_v31 = vsel %vm3580_vm6, %v3557_v26, %v3579_v38  ;;  %v3581_v32 = vsel %vm3580_vm6, %v3556_v28, %v3578_v29 }
 0xa2d   :  { %4044 = vmatprep.mubr.msk.f32.mxu1 %vm1912_vm10, %v3582_v31 }
 0xa2e   :  { %3651 = vmatmul.mubr.f32.vlgmr.msra.gmra.mrb[42].mxu1 %v3581_v32 }
 0xb01   :  { %v3652_v34 = vpop.f32.mrb[42].mxu1 }
 0xb02   :  { %v3656_v36 = vmul.f32 0.33333334, %v3652_v34  ;;  %v3654_v37 = vpop.f32.mrb[43].mxu1 }
 0xb04   :  { %v3664_v40 = vmul.f32 %v4045_v35, %v3656_v36 }
 0xb06   :  { %v3666_v41 = vsel %vm3665_vm7, %v3664_v40, 0.0 }
 0xb07   :  { %3667 = vadd.xlane.f32.xlu0 %v3666_v41 }
 0xb94   :  { %v3668_v42 = vpop.xlane.xlu0 %3667 }
 0xb95   :  { %3670 = vst.msk [vmem:[%s7009_s16] sm:$0x3] %vm3669_vm8, %v3668_v42 }

</bundles_post_ra>
